<compile_context>
chip_gen: v7x
topology: tpu7x:2x2x1
jax: 0.10.0
libtpu: 0.0.40
codegen_flags: <defaults>
</compile_context>

<pallas_src>
import jax
import jax.numpy as jnp
from jax import lax
from jax.experimental import pallas as pl
from jax.experimental.pallas import tpu as pltpu


def encoder_gru_kernel(x_ref,
                       wih_f_ref, whh_f_ref, bih_f_ref, bhh_f_ref,
                       wih_b_ref, whh_b_ref, bih_b_ref, bhh_b_ref,
                       wfc_ref, bfc_ref,
                       out_ref, hid_ref,
                       gif, gib):
    SB, E = x_ref.shape[1], x_ref.shape[2]   # SB = S * TB (time-major, batch-tile flattened)
    TB = hid_ref.shape[1]
    S = SB // TB

    # ---- Hoisted input projection: one big MXU matmul per gate per direction ----
    x2d = x_ref[0]                                          # (S*TB, E), bf16
    for g in range(3):                                      # gates r, z, n (lane-aligned)
        gif[g] = (jnp.dot(x2d, wih_f_ref[g], preferred_element_type=jnp.float32)
                  + bih_f_ref[g])
        gib[g] = (jnp.dot(x2d, wih_b_ref[g], preferred_element_type=jnp.float32)
                  + bib if False else jnp.dot(x2d, wih_b_ref[g],
                                              preferred_element_type=jnp.float32)
                  + bih_b_ref[g])

    # ---- Fused fwd/bwd recurrence; hidden states live in the loop carry (vregs) ----
    def cell(h, gi_t, gh):
        r = jax.nn.sigmoid(gi_t[0] + gh[0])
        z = jax.nn.sigmoid(gi_t[1] + gh[1])
        n = jnp.tanh(gi_t[2] + r * gh[2])                   # PyTorch: n uses r * (h@Whn + bhn)
        return (1.0 - z) * n + z * h

    def step(t, carry):
        hf, hb = carry
        off_f = pl.multiple_of(t * TB, TB)                  # sublane-aligned dynamic slices
        off_b = pl.multiple_of((S - 1 - t) * TB, TB)
        hf16 = hf.astype(jnp.bfloat16)
        hb16 = hb.astype(jnp.bfloat16)
        ghf = [jnp.dot(hf16, whh_f_ref[g], preferred_element_type=jnp.float32)
               + bhh_f_ref[g] for g in range(3)]
        ghb = [jnp.dot(hb16, whh_b_ref[g], preferred_element_type=jnp.float32)
               + bhh_b_ref[g] for g in range(3)]
        gif_t = [gif[g, pl.ds(off_f, TB), :] for g in range(3)]
        gib_t = [gib[g, pl.ds(off_b, TB), :] for g in range(3)]
        hf_new = cell(hf, gif_t, ghf)
        hb_new = cell(hb, gib_t, ghb)
        out_ref[0, pl.ds(off_f, TB), 0:E] = hf_new          # forward half of lane-concat output
        out_ref[0, pl.ds(off_b, TB), E:2 * E] = hb_new      # backward half
        return (hf_new, hb_new)

    h0 = jnp.zeros((TB, E), jnp.float32)
    # S is small & compile-time known here; unroll gives the scheduler cross-iteration
    # visibility to co-issue the two independent directions.
    hf_fin, hb_fin = lax.fori_loop(0, S, step, (h0, h0), unroll=True)

    # ---- hidden = tanh(fc(cat(h_backward, h_forward))): single fused matmul ----
    hcat = jnp.concatenate([hb_fin, hf_fin], axis=1).astype(jnp.bfloat16)   # (TB, 2E)
    hid_ref[0] = jnp.tanh(
        jnp.dot(hcat, wfc_ref[...], preferred_element_type=jnp.float32) + bfc_ref[...])


def encoder_gru_forward(src, params, *, tb=8):
    """src: (B, S) int32 token ids. Returns (outputs (B, S, 2E), hidden (B, 1, E))."""
    E = params["embed"].shape[1]
    B, S = src.shape

    # --- glue: embedding lookup + batch padding + per-tile time-major layout ---
    emb = params["embed"][src].astype(jnp.bfloat16)               # (B, S, E)
    Bp = ((B + tb - 1) // tb) * tb                                # pad batch to 8-sublane mult.
    n_bt = Bp // tb
    x = jnp.pad(emb, ((0, Bp - B), (0, 0), (0, 0)))               # (Bp, S, E)
    # (Bp, S, E) -> (n_bt, S*tb, E): row s*tb + slot inside each batch tile.
    x = x.reshape(n_bt, tb, S, E).transpose(0, 2, 1, 3).reshape(n_bt, S * tb, E)

    def gate_major(w):   # (3E, E) PyTorch layout -> (3, E_in, E_out), bf16 MXU operand
        return jnp.transpose(w.reshape(3, E, E), (0, 2, 1)).astype(jnp.bfloat16)

    def gate_bias(b):    # (3E,) -> (3, 1, E), f32 (added after f32 accumulation)
        return b.reshape(3, 1, E).astype(jnp.float32)

    def full(shape):     # untiled operand, same block for every grid step
        return pl.BlockSpec(shape, lambda i: (0,) * len(shape))

    grid_spec = pltpu.PrefetchScalarGridSpec(
        num_scalar_prefetch=0,
        grid=(n_bt,),                                             # batch tiles (megacore-able)
        in_specs=[pl.BlockSpec((1, S * tb, E), lambda i: (i, 0, 0)),
                  full((3, E, E)), full((3, E, E)), full((3, 1, E)), full((3, 1, E)),
                  full((3, E, E)), full((3, E, E)), full((3, 1, E)), full((3, 1, E)),
                  full((2 * E, E)), full((1, E))],
        out_specs=[pl.BlockSpec((1, S * tb, 2 * E), lambda i: (i, 0, 0)),
                   pl.BlockSpec((1, tb, E), lambda i: (i, 0, 0))],
        scratch_shapes=[pltpu.VMEM((3, S * tb, E), jnp.float32),   # hoisted gi (forward)
                        pltpu.VMEM((3, S * tb, E), jnp.float32)])  # hoisted gi (backward)

    out, hid = pl.pallas_call(
        encoder_gru_kernel,
        out_shape=(jax.ShapeDtypeStruct((n_bt, S * tb, 2 * E), jnp.float32),
                   jax.ShapeDtypeStruct((n_bt, tb, E), jnp.float32)),
        grid_spec=grid_spec,
        compiler_params=pltpu.CompilerParams(dimension_semantics=("parallel",)),
    )(x,
      gate_major(params["w_ih_f"]), gate_major(params["w_hh_f"]),
      gate_bias(params["b_ih_f"]), gate_bias(params["b_hh_f"]),
      gate_major(params["w_ih_b"]), gate_major(params["w_hh_b"]),
      gate_bias(params["b_ih_b"]), gate_bias(params["b_hh_b"]),
      params["w_fc"].T.astype(jnp.bfloat16),
      params["b_fc"][None, :].astype(jnp.float32))

    # --- glue: back to batch-major, drop batch padding ---
    outputs = (out.reshape(n_bt, S, tb, 2 * E)
                  .transpose(0, 2, 1, 3)
                  .reshape(Bp, S, 2 * E))[:B]                     # (B, S, 2E)
    hidden = hid.reshape(Bp, E)[:B][:, None, :]                   # (B, 1, E)
    return outputs, hidden


def init_params(key, vocab_size, emb_dim):
    E = emb_dim
    ks = jax.random.split(key, 12)
    gru_bound = 1.0 / (E ** 0.5)
    fc_bound = 1.0 / ((2 * E) ** 0.5)

    def u(k, shape, bound):
        return jax.random.uniform(k, shape, jnp.float32, -bound, bound)

    embed = jax.random.normal(ks[0], (vocab_size, E), jnp.float32)
    embed = embed.at[0].set(0.0)  # padding_idx=0

    return {
        "embed":  embed,
        "w_ih_f": u(ks[1], (3 * E, E), gru_bound),
        "w_hh_f": u(ks[2], (3 * E, E), gru_bound),
        "b_ih_f": u(ks[3], (3 * E,), gru_bound),
        "b_hh_f": u(ks[4], (3 * E,), gru_bound),
        "w_ih_b": u(ks[5], (3 * E, E), gru_bound),
        "w_hh_b": u(ks[6], (3 * E, E), gru_bound),
        "b_ih_b": u(ks[7], (3 * E,), gru_bound),
        "b_hh_b": u(ks[8], (3 * E,), gru_bound),
        "w_fc":   u(ks[9], (E, 2 * E), fc_bound),
        "b_fc":   u(ks[10], (E,), fc_bound),
    }


def reference_forward(src, params):
    """Pure-JAX f32 reference implementing the exact PyTorch semantics."""
    E = params["embed"].shape[1]
    emb = params["embed"][src]
    x = jnp.transpose(emb, (1, 0, 2))
    S, B, _ = x.shape

    def cell(x_t, h, wih, whh, bih, bhh):
        gi = x_t @ wih.T + bih
        gh = h @ whh.T + bhh
        r = jax.nn.sigmoid(gi[:, :E] + gh[:, :E])
        z = jax.nn.sigmoid(gi[:, E:2 * E] + gh[:, E:2 * E])
        n = jnp.tanh(gi[:, 2 * E:] + r * gh[:, 2 * E:])
        return (1.0 - z) * n + z * h

    hf = jnp.zeros((B, E), jnp.float32)
    outs_f = []
    for t in range(S):
        hf = cell(x[t], hf, params["w_ih_f"], params["w_hh_f"],
                  params["b_ih_f"], params["b_hh_f"])
        outs_f.append(hf)
    hb = jnp.zeros((B, E), jnp.float32)
    outs_b = [None] * S
    for t in range(S - 1, -1, -1):
        hb = cell(x[t], hb, params["w_ih_b"], params["w_hh_b"],
                  params["b_ih_b"], params["b_hh_b"])
        outs_b[t] = hb
    outputs = jnp.stack(
        [jnp.concatenate([outs_f[t], outs_b[t]], axis=1) for t in range(S)], axis=0)
    outputs = jnp.transpose(outputs, (1, 0, 2))
    hidden = jnp.tanh(jnp.concatenate([hb, hf], axis=1) @ params["w_fc"].T
                      + params["b_fc"])[:, None, :]
    return outputs, hidden


if __name__ == "__main__":
    VOCAB, EMB, BATCH, SEQ = 50, 32, 4, 8

    key = jax.random.PRNGKey(0)
    k_param, k_src = jax.random.split(key)
    params = init_params(k_param, VOCAB, EMB)

    src = jax.random.randint(k_src, (BATCH, SEQ), 0, VOCAB, dtype=jnp.int32)
    src = src.at[0, -2:].set(0)  # exercise padding_idx rows

    outputs, hidden = encoder_gru_forward(src, params)
    outputs = jax.block_until_ready(outputs)
    hidden = jax.block_until_ready(hidden)

    assert outputs.shape == (BATCH, SEQ, 2 * EMB)
    assert hidden.shape == (BATCH, 1, EMB)

    ref_out, ref_hid = reference_forward(src, params)
    # Kernel uses bf16 MXU operands with f32 accumulation -> compare at bf16-level tolerance.
    assert jnp.allclose(outputs, ref_out, atol=2e-2, rtol=2e-2), \
        float(jnp.max(jnp.abs(outputs - ref_out)))
    assert jnp.allclose(hidden, ref_hid, atol=2e-2, rtol=2e-2), \
        float(jnp.max(jnp.abs(hidden - ref_hid)))

    print("KERNEL_OK")
</pallas_src>

<mosaic_0001>
module attributes {stable_mosaic.version = 11 : i64} {
  func.func @encoder_gru_kernel(%arg0: i32, %arg1: memref<1x64x32xbf16, #tpu.memory_space<vmem>>, %arg2: memref<3x32x32xbf16, #tpu.memory_space<vmem>>, %arg3: memref<3x32x32xbf16, #tpu.memory_space<vmem>>, %arg4: memref<3x1x32xf32, #tpu.memory_space<vmem>>, %arg5: memref<3x1x32xf32, #tpu.memory_space<vmem>>, %arg6: memref<3x32x32xbf16, #tpu.memory_space<vmem>>, %arg7: memref<3x32x32xbf16, #tpu.memory_space<vmem>>, %arg8: memref<3x1x32xf32, #tpu.memory_space<vmem>>, %arg9: memref<3x1x32xf32, #tpu.memory_space<vmem>>, %arg10: memref<64x32xbf16, #tpu.memory_space<vmem>>, %arg11: memref<1x32xf32, #tpu.memory_space<vmem>>, %arg12: memref<1x64x64xf32, #tpu.memory_space<vmem>>, %arg13: memref<1x8x32xf32, #tpu.memory_space<vmem>>, %arg14: memref<3x64x32xf32, #tpu.memory_space<vmem>>, %arg15: memref<3x64x32xf32, #tpu.memory_space<vmem>>) attributes {dimension_semantics = [#tpu.dimension_semantics<parallel>], iteration_bounds = array<i64: 1>, scalar_prefetch = 0 : i64, scratch_operands = 2 : i64, tpu.core_type = #tpu.core_type<tc>, window_params = [{transform_indices = @transform_0, window_bounds = array<i64: 1, 64, 32>}, {pipeline_mode = #tpu.pipeline_mode<synchronous>, transform_indices = @transform_1, window_bounds = array<i64: 3, 32, 32>}, {pipeline_mode = #tpu.pipeline_mode<synchronous>, transform_indices = @transform_2, window_bounds = array<i64: 3, 32, 32>}, {pipeline_mode = #tpu.pipeline_mode<synchronous>, transform_indices = @transform_3, window_bounds = array<i64: 3, 1, 32>}, {pipeline_mode = #tpu.pipeline_mode<synchronous>, transform_indices = @transform_4, window_bounds = array<i64: 3, 1, 32>}, {pipeline_mode = #tpu.pipeline_mode<synchronous>, transform_indices = @transform_5, window_bounds = array<i64: 3, 32, 32>}, {pipeline_mode = #tpu.pipeline_mode<synchronous>, transform_indices = @transform_6, window_bounds = array<i64: 3, 32, 32>}, {pipeline_mode = #tpu.pipeline_mode<synchronous>, transform_indices = @transform_7, window_bounds = array<i64: 3, 1, 32>}, {pipeline_mode = #tpu.pipeline_mode<synchronous>, transform_indices = @transform_8, window_bounds = array<i64: 3, 1, 32>}, {pipeline_mode = #tpu.pipeline_mode<synchronous>, transform_indices = @transform_9, window_bounds = array<i64: 64, 32>}, {pipeline_mode = #tpu.pipeline_mode<synchronous>, transform_indices = @transform_10, window_bounds = array<i64: 1, 32>}, {transform_indices = @transform_11, window_bounds = array<i64: 1, 64, 64>}, {transform_indices = @transform_12, window_bounds = array<i64: 1, 8, 32>}]} {
    %c0 = arith.constant 0 : index
    %c0_0 = arith.constant 0 : index
    %c0_1 = arith.constant 0 : index
    %0 = vector.load %arg1[%c0, %c0_0, %c0_1] : memref<1x64x32xbf16, #tpu.memory_space<vmem>>, vector<1x64x32xbf16>
    %1 = vector.shape_cast %0 : vector<1x64x32xbf16> to vector<64x32xbf16>
    %c0_2 = arith.constant 0 : index
    %c0_3 = arith.constant 0 : index
    %c0_4 = arith.constant 0 : index
    %2 = vector.load %arg2[%c0_2, %c0_3, %c0_4] : memref<3x32x32xbf16, #tpu.memory_space<vmem>>, vector<1x32x32xbf16>
    %3 = vector.shape_cast %2 : vector<1x32x32xbf16> to vector<32x32xbf16>
    %cst = arith.constant dense<0.000000e+00> : vector<64x32xf32>
    %4 = tpu.matmul %1, %3, %cst {dimension_numbers = #tpu.dot_dimension_numbers<[1], [0], [0], [1], [0, 0, 1, 1], [], []>} : vector<64x32xbf16>, vector<32x32xbf16>, vector<64x32xf32> -> vector<64x32xf32>
    %c0_5 = arith.constant 0 : index
    %c0_6 = arith.constant 0 : index
    %c0_7 = arith.constant 0 : index
    %5 = vector.load %arg4[%c0_5, %c0_6, %c0_7] : memref<3x1x32xf32, #tpu.memory_space<vmem>>, vector<1x1x32xf32>
    %6 = vector.shape_cast %5 : vector<1x1x32xf32> to vector<1x32xf32>
    %7 = vector.broadcast %6 : vector<1x32xf32> to vector<64x32xf32>
    %8 = arith.addf %4, %7 : vector<64x32xf32>
    %c0_8 = arith.constant 0 : index
    %c0_9 = arith.constant 0 : index
    %c0_10 = arith.constant 0 : index
    %9 = vector.load %arg14[%c0_8, %c0_9, %c0_10] : memref<3x64x32xf32, #tpu.memory_space<vmem>>, vector<1x64x32xf32>
    %10 = vector.shape_cast %9 : vector<1x64x32xf32> to vector<64x32xf32>
    %11 = vector.shape_cast %8 : vector<64x32xf32> to vector<1x64x32xf32>
    tpu.vector_store %arg14[%c0_8, %c0_9, %c0_10], %11 {strides = array<i32>} : memref<3x64x32xf32, #tpu.memory_space<vmem>>, vector<1x64x32xf32>,
    %c0_11 = arith.constant 0 : index
    %c0_12 = arith.constant 0 : index
    %c0_13 = arith.constant 0 : index
    %12 = vector.load %arg6[%c0_11, %c0_12, %c0_13] : memref<3x32x32xbf16, #tpu.memory_space<vmem>>, vector<1x32x32xbf16>
    %13 = vector.shape_cast %12 : vector<1x32x32xbf16> to vector<32x32xbf16>
    %cst_14 = arith.constant dense<0.000000e+00> : vector<64x32xf32>
    %14 = tpu.matmul %1, %13, %cst_14 {dimension_numbers = #tpu.dot_dimension_numbers<[1], [0], [0], [1], [0, 0, 1, 1], [], []>} : vector<64x32xbf16>, vector<32x32xbf16>, vector<64x32xf32> -> vector<64x32xf32>
    %c0_15 = arith.constant 0 : index
    %c0_16 = arith.constant 0 : index
    %c0_17 = arith.constant 0 : index
    %15 = vector.load %arg8[%c0_15, %c0_16, %c0_17] : memref<3x1x32xf32, #tpu.memory_space<vmem>>, vector<1x1x32xf32>
    %16 = vector.shape_cast %15 : vector<1x1x32xf32> to vector<1x32xf32>
    %17 = vector.broadcast %16 : vector<1x32xf32> to vector<64x32xf32>
    %18 = arith.addf %14, %17 : vector<64x32xf32>
    %c0_18 = arith.constant 0 : index
    %c0_19 = arith.constant 0 : index
    %c0_20 = arith.constant 0 : index
    %19 = vector.load %arg15[%c0_18, %c0_19, %c0_20] : memref<3x64x32xf32, #tpu.memory_space<vmem>>, vector<1x64x32xf32>
    %20 = vector.shape_cast %19 : vector<1x64x32xf32> to vector<64x32xf32>
    %21 = vector.shape_cast %18 : vector<64x32xf32> to vector<1x64x32xf32>
    tpu.vector_store %arg15[%c0_18, %c0_19, %c0_20], %21 {strides = array<i32>} : memref<3x64x32xf32, #tpu.memory_space<vmem>>, vector<1x64x32xf32>,
    %c1 = arith.constant 1 : index
    %c0_21 = arith.constant 0 : index
    %c0_22 = arith.constant 0 : index
    %22 = vector.load %arg2[%c1, %c0_21, %c0_22] : memref<3x32x32xbf16, #tpu.memory_space<vmem>>, vector<1x32x32xbf16>
    %23 = vector.shape_cast %22 : vector<1x32x32xbf16> to vector<32x32xbf16>
    %cst_23 = arith.constant dense<0.000000e+00> : vector<64x32xf32>
    %24 = tpu.matmul %1, %23, %cst_23 {dimension_numbers = #tpu.dot_dimension_numbers<[1], [0], [0], [1], [0, 0, 1, 1], [], []>} : vector<64x32xbf16>, vector<32x32xbf16>, vector<64x32xf32> -> vector<64x32xf32>
    %c1_24 = arith.constant 1 : index
    %c0_25 = arith.constant 0 : index
    %c0_26 = arith.constant 0 : index
    %25 = vector.load %arg4[%c1_24, %c0_25, %c0_26] : memref<3x1x32xf32, #tpu.memory_space<vmem>>, vector<1x1x32xf32>
    %26 = vector.shape_cast %25 : vector<1x1x32xf32> to vector<1x32xf32>
    %27 = vector.broadcast %26 : vector<1x32xf32> to vector<64x32xf32>
    %28 = arith.addf %24, %27 : vector<64x32xf32>
    %c1_27 = arith.constant 1 : index
    %c0_28 = arith.constant 0 : index
    %c0_29 = arith.constant 0 : index
    %29 = vector.load %arg14[%c1_27, %c0_28, %c0_29] : memref<3x64x32xf32, #tpu.memory_space<vmem>>, vector<1x64x32xf32>
    %30 = vector.shape_cast %29 : vector<1x64x32xf32> to vector<64x32xf32>
    %31 = vector.shape_cast %28 : vector<64x32xf32> to vector<1x64x32xf32>
    tpu.vector_store %arg14[%c1_27, %c0_28, %c0_29], %31 {strides = array<i32>} : memref<3x64x32xf32, #tpu.memory_space<vmem>>, vector<1x64x32xf32>,
    %c1_30 = arith.constant 1 : index
    %c0_31 = arith.constant 0 : index
    %c0_32 = arith.constant 0 : index
    %32 = vector.load %arg6[%c1_30, %c0_31, %c0_32] : memref<3x32x32xbf16, #tpu.memory_space<vmem>>, vector<1x32x32xbf16>
    %33 = vector.shape_cast %32 : vector<1x32x32xbf16> to vector<32x32xbf16>
    %cst_33 = arith.constant dense<0.000000e+00> : vector<64x32xf32>
    %34 = tpu.matmul %1, %33, %cst_33 {dimension_numbers = #tpu.dot_dimension_numbers<[1], [0], [0], [1], [0, 0, 1, 1], [], []>} : vector<64x32xbf16>, vector<32x32xbf16>, vector<64x32xf32> -> vector<64x32xf32>
    %c1_34 = arith.constant 1 : index
    %c0_35 = arith.constant 0 : index
    %c0_36 = arith.constant 0 : index
    %35 = vector.load %arg8[%c1_34, %c0_35, %c0_36] : memref<3x1x32xf32, #tpu.memory_space<vmem>>, vector<1x1x32xf32>
    %36 = vector.shape_cast %35 : vector<1x1x32xf32> to vector<1x32xf32>
    %37 = vector.broadcast %36 : vector<1x32xf32> to vector<64x32xf32>
    %38 = arith.addf %34, %37 : vector<64x32xf32>
    %c1_37 = arith.constant 1 : index
    %c0_38 = arith.constant 0 : index
    %c0_39 = arith.constant 0 : index
    %39 = vector.load %arg15[%c1_37, %c0_38, %c0_39] : memref<3x64x32xf32, #tpu.memory_space<vmem>>, vector<1x64x32xf32>
    %40 = vector.shape_cast %39 : vector<1x64x32xf32> to vector<64x32xf32>
    %41 = vector.shape_cast %38 : vector<64x32xf32> to vector<1x64x32xf32>
    tpu.vector_store %arg15[%c1_37, %c0_38, %c0_39], %41 {strides = array<i32>} : memref<3x64x32xf32, #tpu.memory_space<vmem>>, vector<1x64x32xf32>,
    %c2 = arith.constant 2 : index
    %c0_40 = arith.constant 0 : index
    %c0_41 = arith.constant 0 : index
    %42 = vector.load %arg2[%c2, %c0_40, %c0_41] : memref<3x32x32xbf16, #tpu.memory_space<vmem>>, vector<1x32x32xbf16>
    %43 = vector.shape_cast %42 : vector<1x32x32xbf16> to vector<32x32xbf16>
    %cst_42 = arith.constant dense<0.000000e+00> : vector<64x32xf32>
    %44 = tpu.matmul %1, %43, %cst_42 {dimension_numbers = #tpu.dot_dimension_numbers<[1], [0], [0], [1], [0, 0, 1, 1], [], []>} : vector<64x32xbf16>, vector<32x32xbf16>, vector<64x32xf32> -> vector<64x32xf32>
    %c2_43 = arith.constant 2 : index
    %c0_44 = arith.constant 0 : index
    %c0_45 = arith.constant 0 : index
    %45 = vector.load %arg4[%c2_43, %c0_44, %c0_45] : memref<3x1x32xf32, #tpu.memory_space<vmem>>, vector<1x1x32xf32>
    %46 = vector.shape_cast %45 : vector<1x1x32xf32> to vector<1x32xf32>
    %47 = vector.broadcast %46 : vector<1x32xf32> to vector<64x32xf32>
    %48 = arith.addf %44, %47 : vector<64x32xf32>
    %c2_46 = arith.constant 2 : index
    %c0_47 = arith.constant 0 : index
    %c0_48 = arith.constant 0 : index
    %49 = vector.load %arg14[%c2_46, %c0_47, %c0_48] : memref<3x64x32xf32, #tpu.memory_space<vmem>>, vector<1x64x32xf32>
    %50 = vector.shape_cast %49 : vector<1x64x32xf32> to vector<64x32xf32>
    %51 = vector.shape_cast %48 : vector<64x32xf32> to vector<1x64x32xf32>
    tpu.vector_store %arg14[%c2_46, %c0_47, %c0_48], %51 {strides = array<i32>} : memref<3x64x32xf32, #tpu.memory_space<vmem>>, vector<1x64x32xf32>,
    %c2_49 = arith.constant 2 : index
    %c0_50 = arith.constant 0 : index
    %c0_51 = arith.constant 0 : index
    %52 = vector.load %arg6[%c2_49, %c0_50, %c0_51] : memref<3x32x32xbf16, #tpu.memory_space<vmem>>, vector<1x32x32xbf16>
    %53 = vector.shape_cast %52 : vector<1x32x32xbf16> to vector<32x32xbf16>
    %cst_52 = arith.constant dense<0.000000e+00> : vector<64x32xf32>
    %54 = tpu.matmul %1, %53, %cst_52 {dimension_numbers = #tpu.dot_dimension_numbers<[1], [0], [0], [1], [0, 0, 1, 1], [], []>} : vector<64x32xbf16>, vector<32x32xbf16>, vector<64x32xf32> -> vector<64x32xf32>
    %c2_53 = arith.constant 2 : index
    %c0_54 = arith.constant 0 : index
    %c0_55 = arith.constant 0 : index
    %55 = vector.load %arg8[%c2_53, %c0_54, %c0_55] : memref<3x1x32xf32, #tpu.memory_space<vmem>>, vector<1x1x32xf32>
    %56 = vector.shape_cast %55 : vector<1x1x32xf32> to vector<1x32xf32>
    %57 = vector.broadcast %56 : vector<1x32xf32> to vector<64x32xf32>
    %58 = arith.addf %54, %57 : vector<64x32xf32>
    %c2_56 = arith.constant 2 : index
    %c0_57 = arith.constant 0 : index
    %c0_58 = arith.constant 0 : index
    %59 = vector.load %arg15[%c2_56, %c0_57, %c0_58] : memref<3x64x32xf32, #tpu.memory_space<vmem>>, vector<1x64x32xf32>
    %60 = vector.shape_cast %59 : vector<1x64x32xf32> to vector<64x32xf32>
    %61 = vector.shape_cast %58 : vector<64x32xf32> to vector<1x64x32xf32>
    tpu.vector_store %arg15[%c2_56, %c0_57, %c0_58], %61 {strides = array<i32>} : memref<3x64x32xf32, #tpu.memory_space<vmem>>, vector<1x64x32xf32>,
    %cst_59 = arith.constant 0.000000e+00 : f32
    %62 = vector.broadcast %cst_59 : f32 to vector<8x32xf32>
    %c0_i32 = arith.constant 0 : i32
    %c8_i32 = arith.constant 8 : i32
    %63 = arith.muli %c0_i32, %c8_i32 : i32
    %64 = tpu.assume_multiple %63, 8 : i32
    %c7_i32 = arith.constant 7 : i32
    %65 = arith.subi %c7_i32, %c0_i32 : i32
    %c8_i32_60 = arith.constant 8 : i32
    %66 = arith.muli %65, %c8_i32_60 : i32
    %67 = tpu.assume_multiple %66, 8 : i32
    %68 = arith.truncf %62 : vector<8x32xf32> to vector<8x32xbf16>
    %69 = arith.truncf %62 : vector<8x32xf32> to vector<8x32xbf16>
    %c0_61 = arith.constant 0 : index
    %c0_62 = arith.constant 0 : index
    %c0_63 = arith.constant 0 : index
    %70 = vector.load %arg3[%c0_61, %c0_62, %c0_63] : memref<3x32x32xbf16, #tpu.memory_space<vmem>>, vector<1x32x32xbf16>
    %71 = vector.shape_cast %70 : vector<1x32x32xbf16> to vector<32x32xbf16>
    %cst_64 = arith.constant dense<0.000000e+00> : vector<8x32xf32>
    %72 = tpu.matmul %68, %71, %cst_64 {dimension_numbers = #tpu.dot_dimension_numbers<[1], [0], [0], [1], [0, 0, 1, 1], [], []>} : vector<8x32xbf16>, vector<32x32xbf16>, vector<8x32xf32> -> vector<8x32xf32>
    %c0_65 = arith.constant 0 : index
    %c0_66 = arith.constant 0 : index
    %c0_67 = arith.constant 0 : index
    %73 = vector.load %arg5[%c0_65, %c0_66, %c0_67] : memref<3x1x32xf32, #tpu.memory_space<vmem>>, vector<1x1x32xf32>
    %74 = vector.shape_cast %73 : vector<1x1x32xf32> to vector<1x32xf32>
    %75 = vector.broadcast %74 : vector<1x32xf32> to vector<8x32xf32>
    %76 = arith.addf %72, %75 : vector<8x32xf32>
    %c1_68 = arith.constant 1 : index
    %c0_69 = arith.constant 0 : index
    %c0_70 = arith.constant 0 : index
    %77 = vector.load %arg3[%c1_68, %c0_69, %c0_70] : memref<3x32x32xbf16, #tpu.memory_space<vmem>>, vector<1x32x32xbf16>
    %78 = vector.shape_cast %77 : vector<1x32x32xbf16> to vector<32x32xbf16>
    %cst_71 = arith.constant dense<0.000000e+00> : vector<8x32xf32>
    %79 = tpu.matmul %68, %78, %cst_71 {dimension_numbers = #tpu.dot_dimension_numbers<[1], [0], [0], [1], [0, 0, 1, 1], [], []>} : vector<8x32xbf16>, vector<32x32xbf16>, vector<8x32xf32> -> vector<8x32xf32>
    %c1_72 = arith.constant 1 : index
    %c0_73 = arith.constant 0 : index
    %c0_74 = arith.constant 0 : index
    %80 = vector.load %arg5[%c1_72, %c0_73, %c0_74] : memref<3x1x32xf32, #tpu.memory_space<vmem>>, vector<1x1x32xf32>
    %81 = vector.shape_cast %80 : vector<1x1x32xf32> to vector<1x32xf32>
    %82 = vector.broadcast %81 : vector<1x32xf32> to vector<8x32xf32>
    %83 = arith.addf %79, %82 : vector<8x32xf32>
    %c2_75 = arith.constant 2 : index
    %c0_76 = arith.constant 0 : index
    %c0_77 = arith.constant 0 : index
    %84 = vector.load %arg3[%c2_75, %c0_76, %c0_77] : memref<3x32x32xbf16, #tpu.memory_space<vmem>>, vector<1x32x32xbf16>
    %85 = vector.shape_cast %84 : vector<1x32x32xbf16> to vector<32x32xbf16>
    %cst_78 = arith.constant dense<0.000000e+00> : vector<8x32xf32>
    %86 = tpu.matmul %68, %85, %cst_78 {dimension_numbers = #tpu.dot_dimension_numbers<[1], [0], [0], [1], [0, 0, 1, 1], [], []>} : vector<8x32xbf16>, vector<32x32xbf16>, vector<8x32xf32> -> vector<8x32xf32>
    %c2_79 = arith.constant 2 : index
    %c0_80 = arith.constant 0 : index
    %c0_81 = arith.constant 0 : index
    %87 = vector.load %arg5[%c2_79, %c0_80, %c0_81] : memref<3x1x32xf32, #tpu.memory_space<vmem>>, vector<1x1x32xf32>
    %88 = vector.shape_cast %87 : vector<1x1x32xf32> to vector<1x32xf32>
    %89 = vector.broadcast %88 : vector<1x32xf32> to vector<8x32xf32>
    %90 = arith.addf %86, %89 : vector<8x32xf32>
    %c0_82 = arith.constant 0 : index
    %c0_83 = arith.constant 0 : index
    %c0_84 = arith.constant 0 : index
    %91 = vector.load %arg7[%c0_82, %c0_83, %c0_84] : memref<3x32x32xbf16, #tpu.memory_space<vmem>>, vector<1x32x32xbf16>
    %92 = vector.shape_cast %91 : vector<1x32x32xbf16> to vector<32x32xbf16>
    %cst_85 = arith.constant dense<0.000000e+00> : vector<8x32xf32>
    %93 = tpu.matmul %69, %92, %cst_85 {dimension_numbers = #tpu.dot_dimension_numbers<[1], [0], [0], [1], [0, 0, 1, 1], [], []>} : vector<8x32xbf16>, vector<32x32xbf16>, vector<8x32xf32> -> vector<8x32xf32>
    %c0_86 = arith.constant 0 : index
    %c0_87 = arith.constant 0 : index
    %c0_88 = arith.constant 0 : index
    %94 = vector.load %arg9[%c0_86, %c0_87, %c0_88] : memref<3x1x32xf32, #tpu.memory_space<vmem>>, vector<1x1x32xf32>
    %95 = vector.shape_cast %94 : vector<1x1x32xf32> to vector<1x32xf32>
    %96 = vector.broadcast %95 : vector<1x32xf32> to vector<8x32xf32>
    %97 = arith.addf %93, %96 : vector<8x32xf32>
    %c1_89 = arith.constant 1 : index
    %c0_90 = arith.constant 0 : index
    %c0_91 = arith.constant 0 : index
    %98 = vector.load %arg7[%c1_89, %c0_90, %c0_91] : memref<3x32x32xbf16, #tpu.memory_space<vmem>>, vector<1x32x32xbf16>
    %99 = vector.shape_cast %98 : vector<1x32x32xbf16> to vector<32x32xbf16>
    %cst_92 = arith.constant dense<0.000000e+00> : vector<8x32xf32>
    %100 = tpu.matmul %69, %99, %cst_92 {dimension_numbers = #tpu.dot_dimension_numbers<[1], [0], [0], [1], [0, 0, 1, 1], [], []>} : vector<8x32xbf16>, vector<32x32xbf16>, vector<8x32xf32> -> vector<8x32xf32>
    %c1_93 = arith.constant 1 : index
    %c0_94 = arith.constant 0 : index
    %c0_95 = arith.constant 0 : index
    %101 = vector.load %arg9[%c1_93, %c0_94, %c0_95] : memref<3x1x32xf32, #tpu.memory_space<vmem>>, vector<1x1x32xf32>
    %102 = vector.shape_cast %101 : vector<1x1x32xf32> to vector<1x32xf32>
    %103 = vector.broadcast %102 : vector<1x32xf32> to vector<8x32xf32>
    %104 = arith.addf %100, %103 : vector<8x32xf32>
    %c2_96 = arith.constant 2 : index
    %c0_97 = arith.constant 0 : index
    %c0_98 = arith.constant 0 : index
    %105 = vector.load %arg7[%c2_96, %c0_97, %c0_98] : memref<3x32x32xbf16, #tpu.memory_space<vmem>>, vector<1x32x32xbf16>
    %106 = vector.shape_cast %105 : vector<1x32x32xbf16> to vector<32x32xbf16>
    %cst_99 = arith.constant dense<0.000000e+00> : vector<8x32xf32>
    %107 = tpu.matmul %69, %106, %cst_99 {dimension_numbers = #tpu.dot_dimension_numbers<[1], [0], [0], [1], [0, 0, 1, 1], [], []>} : vector<8x32xbf16>, vector<32x32xbf16>, vector<8x32xf32> -> vector<8x32xf32>
    %c2_100 = arith.constant 2 : index
    %c0_101 = arith.constant 0 : index
    %c0_102 = arith.constant 0 : index
    %108 = vector.load %arg9[%c2_100, %c0_101, %c0_102] : memref<3x1x32xf32, #tpu.memory_space<vmem>>, vector<1x1x32xf32>
    %109 = vector.shape_cast %108 : vector<1x1x32xf32> to vector<1x32xf32>
    %110 = vector.broadcast %109 : vector<1x32xf32> to vector<8x32xf32>
    %111 = arith.addf %107, %110 : vector<8x32xf32>
    %c0_103 = arith.constant 0 : index
    %112 = arith.index_cast %64 : i32 to index
    %c0_104 = arith.constant 0 : index
    %113 = vector.load %arg14[%c0_103, %112, %c0_104] : memref<3x64x32xf32, #tpu.memory_space<vmem>>, vector<1x8x32xf32>
    %114 = vector.shape_cast %113 : vector<1x8x32xf32> to vector<8x32xf32>
    %c1_105 = arith.constant 1 : index
    %115 = arith.index_cast %64 : i32 to index
    %c0_106 = arith.constant 0 : index
    %116 = vector.load %arg14[%c1_105, %115, %c0_106] : memref<3x64x32xf32, #tpu.memory_space<vmem>>, vector<1x8x32xf32>
    %117 = vector.shape_cast %116 : vector<1x8x32xf32> to vector<8x32xf32>
    %c2_107 = arith.constant 2 : index
    %118 = arith.index_cast %64 : i32 to index
    %c0_108 = arith.constant 0 : index
    %119 = vector.load %arg14[%c2_107, %118, %c0_108] : memref<3x64x32xf32, #tpu.memory_space<vmem>>, vector<1x8x32xf32>
    %120 = vector.shape_cast %119 : vector<1x8x32xf32> to vector<8x32xf32>
    %c0_109 = arith.constant 0 : index
    %121 = arith.index_cast %67 : i32 to index
    %c0_110 = arith.constant 0 : index
    %122 = vector.load %arg15[%c0_109, %121, %c0_110] : memref<3x64x32xf32, #tpu.memory_space<vmem>>, vector<1x8x32xf32>
    %123 = vector.shape_cast %122 : vector<1x8x32xf32> to vector<8x32xf32>
    %c1_111 = arith.constant 1 : index
    %124 = arith.index_cast %67 : i32 to index
    %c0_112 = arith.constant 0 : index
    %125 = vector.load %arg15[%c1_111, %124, %c0_112] : memref<3x64x32xf32, #tpu.memory_space<vmem>>, vector<1x8x32xf32>
    %126 = vector.shape_cast %125 : vector<1x8x32xf32> to vector<8x32xf32>
    %c2_113 = arith.constant 2 : index
    %127 = arith.index_cast %67 : i32 to index
    %c0_114 = arith.constant 0 : index
    %128 = vector.load %arg15[%c2_113, %127, %c0_114] : memref<3x64x32xf32, #tpu.memory_space<vmem>>, vector<1x8x32xf32>
    %129 = vector.shape_cast %128 : vector<1x8x32xf32> to vector<8x32xf32>
    %130 = arith.addf %114, %76 : vector<8x32xf32>
    %131 = arith.negf %130 : vector<8x32xf32>
    %132 = math.exp %131 : vector<8x32xf32>
    %cst_115 = arith.constant 1.000000e+00 : f32
    %133 = vector.broadcast %cst_115 : f32 to vector<8x32xf32>
    %134 = arith.addf %133, %132 : vector<8x32xf32>
    %135 = arith.divf %133, %134 : vector<8x32xf32>
    %136 = arith.addf %117, %83 : vector<8x32xf32>
    %137 = arith.negf %136 : vector<8x32xf32>
    %138 = math.exp %137 : vector<8x32xf32>
    %cst_116 = arith.constant 1.000000e+00 : f32
    %139 = vector.broadcast %cst_116 : f32 to vector<8x32xf32>
    %140 = arith.addf %139, %138 : vector<8x32xf32>
    %141 = arith.divf %139, %140 : vector<8x32xf32>
    %142 = arith.mulf %135, %90 : vector<8x32xf32>
    %143 = arith.addf %120, %142 : vector<8x32xf32>
    %144 = math.tanh %143 : vector<8x32xf32>
    %cst_117 = arith.constant 1.000000e+00 : f32
    %145 = vector.broadcast %cst_117 : f32 to vector<8x32xf32>
    %146 = arith.subf %145, %141 : vector<8x32xf32>
    %147 = arith.mulf %146, %144 : vector<8x32xf32>
    %148 = arith.mulf %141, %62 : vector<8x32xf32>
    %149 = arith.addf %147, %148 : vector<8x32xf32>
    %150 = arith.addf %123, %97 : vector<8x32xf32>
    %151 = arith.negf %150 : vector<8x32xf32>
    %152 = math.exp %151 : vector<8x32xf32>
    %cst_118 = arith.constant 1.000000e+00 : f32
    %153 = vector.broadcast %cst_118 : f32 to vector<8x32xf32>
    %154 = arith.addf %153, %152 : vector<8x32xf32>
    %155 = arith.divf %153, %154 : vector<8x32xf32>
    %156 = arith.addf %126, %104 : vector<8x32xf32>
    %157 = arith.negf %156 : vector<8x32xf32>
    %158 = math.exp %157 : vector<8x32xf32>
    %cst_119 = arith.constant 1.000000e+00 : f32
    %159 = vector.broadcast %cst_119 : f32 to vector<8x32xf32>
    %160 = arith.addf %159, %158 : vector<8x32xf32>
    %161 = arith.divf %159, %160 : vector<8x32xf32>
    %162 = arith.mulf %155, %111 : vector<8x32xf32>
    %163 = arith.addf %129, %162 : vector<8x32xf32>
    %164 = math.tanh %163 : vector<8x32xf32>
    %cst_120 = arith.constant 1.000000e+00 : f32
    %165 = vector.broadcast %cst_120 : f32 to vector<8x32xf32>
    %166 = arith.subf %165, %161 : vector<8x32xf32>
    %167 = arith.mulf %166, %164 : vector<8x32xf32>
    %168 = arith.mulf %161, %62 : vector<8x32xf32>
    %169 = arith.addf %167, %168 : vector<8x32xf32>
    %c0_121 = arith.constant 0 : index
    %170 = arith.index_cast %64 : i32 to index
    %c0_122 = arith.constant 0 : index
    %171 = vector.load %arg12[%c0_121, %170, %c0_122] : memref<1x64x64xf32, #tpu.memory_space<vmem>>, vector<1x8x32xf32>
    %172 = vector.shape_cast %171 : vector<1x8x32xf32> to vector<8x32xf32>
    %173 = vector.shape_cast %149 : vector<8x32xf32> to vector<1x8x32xf32>
    tpu.vector_store %arg12[%c0_121, %170, %c0_122], %173 {strides = array<i32>} : memref<1x64x64xf32, #tpu.memory_space<vmem>>, vector<1x8x32xf32>,
    %c0_123 = arith.constant 0 : index
    %174 = arith.index_cast %67 : i32 to index
    %c32 = arith.constant 32 : index
    %175 = vector.load %arg12[%c0_123, %174, %c32] : memref<1x64x64xf32, #tpu.memory_space<vmem>>, vector<1x8x32xf32>
    %176 = vector.shape_cast %175 : vector<1x8x32xf32> to vector<8x32xf32>
    %177 = vector.shape_cast %169 : vector<8x32xf32> to vector<1x8x32xf32>
    tpu.vector_store %arg12[%c0_123, %174, %c32], %177 {strides = array<i32>} : memref<1x64x64xf32, #tpu.memory_space<vmem>>, vector<1x8x32xf32>,
    %c1_i32 = arith.constant 1 : i32
    %c8_i32_124 = arith.constant 8 : i32
    %178 = arith.muli %c1_i32, %c8_i32_124 : i32
    %179 = tpu.assume_multiple %178, 8 : i32
    %c7_i32_125 = arith.constant 7 : i32
    %180 = arith.subi %c7_i32_125, %c1_i32 : i32
    %c8_i32_126 = arith.constant 8 : i32
    %181 = arith.muli %180, %c8_i32_126 : i32
    %182 = tpu.assume_multiple %181, 8 : i32
    %183 = arith.truncf %149 : vector<8x32xf32> to vector<8x32xbf16>
    %184 = arith.truncf %169 : vector<8x32xf32> to vector<8x32xbf16>
    %c0_127 = arith.constant 0 : index
    %c0_128 = arith.constant 0 : index
    %c0_129 = arith.constant 0 : index
    %185 = vector.load %arg3[%c0_127, %c0_128, %c0_129] : memref<3x32x32xbf16, #tpu.memory_space<vmem>>, vector<1x32x32xbf16>
    %186 = vector.shape_cast %185 : vector<1x32x32xbf16> to vector<32x32xbf16>
    %cst_130 = arith.constant dense<0.000000e+00> : vector<8x32xf32>
    %187 = tpu.matmul %183, %186, %cst_130 {dimension_numbers = #tpu.dot_dimension_numbers<[1], [0], [0], [1], [0, 0, 1, 1], [], []>} : vector<8x32xbf16>, vector<32x32xbf16>, vector<8x32xf32> -> vector<8x32xf32>
    %c0_131 = arith.constant 0 : index
    %c0_132 = arith.constant 0 : index
    %c0_133 = arith.constant 0 : index
    %188 = vector.load %arg5[%c0_131, %c0_132, %c0_133] : memref<3x1x32xf32, #tpu.memory_space<vmem>>, vector<1x1x32xf32>
    %189 = vector.shape_cast %188 : vector<1x1x32xf32> to vector<1x32xf32>
    %190 = vector.broadcast %189 : vector<1x32xf32> to vector<8x32xf32>
    %191 = arith.addf %187, %190 : vector<8x32xf32>
    %c1_134 = arith.constant 1 : index
    %c0_135 = arith.constant 0 : index
    %c0_136 = arith.constant 0 : index
    %192 = vector.load %arg3[%c1_134, %c0_135, %c0_136] : memref<3x32x32xbf16, #tpu.memory_space<vmem>>, vector<1x32x32xbf16>
    %193 = vector.shape_cast %192 : vector<1x32x32xbf16> to vector<32x32xbf16>
    %cst_137 = arith.constant dense<0.000000e+00> : vector<8x32xf32>
    %194 = tpu.matmul %183, %193, %cst_137 {dimension_numbers = #tpu.dot_dimension_numbers<[1], [0], [0], [1], [0, 0, 1, 1], [], []>} : vector<8x32xbf16>, vector<32x32xbf16>, vector<8x32xf32> -> vector<8x32xf32>
    %c1_138 = arith.constant 1 : index
    %c0_139 = arith.constant 0 : index
    %c0_140 = arith.constant 0 : index
    %195 = vector.load %arg5[%c1_138, %c0_139, %c0_140] : memref<3x1x32xf32, #tpu.memory_space<vmem>>, vector<1x1x32xf32>
    %196 = vector.shape_cast %195 : vector<1x1x32xf32> to vector<1x32xf32>
    %197 = vector.broadcast %196 : vector<1x32xf32> to vector<8x32xf32>
    %198 = arith.addf %194, %197 : vector<8x32xf32>
    %c2_141 = arith.constant 2 : index
    %c0_142 = arith.constant 0 : index
    %c0_143 = arith.constant 0 : index
    %199 = vector.load %arg3[%c2_141, %c0_142, %c0_143] : memref<3x32x32xbf16, #tpu.memory_space<vmem>>, vector<1x32x32xbf16>
    %200 = vector.shape_cast %199 : vector<1x32x32xbf16> to vector<32x32xbf16>
    %cst_144 = arith.constant dense<0.000000e+00> : vector<8x32xf32>
    %201 = tpu.matmul %183, %200, %cst_144 {dimension_numbers = #tpu.dot_dimension_numbers<[1], [0], [0], [1], [0, 0, 1, 1], [], []>} : vector<8x32xbf16>, vector<32x32xbf16>, vector<8x32xf32> -> vector<8x32xf32>
    %c2_145 = arith.constant 2 : index
    %c0_146 = arith.constant 0 : index
    %c0_147 = arith.constant 0 : index
    %202 = vector.load %arg5[%c2_145, %c0_146, %c0_147] : memref<3x1x32xf32, #tpu.memory_space<vmem>>, vector<1x1x32xf32>
    %203 = vector.shape_cast %202 : vector<1x1x32xf32> to vector<1x32xf32>
    %204 = vector.broadcast %203 : vector<1x32xf32> to vector<8x32xf32>
    %205 = arith.addf %201, %204 : vector<8x32xf32>
    %c0_148 = arith.constant 0 : index
    %c0_149 = arith.constant 0 : index
    %c0_150 = arith.constant 0 : index
    %206 = vector.load %arg7[%c0_148, %c0_149, %c0_150] : memref<3x32x32xbf16, #tpu.memory_space<vmem>>, vector<1x32x32xbf16>
    %207 = vector.shape_cast %206 : vector<1x32x32xbf16> to vector<32x32xbf16>
    %cst_151 = arith.constant dense<0.000000e+00> : vector<8x32xf32>
    %208 = tpu.matmul %184, %207, %cst_151 {dimension_numbers = #tpu.dot_dimension_numbers<[1], [0], [0], [1], [0, 0, 1, 1], [], []>} : vector<8x32xbf16>, vector<32x32xbf16>, vector<8x32xf32> -> vector<8x32xf32>
    %c0_152 = arith.constant 0 : index
    %c0_153 = arith.constant 0 : index
    %c0_154 = arith.constant 0 : index
    %209 = vector.load %arg9[%c0_152, %c0_153, %c0_154] : memref<3x1x32xf32, #tpu.memory_space<vmem>>, vector<1x1x32xf32>
    %210 = vector.shape_cast %209 : vector<1x1x32xf32> to vector<1x32xf32>
    %211 = vector.broadcast %210 : vector<1x32xf32> to vector<8x32xf32>
    %212 = arith.addf %208, %211 : vector<8x32xf32>
    %c1_155 = arith.constant 1 : index
    %c0_156 = arith.constant 0 : index
    %c0_157 = arith.constant 0 : index
    %213 = vector.load %arg7[%c1_155, %c0_156, %c0_157] : memref<3x32x32xbf16, #tpu.memory_space<vmem>>, vector<1x32x32xbf16>
    %214 = vector.shape_cast %213 : vector<1x32x32xbf16> to vector<32x32xbf16>
    %cst_158 = arith.constant dense<0.000000e+00> : vector<8x32xf32>
    %215 = tpu.matmul %184, %214, %cst_158 {dimension_numbers = #tpu.dot_dimension_numbers<[1], [0], [0], [1], [0, 0, 1, 1], [], []>} : vector<8x32xbf16>, vector<32x32xbf16>, vector<8x32xf32> -> vector<8x32xf32>
    %c1_159 = arith.constant 1 : index
    %c0_160 = arith.constant 0 : index
    %c0_161 = arith.constant 0 : index
    %216 = vector.load %arg9[%c1_159, %c0_160, %c0_161] : memref<3x1x32xf32, #tpu.memory_space<vmem>>, vector<1x1x32xf32>
    %217 = vector.shape_cast %216 : vector<1x1x32xf32> to vector<1x32xf32>
    %218 = vector.broadcast %217 : vector<1x32xf32> to vector<8x32xf32>
    %219 = arith.addf %215, %218 : vector<8x32xf32>
    %c2_162 = arith.constant 2 : index
    %c0_163 = arith.constant 0 : index
    %c0_164 = arith.constant 0 : index
    %220 = vector.load %arg7[%c2_162, %c0_163, %c0_164] : memref<3x32x32xbf16, #tpu.memory_space<vmem>>, vector<1x32x32xbf16>
    %221 = vector.shape_cast %220 : vector<1x32x32xbf16> to vector<32x32xbf16>
    %cst_165 = arith.constant dense<0.000000e+00> : vector<8x32xf32>
    %222 = tpu.matmul %184, %221, %cst_165 {dimension_numbers = #tpu.dot_dimension_numbers<[1], [0], [0], [1], [0, 0, 1, 1], [], []>} : vector<8x32xbf16>, vector<32x32xbf16>, vector<8x32xf32> -> vector<8x32xf32>
    %c2_166 = arith.constant 2 : index
    %c0_167 = arith.constant 0 : index
    %c0_168 = arith.constant 0 : index
    %223 = vector.load %arg9[%c2_166, %c0_167, %c0_168] : memref<3x1x32xf32, #tpu.memory_space<vmem>>, vector<1x1x32xf32>
    %224 = vector.shape_cast %223 : vector<1x1x32xf32> to vector<1x32xf32>
    %225 = vector.broadcast %224 : vector<1x32xf32> to vector<8x32xf32>
    %226 = arith.addf %222, %225 : vector<8x32xf32>
    %c0_169 = arith.constant 0 : index
    %227 = arith.index_cast %179 : i32 to index
    %c0_170 = arith.constant 0 : index
    %228 = vector.load %arg14[%c0_169, %227, %c0_170] : memref<3x64x32xf32, #tpu.memory_space<vmem>>, vector<1x8x32xf32>
    %229 = vector.shape_cast %228 : vector<1x8x32xf32> to vector<8x32xf32>
    %c1_171 = arith.constant 1 : index
    %230 = arith.index_cast %179 : i32 to index
    %c0_172 = arith.constant 0 : index
    %231 = vector.load %arg14[%c1_171, %230, %c0_172] : memref<3x64x32xf32, #tpu.memory_space<vmem>>, vector<1x8x32xf32>
    %232 = vector.shape_cast %231 : vector<1x8x32xf32> to vector<8x32xf32>
    %c2_173 = arith.constant 2 : index
    %233 = arith.index_cast %179 : i32 to index
    %c0_174 = arith.constant 0 : index
    %234 = vector.load %arg14[%c2_173, %233, %c0_174] : memref<3x64x32xf32, #tpu.memory_space<vmem>>, vector<1x8x32xf32>
    %235 = vector.shape_cast %234 : vector<1x8x32xf32> to vector<8x32xf32>
    %c0_175 = arith.constant 0 : index
    %236 = arith.index_cast %182 : i32 to index
    %c0_176 = arith.constant 0 : index
    %237 = vector.load %arg15[%c0_175, %236, %c0_176] : memref<3x64x32xf32, #tpu.memory_space<vmem>>, vector<1x8x32xf32>
    %238 = vector.shape_cast %237 : vector<1x8x32xf32> to vector<8x32xf32>
    %c1_177 = arith.constant 1 : index
    %239 = arith.index_cast %182 : i32 to index
    %c0_178 = arith.constant 0 : index
    %240 = vector.load %arg15[%c1_177, %239, %c0_178] : memref<3x64x32xf32, #tpu.memory_space<vmem>>, vector<1x8x32xf32>
    %241 = vector.shape_cast %240 : vector<1x8x32xf32> to vector<8x32xf32>
    %c2_179 = arith.constant 2 : index
    %242 = arith.index_cast %182 : i32 to index
    %c0_180 = arith.constant 0 : index
    %243 = vector.load %arg15[%c2_179, %242, %c0_180] : memref<3x64x32xf32, #tpu.memory_space<vmem>>, vector<1x8x32xf32>
    %244 = vector.shape_cast %243 : vector<1x8x32xf32> to vector<8x32xf32>
    %245 = arith.addf %229, %191 : vector<8x32xf32>
    %246 = arith.negf %245 : vector<8x32xf32>
    %247 = math.exp %246 : vector<8x32xf32>
    %cst_181 = arith.constant 1.000000e+00 : f32
    %248 = vector.broadcast %cst_181 : f32 to vector<8x32xf32>
    %249 = arith.addf %248, %247 : vector<8x32xf32>
    %250 = arith.divf %248, %249 : vector<8x32xf32>
    %251 = arith.addf %232, %198 : vector<8x32xf32>
    %252 = arith.negf %251 : vector<8x32xf32>
    %253 = math.exp %252 : vector<8x32xf32>
    %cst_182 = arith.constant 1.000000e+00 : f32
    %254 = vector.broadcast %cst_182 : f32 to vector<8x32xf32>
    %255 = arith.addf %254, %253 : vector<8x32xf32>
    %256 = arith.divf %254, %255 : vector<8x32xf32>
    %257 = arith.mulf %250, %205 : vector<8x32xf32>
    %258 = arith.addf %235, %257 : vector<8x32xf32>
    %259 = math.tanh %258 : vector<8x32xf32>
    %cst_183 = arith.constant 1.000000e+00 : f32
    %260 = vector.broadcast %cst_183 : f32 to vector<8x32xf32>
    %261 = arith.subf %260, %256 : vector<8x32xf32>
    %262 = arith.mulf %261, %259 : vector<8x32xf32>
    %263 = arith.mulf %256, %149 : vector<8x32xf32>
    %264 = arith.addf %262, %263 : vector<8x32xf32>
    %265 = arith.addf %238, %212 : vector<8x32xf32>
    %266 = arith.negf %265 : vector<8x32xf32>
    %267 = math.exp %266 : vector<8x32xf32>
    %cst_184 = arith.constant 1.000000e+00 : f32
    %268 = vector.broadcast %cst_184 : f32 to vector<8x32xf32>
    %269 = arith.addf %268, %267 : vector<8x32xf32>
    %270 = arith.divf %268, %269 : vector<8x32xf32>
    %271 = arith.addf %241, %219 : vector<8x32xf32>
    %272 = arith.negf %271 : vector<8x32xf32>
    %273 = math.exp %272 : vector<8x32xf32>
    %cst_185 = arith.constant 1.000000e+00 : f32
    %274 = vector.broadcast %cst_185 : f32 to vector<8x32xf32>
    %275 = arith.addf %274, %273 : vector<8x32xf32>
    %276 = arith.divf %274, %275 : vector<8x32xf32>
    %277 = arith.mulf %270, %226 : vector<8x32xf32>
    %278 = arith.addf %244, %277 : vector<8x32xf32>
    %279 = math.tanh %278 : vector<8x32xf32>
    %cst_186 = arith.constant 1.000000e+00 : f32
    %280 = vector.broadcast %cst_186 : f32 to vector<8x32xf32>
    %281 = arith.subf %280, %276 : vector<8x32xf32>
    %282 = arith.mulf %281, %279 : vector<8x32xf32>
    %283 = arith.mulf %276, %169 : vector<8x32xf32>
    %284 = arith.addf %282, %283 : vector<8x32xf32>
    %c0_187 = arith.constant 0 : index
    %285 = arith.index_cast %179 : i32 to index
    %c0_188 = arith.constant 0 : index
    %286 = vector.load %arg12[%c0_187, %285, %c0_188] : memref<1x64x64xf32, #tpu.memory_space<vmem>>, vector<1x8x32xf32>
    %287 = vector.shape_cast %286 : vector<1x8x32xf32> to vector<8x32xf32>
    %288 = vector.shape_cast %264 : vector<8x32xf32> to vector<1x8x32xf32>
    tpu.vector_store %arg12[%c0_187, %285, %c0_188], %288 {strides = array<i32>} : memref<1x64x64xf32, #tpu.memory_space<vmem>>, vector<1x8x32xf32>,
    %c0_189 = arith.constant 0 : index
    %289 = arith.index_cast %182 : i32 to index
    %c32_190 = arith.constant 32 : index
    %290 = vector.load %arg12[%c0_189, %289, %c32_190] : memref<1x64x64xf32, #tpu.memory_space<vmem>>, vector<1x8x32xf32>
    %291 = vector.shape_cast %290 : vector<1x8x32xf32> to vector<8x32xf32>
    %292 = vector.shape_cast %284 : vector<8x32xf32> to vector<1x8x32xf32>
    tpu.vector_store %arg12[%c0_189, %289, %c32_190], %292 {strides = array<i32>} : memref<1x64x64xf32, #tpu.memory_space<vmem>>, vector<1x8x32xf32>,
    %c2_i32 = arith.constant 2 : i32
    %c8_i32_191 = arith.constant 8 : i32
    %293 = arith.muli %c2_i32, %c8_i32_191 : i32
    %294 = tpu.assume_multiple %293, 8 : i32
    %c7_i32_192 = arith.constant 7 : i32
    %295 = arith.subi %c7_i32_192, %c2_i32 : i32
    %c8_i32_193 = arith.constant 8 : i32
    %296 = arith.muli %295, %c8_i32_193 : i32
    %297 = tpu.assume_multiple %296, 8 : i32
    %298 = arith.truncf %264 : vector<8x32xf32> to vector<8x32xbf16>
    %299 = arith.truncf %284 : vector<8x32xf32> to vector<8x32xbf16>
    %c0_194 = arith.constant 0 : index
    %c0_195 = arith.constant 0 : index
    %c0_196 = arith.constant 0 : index
    %300 = vector.load %arg3[%c0_194, %c0_195, %c0_196] : memref<3x32x32xbf16, #tpu.memory_space<vmem>>, vector<1x32x32xbf16>
    %301 = vector.shape_cast %300 : vector<1x32x32xbf16> to vector<32x32xbf16>
    %cst_197 = arith.constant dense<0.000000e+00> : vector<8x32xf32>
    %302 = tpu.matmul %298, %301, %cst_197 {dimension_numbers = #tpu.dot_dimension_numbers<[1], [0], [0], [1], [0, 0, 1, 1], [], []>} : vector<8x32xbf16>, vector<32x32xbf16>, vector<8x32xf32> -> vector<8x32xf32>
    %c0_198 = arith.constant 0 : index
    %c0_199 = arith.constant 0 : index
    %c0_200 = arith.constant 0 : index
    %303 = vector.load %arg5[%c0_198, %c0_199, %c0_200] : memref<3x1x32xf32, #tpu.memory_space<vmem>>, vector<1x1x32xf32>
    %304 = vector.shape_cast %303 : vector<1x1x32xf32> to vector<1x32xf32>
    %305 = vector.broadcast %304 : vector<1x32xf32> to vector<8x32xf32>
    %306 = arith.addf %302, %305 : vector<8x32xf32>
    %c1_201 = arith.constant 1 : index
    %c0_202 = arith.constant 0 : index
    %c0_203 = arith.constant 0 : index
    %307 = vector.load %arg3[%c1_201, %c0_202, %c0_203] : memref<3x32x32xbf16, #tpu.memory_space<vmem>>, vector<1x32x32xbf16>
    %308 = vector.shape_cast %307 : vector<1x32x32xbf16> to vector<32x32xbf16>
    %cst_204 = arith.constant dense<0.000000e+00> : vector<8x32xf32>
    %309 = tpu.matmul %298, %308, %cst_204 {dimension_numbers = #tpu.dot_dimension_numbers<[1], [0], [0], [1], [0, 0, 1, 1], [], []>} : vector<8x32xbf16>, vector<32x32xbf16>, vector<8x32xf32> -> vector<8x32xf32>
    %c1_205 = arith.constant 1 : index
    %c0_206 = arith.constant 0 : index
    %c0_207 = arith.constant 0 : index
    %310 = vector.load %arg5[%c1_205, %c0_206, %c0_207] : memref<3x1x32xf32, #tpu.memory_space<vmem>>, vector<1x1x32xf32>
    %311 = vector.shape_cast %310 : vector<1x1x32xf32> to vector<1x32xf32>
    %312 = vector.broadcast %311 : vector<1x32xf32> to vector<8x32xf32>
    %313 = arith.addf %309, %312 : vector<8x32xf32>
    %c2_208 = arith.constant 2 : index
    %c0_209 = arith.constant 0 : index
    %c0_210 = arith.constant 0 : index
    %314 = vector.load %arg3[%c2_208, %c0_209, %c0_210] : memref<3x32x32xbf16, #tpu.memory_space<vmem>>, vector<1x32x32xbf16>
    %315 = vector.shape_cast %314 : vector<1x32x32xbf16> to vector<32x32xbf16>
    %cst_211 = arith.constant dense<0.000000e+00> : vector<8x32xf32>
    %316 = tpu.matmul %298, %315, %cst_211 {dimension_numbers = #tpu.dot_dimension_numbers<[1], [0], [0], [1], [0, 0, 1, 1], [], []>} : vector<8x32xbf16>, vector<32x32xbf16>, vector<8x32xf32> -> vector<8x32xf32>
    %c2_212 = arith.constant 2 : index
    %c0_213 = arith.constant 0 : index
    %c0_214 = arith.constant 0 : index
    %317 = vector.load %arg5[%c2_212, %c0_213, %c0_214] : memref<3x1x32xf32, #tpu.memory_space<vmem>>, vector<1x1x32xf32>
    %318 = vector.shape_cast %317 : vector<1x1x32xf32> to vector<1x32xf32>
    %319 = vector.broadcast %318 : vector<1x32xf32> to vector<8x32xf32>
    %320 = arith.addf %316, %319 : vector<8x32xf32>
    %c0_215 = arith.constant 0 : index
    %c0_216 = arith.constant 0 : index
    %c0_217 = arith.constant 0 : index
    %321 = vector.load %arg7[%c0_215, %c0_216, %c0_217] : memref<3x32x32xbf16, #tpu.memory_space<vmem>>, vector<1x32x32xbf16>
    %322 = vector.shape_cast %321 : vector<1x32x32xbf16> to vector<32x32xbf16>
    %cst_218 = arith.constant dense<0.000000e+00> : vector<8x32xf32>
    %323 = tpu.matmul %299, %322, %cst_218 {dimension_numbers = #tpu.dot_dimension_numbers<[1], [0], [0], [1], [0, 0, 1, 1], [], []>} : vector<8x32xbf16>, vector<32x32xbf16>, vector<8x32xf32> -> vector<8x32xf32>
    %c0_219 = arith.constant 0 : index
    %c0_220 = arith.constant 0 : index
    %c0_221 = arith.constant 0 : index
    %324 = vector.load %arg9[%c0_219, %c0_220, %c0_221] : memref<3x1x32xf32, #tpu.memory_space<vmem>>, vector<1x1x32xf32>
    %325 = vector.shape_cast %324 : vector<1x1x32xf32> to vector<1x32xf32>
    %326 = vector.broadcast %325 : vector<1x32xf32> to vector<8x32xf32>
    %327 = arith.addf %323, %326 : vector<8x32xf32>
    %c1_222 = arith.constant 1 : index
    %c0_223 = arith.constant 0 : index
    %c0_224 = arith.constant 0 : index
    %328 = vector.load %arg7[%c1_222, %c0_223, %c0_224] : memref<3x32x32xbf16, #tpu.memory_space<vmem>>, vector<1x32x32xbf16>
    %329 = vector.shape_cast %328 : vector<1x32x32xbf16> to vector<32x32xbf16>
    %cst_225 = arith.constant dense<0.000000e+00> : vector<8x32xf32>
    %330 = tpu.matmul %299, %329, %cst_225 {dimension_numbers = #tpu.dot_dimension_numbers<[1], [0], [0], [1], [0, 0, 1, 1], [], []>} : vector<8x32xbf16>, vector<32x32xbf16>, vector<8x32xf32> -> vector<8x32xf32>
    %c1_226 = arith.constant 1 : index
    %c0_227 = arith.constant 0 : index
    %c0_228 = arith.constant 0 : index
    %331 = vector.load %arg9[%c1_226, %c0_227, %c0_228] : memref<3x1x32xf32, #tpu.memory_space<vmem>>, vector<1x1x32xf32>
    %332 = vector.shape_cast %331 : vector<1x1x32xf32> to vector<1x32xf32>
    %333 = vector.broadcast %332 : vector<1x32xf32> to vector<8x32xf32>
    %334 = arith.addf %330, %333 : vector<8x32xf32>
    %c2_229 = arith.constant 2 : index
    %c0_230 = arith.constant 0 : index
    %c0_231 = arith.constant 0 : index
    %335 = vector.load %arg7[%c2_229, %c0_230, %c0_231] : memref<3x32x32xbf16, #tpu.memory_space<vmem>>, vector<1x32x32xbf16>
    %336 = vector.shape_cast %335 : vector<1x32x32xbf16> to vector<32x32xbf16>
    %cst_232 = arith.constant dense<0.000000e+00> : vector<8x32xf32>
    %337 = tpu.matmul %299, %336, %cst_232 {dimension_numbers = #tpu.dot_dimension_numbers<[1], [0], [0], [1], [0, 0, 1, 1], [], []>} : vector<8x32xbf16>, vector<32x32xbf16>, vector<8x32xf32> -> vector<8x32xf32>
    %c2_233 = arith.constant 2 : index
    %c0_234 = arith.constant 0 : index
    %c0_235 = arith.constant 0 : index
    %338 = vector.load %arg9[%c2_233, %c0_234, %c0_235] : memref<3x1x32xf32, #tpu.memory_space<vmem>>, vector<1x1x32xf32>
    %339 = vector.shape_cast %338 : vector<1x1x32xf32> to vector<1x32xf32>
    %340 = vector.broadcast %339 : vector<1x32xf32> to vector<8x32xf32>
    %341 = arith.addf %337, %340 : vector<8x32xf32>
    %c0_236 = arith.constant 0 : index
    %342 = arith.index_cast %294 : i32 to index
    %c0_237 = arith.constant 0 : index
    %343 = vector.load %arg14[%c0_236, %342, %c0_237] : memref<3x64x32xf32, #tpu.memory_space<vmem>>, vector<1x8x32xf32>
    %344 = vector.shape_cast %343 : vector<1x8x32xf32> to vector<8x32xf32>
    %c1_238 = arith.constant 1 : index
    %345 = arith.index_cast %294 : i32 to index
    %c0_239 = arith.constant 0 : index
    %346 = vector.load %arg14[%c1_238, %345, %c0_239] : memref<3x64x32xf32, #tpu.memory_space<vmem>>, vector<1x8x32xf32>
    %347 = vector.shape_cast %346 : vector<1x8x32xf32> to vector<8x32xf32>
    %c2_240 = arith.constant 2 : index
    %348 = arith.index_cast %294 : i32 to index
    %c0_241 = arith.constant 0 : index
    %349 = vector.load %arg14[%c2_240, %348, %c0_241] : memref<3x64x32xf32, #tpu.memory_space<vmem>>, vector<1x8x32xf32>
    %350 = vector.shape_cast %349 : vector<1x8x32xf32> to vector<8x32xf32>
    %c0_242 = arith.constant 0 : index
    %351 = arith.index_cast %297 : i32 to index
    %c0_243 = arith.constant 0 : index
    %352 = vector.load %arg15[%c0_242, %351, %c0_243] : memref<3x64x32xf32, #tpu.memory_space<vmem>>, vector<1x8x32xf32>
    %353 = vector.shape_cast %352 : vector<1x8x32xf32> to vector<8x32xf32>
    %c1_244 = arith.constant 1 : index
    %354 = arith.index_cast %297 : i32 to index
    %c0_245 = arith.constant 0 : index
    %355 = vector.load %arg15[%c1_244, %354, %c0_245] : memref<3x64x32xf32, #tpu.memory_space<vmem>>, vector<1x8x32xf32>
    %356 = vector.shape_cast %355 : vector<1x8x32xf32> to vector<8x32xf32>
    %c2_246 = arith.constant 2 : index
    %357 = arith.index_cast %297 : i32 to index
    %c0_247 = arith.constant 0 : index
    %358 = vector.load %arg15[%c2_246, %357, %c0_247] : memref<3x64x32xf32, #tpu.memory_space<vmem>>, vector<1x8x32xf32>
    %359 = vector.shape_cast %358 : vector<1x8x32xf32> to vector<8x32xf32>
    %360 = arith.addf %344, %306 : vector<8x32xf32>
    %361 = arith.negf %360 : vector<8x32xf32>
    %362 = math.exp %361 : vector<8x32xf32>
    %cst_248 = arith.constant 1.000000e+00 : f32
    %363 = vector.broadcast %cst_248 : f32 to vector<8x32xf32>
    %364 = arith.addf %363, %362 : vector<8x32xf32>
    %365 = arith.divf %363, %364 : vector<8x32xf32>
    %366 = arith.addf %347, %313 : vector<8x32xf32>
    %367 = arith.negf %366 : vector<8x32xf32>
    %368 = math.exp %367 : vector<8x32xf32>
    %cst_249 = arith.constant 1.000000e+00 : f32
    %369 = vector.broadcast %cst_249 : f32 to vector<8x32xf32>
    %370 = arith.addf %369, %368 : vector<8x32xf32>
    %371 = arith.divf %369, %370 : vector<8x32xf32>
    %372 = arith.mulf %365, %320 : vector<8x32xf32>
    %373 = arith.addf %350, %372 : vector<8x32xf32>
    %374 = math.tanh %373 : vector<8x32xf32>
    %cst_250 = arith.constant 1.000000e+00 : f32
    %375 = vector.broadcast %cst_250 : f32 to vector<8x32xf32>
    %376 = arith.subf %375, %371 : vector<8x32xf32>
    %377 = arith.mulf %376, %374 : vector<8x32xf32>
    %378 = arith.mulf %371, %264 : vector<8x32xf32>
    %379 = arith.addf %377, %378 : vector<8x32xf32>
    %380 = arith.addf %353, %327 : vector<8x32xf32>
    %381 = arith.negf %380 : vector<8x32xf32>
    %382 = math.exp %381 : vector<8x32xf32>
    %cst_251 = arith.constant 1.000000e+00 : f32
    %383 = vector.broadcast %cst_251 : f32 to vector<8x32xf32>
    %384 = arith.addf %383, %382 : vector<8x32xf32>
    %385 = arith.divf %383, %384 : vector<8x32xf32>
    %386 = arith.addf %356, %334 : vector<8x32xf32>
    %387 = arith.negf %386 : vector<8x32xf32>
    %388 = math.exp %387 : vector<8x32xf32>
    %cst_252 = arith.constant 1.000000e+00 : f32
    %389 = vector.broadcast %cst_252 : f32 to vector<8x32xf32>
    %390 = arith.addf %389, %388 : vector<8x32xf32>
    %391 = arith.divf %389, %390 : vector<8x32xf32>
    %392 = arith.mulf %385, %341 : vector<8x32xf32>
    %393 = arith.addf %359, %392 : vector<8x32xf32>
    %394 = math.tanh %393 : vector<8x32xf32>
    %cst_253 = arith.constant 1.000000e+00 : f32
    %395 = vector.broadcast %cst_253 : f32 to vector<8x32xf32>
    %396 = arith.subf %395, %391 : vector<8x32xf32>
    %397 = arith.mulf %396, %394 : vector<8x32xf32>
    %398 = arith.mulf %391, %284 : vector<8x32xf32>
    %399 = arith.addf %397, %398 : vector<8x32xf32>
    %c0_254 = arith.constant 0 : index
    %400 = arith.index_cast %294 : i32 to index
    %c0_255 = arith.constant 0 : index
    %401 = vector.load %arg12[%c0_254, %400, %c0_255] : memref<1x64x64xf32, #tpu.memory_space<vmem>>, vector<1x8x32xf32>
    %402 = vector.shape_cast %401 : vector<1x8x32xf32> to vector<8x32xf32>
    %403 = vector.shape_cast %379 : vector<8x32xf32> to vector<1x8x32xf32>
    tpu.vector_store %arg12[%c0_254, %400, %c0_255], %403 {strides = array<i32>} : memref<1x64x64xf32, #tpu.memory_space<vmem>>, vector<1x8x32xf32>,
    %c0_256 = arith.constant 0 : index
    %404 = arith.index_cast %297 : i32 to index
    %c32_257 = arith.constant 32 : index
    %405 = vector.load %arg12[%c0_256, %404, %c32_257] : memref<1x64x64xf32, #tpu.memory_space<vmem>>, vector<1x8x32xf32>
    %406 = vector.shape_cast %405 : vector<1x8x32xf32> to vector<8x32xf32>
    %407 = vector.shape_cast %399 : vector<8x32xf32> to vector<1x8x32xf32>
    tpu.vector_store %arg12[%c0_256, %404, %c32_257], %407 {strides = array<i32>} : memref<1x64x64xf32, #tpu.memory_space<vmem>>, vector<1x8x32xf32>,
    %c3_i32 = arith.constant 3 : i32
    %c8_i32_258 = arith.constant 8 : i32
    %408 = arith.muli %c3_i32, %c8_i32_258 : i32
    %409 = tpu.assume_multiple %408, 8 : i32
    %c7_i32_259 = arith.constant 7 : i32
    %410 = arith.subi %c7_i32_259, %c3_i32 : i32
    %c8_i32_260 = arith.constant 8 : i32
    %411 = arith.muli %410, %c8_i32_260 : i32
    %412 = tpu.assume_multiple %411, 8 : i32
    %413 = arith.truncf %379 : vector<8x32xf32> to vector<8x32xbf16>
    %414 = arith.truncf %399 : vector<8x32xf32> to vector<8x32xbf16>
    %c0_261 = arith.constant 0 : index
    %c0_262 = arith.constant 0 : index
    %c0_263 = arith.constant 0 : index
    %415 = vector.load %arg3[%c0_261, %c0_262, %c0_263] : memref<3x32x32xbf16, #tpu.memory_space<vmem>>, vector<1x32x32xbf16>
    %416 = vector.shape_cast %415 : vector<1x32x32xbf16> to vector<32x32xbf16>
    %cst_264 = arith.constant dense<0.000000e+00> : vector<8x32xf32>
    %417 = tpu.matmul %413, %416, %cst_264 {dimension_numbers = #tpu.dot_dimension_numbers<[1], [0], [0], [1], [0, 0, 1, 1], [], []>} : vector<8x32xbf16>, vector<32x32xbf16>, vector<8x32xf32> -> vector<8x32xf32>
    %c0_265 = arith.constant 0 : index
    %c0_266 = arith.constant 0 : index
    %c0_267 = arith.constant 0 : index
    %418 = vector.load %arg5[%c0_265, %c0_266, %c0_267] : memref<3x1x32xf32, #tpu.memory_space<vmem>>, vector<1x1x32xf32>
    %419 = vector.shape_cast %418 : vector<1x1x32xf32> to vector<1x32xf32>
    %420 = vector.broadcast %419 : vector<1x32xf32> to vector<8x32xf32>
    %421 = arith.addf %417, %420 : vector<8x32xf32>
    %c1_268 = arith.constant 1 : index
    %c0_269 = arith.constant 0 : index
    %c0_270 = arith.constant 0 : index
    %422 = vector.load %arg3[%c1_268, %c0_269, %c0_270] : memref<3x32x32xbf16, #tpu.memory_space<vmem>>, vector<1x32x32xbf16>
    %423 = vector.shape_cast %422 : vector<1x32x32xbf16> to vector<32x32xbf16>
    %cst_271 = arith.constant dense<0.000000e+00> : vector<8x32xf32>
    %424 = tpu.matmul %413, %423, %cst_271 {dimension_numbers = #tpu.dot_dimension_numbers<[1], [0], [0], [1], [0, 0, 1, 1], [], []>} : vector<8x32xbf16>, vector<32x32xbf16>, vector<8x32xf32> -> vector<8x32xf32>
    %c1_272 = arith.constant 1 : index
    %c0_273 = arith.constant 0 : index
    %c0_274 = arith.constant 0 : index
    %425 = vector.load %arg5[%c1_272, %c0_273, %c0_274] : memref<3x1x32xf32, #tpu.memory_space<vmem>>, vector<1x1x32xf32>
    %426 = vector.shape_cast %425 : vector<1x1x32xf32> to vector<1x32xf32>
    %427 = vector.broadcast %426 : vector<1x32xf32> to vector<8x32xf32>
    %428 = arith.addf %424, %427 : vector<8x32xf32>
    %c2_275 = arith.constant 2 : index
    %c0_276 = arith.constant 0 : index
    %c0_277 = arith.constant 0 : index
    %429 = vector.load %arg3[%c2_275, %c0_276, %c0_277] : memref<3x32x32xbf16, #tpu.memory_space<vmem>>, vector<1x32x32xbf16>
    %430 = vector.shape_cast %429 : vector<1x32x32xbf16> to vector<32x32xbf16>
    %cst_278 = arith.constant dense<0.000000e+00> : vector<8x32xf32>
    %431 = tpu.matmul %413, %430, %cst_278 {dimension_numbers = #tpu.dot_dimension_numbers<[1], [0], [0], [1], [0, 0, 1, 1], [], []>} : vector<8x32xbf16>, vector<32x32xbf16>, vector<8x32xf32> -> vector<8x32xf32>
    %c2_279 = arith.constant 2 : index
    %c0_280 = arith.constant 0 : index
    %c0_281 = arith.constant 0 : index
    %432 = vector.load %arg5[%c2_279, %c0_280, %c0_281] : memref<3x1x32xf32, #tpu.memory_space<vmem>>, vector<1x1x32xf32>
    %433 = vector.shape_cast %432 : vector<1x1x32xf32> to vector<1x32xf32>
    %434 = vector.broadcast %433 : vector<1x32xf32> to vector<8x32xf32>
    %435 = arith.addf %431, %434 : vector<8x32xf32>
    %c0_282 = arith.constant 0 : index
    %c0_283 = arith.constant 0 : index
    %c0_284 = arith.constant 0 : index
    %436 = vector.load %arg7[%c0_282, %c0_283, %c0_284] : memref<3x32x32xbf16, #tpu.memory_space<vmem>>, vector<1x32x32xbf16>
    %437 = vector.shape_cast %436 : vector<1x32x32xbf16> to vector<32x32xbf16>
    %cst_285 = arith.constant dense<0.000000e+00> : vector<8x32xf32>
    %438 = tpu.matmul %414, %437, %cst_285 {dimension_numbers = #tpu.dot_dimension_numbers<[1], [0], [0], [1], [0, 0, 1, 1], [], []>} : vector<8x32xbf16>, vector<32x32xbf16>, vector<8x32xf32> -> vector<8x32xf32>
    %c0_286 = arith.constant 0 : index
    %c0_287 = arith.constant 0 : index
    %c0_288 = arith.constant 0 : index
    %439 = vector.load %arg9[%c0_286, %c0_287, %c0_288] : memref<3x1x32xf32, #tpu.memory_space<vmem>>, vector<1x1x32xf32>
    %440 = vector.shape_cast %439 : vector<1x1x32xf32> to vector<1x32xf32>
    %441 = vector.broadcast %440 : vector<1x32xf32> to vector<8x32xf32>
    %442 = arith.addf %438, %441 : vector<8x32xf32>
    %c1_289 = arith.constant 1 : index
    %c0_290 = arith.constant 0 : index
    %c0_291 = arith.constant 0 : index
    %443 = vector.load %arg7[%c1_289, %c0_290, %c0_291] : memref<3x32x32xbf16, #tpu.memory_space<vmem>>, vector<1x32x32xbf16>
    %444 = vector.shape_cast %443 : vector<1x32x32xbf16> to vector<32x32xbf16>
    %cst_292 = arith.constant dense<0.000000e+00> : vector<8x32xf32>
    %445 = tpu.matmul %414, %444, %cst_292 {dimension_numbers = #tpu.dot_dimension_numbers<[1], [0], [0], [1], [0, 0, 1, 1], [], []>} : vector<8x32xbf16>, vector<32x32xbf16>, vector<8x32xf32> -> vector<8x32xf32>
    %c1_293 = arith.constant 1 : index
    %c0_294 = arith.constant 0 : index
    %c0_295 = arith.constant 0 : index
    %446 = vector.load %arg9[%c1_293, %c0_294, %c0_295] : memref<3x1x32xf32, #tpu.memory_space<vmem>>, vector<1x1x32xf32>
    %447 = vector.shape_cast %446 : vector<1x1x32xf32> to vector<1x32xf32>
    %448 = vector.broadcast %447 : vector<1x32xf32> to vector<8x32xf32>
    %449 = arith.addf %445, %448 : vector<8x32xf32>
    %c2_296 = arith.constant 2 : index
    %c0_297 = arith.constant 0 : index
    %c0_298 = arith.constant 0 : index
    %450 = vector.load %arg7[%c2_296, %c0_297, %c0_298] : memref<3x32x32xbf16, #tpu.memory_space<vmem>>, vector<1x32x32xbf16>
    %451 = vector.shape_cast %450 : vector<1x32x32xbf16> to vector<32x32xbf16>
    %cst_299 = arith.constant dense<0.000000e+00> : vector<8x32xf32>
    %452 = tpu.matmul %414, %451, %cst_299 {dimension_numbers = #tpu.dot_dimension_numbers<[1], [0], [0], [1], [0, 0, 1, 1], [], []>} : vector<8x32xbf16>, vector<32x32xbf16>, vector<8x32xf32> -> vector<8x32xf32>
    %c2_300 = arith.constant 2 : index
    %c0_301 = arith.constant 0 : index
    %c0_302 = arith.constant 0 : index
    %453 = vector.load %arg9[%c2_300, %c0_301, %c0_302] : memref<3x1x32xf32, #tpu.memory_space<vmem>>, vector<1x1x32xf32>
    %454 = vector.shape_cast %453 : vector<1x1x32xf32> to vector<1x32xf32>
    %455 = vector.broadcast %454 : vector<1x32xf32> to vector<8x32xf32>
    %456 = arith.addf %452, %455 : vector<8x32xf32>
    %c0_303 = arith.constant 0 : index
    %457 = arith.index_cast %409 : i32 to index
    %c0_304 = arith.constant 0 : index
    %458 = vector.load %arg14[%c0_303, %457, %c0_304] : memref<3x64x32xf32, #tpu.memory_space<vmem>>, vector<1x8x32xf32>
    %459 = vector.shape_cast %458 : vector<1x8x32xf32> to vector<8x32xf32>
    %c1_305 = arith.constant 1 : index
    %460 = arith.index_cast %409 : i32 to index
    %c0_306 = arith.constant 0 : index
    %461 = vector.load %arg14[%c1_305, %460, %c0_306] : memref<3x64x32xf32, #tpu.memory_space<vmem>>, vector<1x8x32xf32>
    %462 = vector.shape_cast %461 : vector<1x8x32xf32> to vector<8x32xf32>
    %c2_307 = arith.constant 2 : index
    %463 = arith.index_cast %409 : i32 to index
    %c0_308 = arith.constant 0 : index
    %464 = vector.load %arg14[%c2_307, %463, %c0_308] : memref<3x64x32xf32, #tpu.memory_space<vmem>>, vector<1x8x32xf32>
    %465 = vector.shape_cast %464 : vector<1x8x32xf32> to vector<8x32xf32>
    %c0_309 = arith.constant 0 : index
    %466 = arith.index_cast %412 : i32 to index
    %c0_310 = arith.constant 0 : index
    %467 = vector.load %arg15[%c0_309, %466, %c0_310] : memref<3x64x32xf32, #tpu.memory_space<vmem>>, vector<1x8x32xf32>
    %468 = vector.shape_cast %467 : vector<1x8x32xf32> to vector<8x32xf32>
    %c1_311 = arith.constant 1 : index
    %469 = arith.index_cast %412 : i32 to index
    %c0_312 = arith.constant 0 : index
    %470 = vector.load %arg15[%c1_311, %469, %c0_312] : memref<3x64x32xf32, #tpu.memory_space<vmem>>, vector<1x8x32xf32>
    %471 = vector.shape_cast %470 : vector<1x8x32xf32> to vector<8x32xf32>
    %c2_313 = arith.constant 2 : index
    %472 = arith.index_cast %412 : i32 to index
    %c0_314 = arith.constant 0 : index
    %473 = vector.load %arg15[%c2_313, %472, %c0_314] : memref<3x64x32xf32, #tpu.memory_space<vmem>>, vector<1x8x32xf32>
    %474 = vector.shape_cast %473 : vector<1x8x32xf32> to vector<8x32xf32>
    %475 = arith.addf %459, %421 : vector<8x32xf32>
    %476 = arith.negf %475 : vector<8x32xf32>
    %477 = math.exp %476 : vector<8x32xf32>
    %cst_315 = arith.constant 1.000000e+00 : f32
    %478 = vector.broadcast %cst_315 : f32 to vector<8x32xf32>
    %479 = arith.addf %478, %477 : vector<8x32xf32>
    %480 = arith.divf %478, %479 : vector<8x32xf32>
    %481 = arith.addf %462, %428 : vector<8x32xf32>
    %482 = arith.negf %481 : vector<8x32xf32>
    %483 = math.exp %482 : vector<8x32xf32>
    %cst_316 = arith.constant 1.000000e+00 : f32
    %484 = vector.broadcast %cst_316 : f32 to vector<8x32xf32>
    %485 = arith.addf %484, %483 : vector<8x32xf32>
    %486 = arith.divf %484, %485 : vector<8x32xf32>
    %487 = arith.mulf %480, %435 : vector<8x32xf32>
    %488 = arith.addf %465, %487 : vector<8x32xf32>
    %489 = math.tanh %488 : vector<8x32xf32>
    %cst_317 = arith.constant 1.000000e+00 : f32
    %490 = vector.broadcast %cst_317 : f32 to vector<8x32xf32>
    %491 = arith.subf %490, %486 : vector<8x32xf32>
    %492 = arith.mulf %491, %489 : vector<8x32xf32>
    %493 = arith.mulf %486, %379 : vector<8x32xf32>
    %494 = arith.addf %492, %493 : vector<8x32xf32>
    %495 = arith.addf %468, %442 : vector<8x32xf32>
    %496 = arith.negf %495 : vector<8x32xf32>
    %497 = math.exp %496 : vector<8x32xf32>
    %cst_318 = arith.constant 1.000000e+00 : f32
    %498 = vector.broadcast %cst_318 : f32 to vector<8x32xf32>
    %499 = arith.addf %498, %497 : vector<8x32xf32>
    %500 = arith.divf %498, %499 : vector<8x32xf32>
    %501 = arith.addf %471, %449 : vector<8x32xf32>
    %502 = arith.negf %501 : vector<8x32xf32>
    %503 = math.exp %502 : vector<8x32xf32>
    %cst_319 = arith.constant 1.000000e+00 : f32
    %504 = vector.broadcast %cst_319 : f32 to vector<8x32xf32>
    %505 = arith.addf %504, %503 : vector<8x32xf32>
    %506 = arith.divf %504, %505 : vector<8x32xf32>
    %507 = arith.mulf %500, %456 : vector<8x32xf32>
    %508 = arith.addf %474, %507 : vector<8x32xf32>
    %509 = math.tanh %508 : vector<8x32xf32>
    %cst_320 = arith.constant 1.000000e+00 : f32
    %510 = vector.broadcast %cst_320 : f32 to vector<8x32xf32>
    %511 = arith.subf %510, %506 : vector<8x32xf32>
    %512 = arith.mulf %511, %509 : vector<8x32xf32>
    %513 = arith.mulf %506, %399 : vector<8x32xf32>
    %514 = arith.addf %512, %513 : vector<8x32xf32>
    %c0_321 = arith.constant 0 : index
    %515 = arith.index_cast %409 : i32 to index
    %c0_322 = arith.constant 0 : index
    %516 = vector.load %arg12[%c0_321, %515, %c0_322] : memref<1x64x64xf32, #tpu.memory_space<vmem>>, vector<1x8x32xf32>
    %517 = vector.shape_cast %516 : vector<1x8x32xf32> to vector<8x32xf32>
    %518 = vector.shape_cast %494 : vector<8x32xf32> to vector<1x8x32xf32>
    tpu.vector_store %arg12[%c0_321, %515, %c0_322], %518 {strides = array<i32>} : memref<1x64x64xf32, #tpu.memory_space<vmem>>, vector<1x8x32xf32>,
    %c0_323 = arith.constant 0 : index
    %519 = arith.index_cast %412 : i32 to index
    %c32_324 = arith.constant 32 : index
    %520 = vector.load %arg12[%c0_323, %519, %c32_324] : memref<1x64x64xf32, #tpu.memory_space<vmem>>, vector<1x8x32xf32>
    %521 = vector.shape_cast %520 : vector<1x8x32xf32> to vector<8x32xf32>
    %522 = vector.shape_cast %514 : vector<8x32xf32> to vector<1x8x32xf32>
    tpu.vector_store %arg12[%c0_323, %519, %c32_324], %522 {strides = array<i32>} : memref<1x64x64xf32, #tpu.memory_space<vmem>>, vector<1x8x32xf32>,
    %c4_i32 = arith.constant 4 : i32
    %c8_i32_325 = arith.constant 8 : i32
    %523 = arith.muli %c4_i32, %c8_i32_325 : i32
    %524 = tpu.assume_multiple %523, 8 : i32
    %c7_i32_326 = arith.constant 7 : i32
    %525 = arith.subi %c7_i32_326, %c4_i32 : i32
    %c8_i32_327 = arith.constant 8 : i32
    %526 = arith.muli %525, %c8_i32_327 : i32
    %527 = tpu.assume_multiple %526, 8 : i32
    %528 = arith.truncf %494 : vector<8x32xf32> to vector<8x32xbf16>
    %529 = arith.truncf %514 : vector<8x32xf32> to vector<8x32xbf16>
    %c0_328 = arith.constant 0 : index
    %c0_329 = arith.constant 0 : index
    %c0_330 = arith.constant 0 : index
    %530 = vector.load %arg3[%c0_328, %c0_329, %c0_330] : memref<3x32x32xbf16, #tpu.memory_space<vmem>>, vector<1x32x32xbf16>
    %531 = vector.shape_cast %530 : vector<1x32x32xbf16> to vector<32x32xbf16>
    %cst_331 = arith.constant dense<0.000000e+00> : vector<8x32xf32>
    %532 = tpu.matmul %528, %531, %cst_331 {dimension_numbers = #tpu.dot_dimension_numbers<[1], [0], [0], [1], [0, 0, 1, 1], [], []>} : vector<8x32xbf16>, vector<32x32xbf16>, vector<8x32xf32> -> vector<8x32xf32>
    %c0_332 = arith.constant 0 : index
    %c0_333 = arith.constant 0 : index
    %c0_334 = arith.constant 0 : index
    %533 = vector.load %arg5[%c0_332, %c0_333, %c0_334] : memref<3x1x32xf32, #tpu.memory_space<vmem>>, vector<1x1x32xf32>
    %534 = vector.shape_cast %533 : vector<1x1x32xf32> to vector<1x32xf32>
    %535 = vector.broadcast %534 : vector<1x32xf32> to vector<8x32xf32>
    %536 = arith.addf %532, %535 : vector<8x32xf32>
    %c1_335 = arith.constant 1 : index
    %c0_336 = arith.constant 0 : index
    %c0_337 = arith.constant 0 : index
    %537 = vector.load %arg3[%c1_335, %c0_336, %c0_337] : memref<3x32x32xbf16, #tpu.memory_space<vmem>>, vector<1x32x32xbf16>
    %538 = vector.shape_cast %537 : vector<1x32x32xbf16> to vector<32x32xbf16>
    %cst_338 = arith.constant dense<0.000000e+00> : vector<8x32xf32>
    %539 = tpu.matmul %528, %538, %cst_338 {dimension_numbers = #tpu.dot_dimension_numbers<[1], [0], [0], [1], [0, 0, 1, 1], [], []>} : vector<8x32xbf16>, vector<32x32xbf16>, vector<8x32xf32> -> vector<8x32xf32>
    %c1_339 = arith.constant 1 : index
    %c0_340 = arith.constant 0 : index
    %c0_341 = arith.constant 0 : index
    %540 = vector.load %arg5[%c1_339, %c0_340, %c0_341] : memref<3x1x32xf32, #tpu.memory_space<vmem>>, vector<1x1x32xf32>
    %541 = vector.shape_cast %540 : vector<1x1x32xf32> to vector<1x32xf32>
    %542 = vector.broadcast %541 : vector<1x32xf32> to vector<8x32xf32>
    %543 = arith.addf %539, %542 : vector<8x32xf32>
    %c2_342 = arith.constant 2 : index
    %c0_343 = arith.constant 0 : index
    %c0_344 = arith.constant 0 : index
    %544 = vector.load %arg3[%c2_342, %c0_343, %c0_344] : memref<3x32x32xbf16, #tpu.memory_space<vmem>>, vector<1x32x32xbf16>
    %545 = vector.shape_cast %544 : vector<1x32x32xbf16> to vector<32x32xbf16>
    %cst_345 = arith.constant dense<0.000000e+00> : vector<8x32xf32>
    %546 = tpu.matmul %528, %545, %cst_345 {dimension_numbers = #tpu.dot_dimension_numbers<[1], [0], [0], [1], [0, 0, 1, 1], [], []>} : vector<8x32xbf16>, vector<32x32xbf16>, vector<8x32xf32> -> vector<8x32xf32>
    %c2_346 = arith.constant 2 : index
    %c0_347 = arith.constant 0 : index
    %c0_348 = arith.constant 0 : index
    %547 = vector.load %arg5[%c2_346, %c0_347, %c0_348] : memref<3x1x32xf32, #tpu.memory_space<vmem>>, vector<1x1x32xf32>
    %548 = vector.shape_cast %547 : vector<1x1x32xf32> to vector<1x32xf32>
    %549 = vector.broadcast %548 : vector<1x32xf32> to vector<8x32xf32>
    %550 = arith.addf %546, %549 : vector<8x32xf32>
    %c0_349 = arith.constant 0 : index
    %c0_350 = arith.constant 0 : index
    %c0_351 = arith.constant 0 : index
    %551 = vector.load %arg7[%c0_349, %c0_350, %c0_351] : memref<3x32x32xbf16, #tpu.memory_space<vmem>>, vector<1x32x32xbf16>
    %552 = vector.shape_cast %551 : vector<1x32x32xbf16> to vector<32x32xbf16>
    %cst_352 = arith.constant dense<0.000000e+00> : vector<8x32xf32>
    %553 = tpu.matmul %529, %552, %cst_352 {dimension_numbers = #tpu.dot_dimension_numbers<[1], [0], [0], [1], [0, 0, 1, 1], [], []>} : vector<8x32xbf16>, vector<32x32xbf16>, vector<8x32xf32> -> vector<8x32xf32>
    %c0_353 = arith.constant 0 : index
    %c0_354 = arith.constant 0 : index
    %c0_355 = arith.constant 0 : index
    %554 = vector.load %arg9[%c0_353, %c0_354, %c0_355] : memref<3x1x32xf32, #tpu.memory_space<vmem>>, vector<1x1x32xf32>
    %555 = vector.shape_cast %554 : vector<1x1x32xf32> to vector<1x32xf32>
    %556 = vector.broadcast %555 : vector<1x32xf32> to vector<8x32xf32>
    %557 = arith.addf %553, %556 : vector<8x32xf32>
    %c1_356 = arith.constant 1 : index
    %c0_357 = arith.constant 0 : index
    %c0_358 = arith.constant 0 : index
    %558 = vector.load %arg7[%c1_356, %c0_357, %c0_358] : memref<3x32x32xbf16, #tpu.memory_space<vmem>>, vector<1x32x32xbf16>
    %559 = vector.shape_cast %558 : vector<1x32x32xbf16> to vector<32x32xbf16>
    %cst_359 = arith.constant dense<0.000000e+00> : vector<8x32xf32>
    %560 = tpu.matmul %529, %559, %cst_359 {dimension_numbers = #tpu.dot_dimension_numbers<[1], [0], [0], [1], [0, 0, 1, 1], [], []>} : vector<8x32xbf16>, vector<32x32xbf16>, vector<8x32xf32> -> vector<8x32xf32>
    %c1_360 = arith.constant 1 : index
    %c0_361 = arith.constant 0 : index
    %c0_362 = arith.constant 0 : index
    %561 = vector.load %arg9[%c1_360, %c0_361, %c0_362] : memref<3x1x32xf32, #tpu.memory_space<vmem>>, vector<1x1x32xf32>
    %562 = vector.shape_cast %561 : vector<1x1x32xf32> to vector<1x32xf32>
    %563 = vector.broadcast %562 : vector<1x32xf32> to vector<8x32xf32>
    %564 = arith.addf %560, %563 : vector<8x32xf32>
    %c2_363 = arith.constant 2 : index
    %c0_364 = arith.constant 0 : index
    %c0_365 = arith.constant 0 : index
    %565 = vector.load %arg7[%c2_363, %c0_364, %c0_365] : memref<3x32x32xbf16, #tpu.memory_space<vmem>>, vector<1x32x32xbf16>
    %566 = vector.shape_cast %565 : vector<1x32x32xbf16> to vector<32x32xbf16>
    %cst_366 = arith.constant dense<0.000000e+00> : vector<8x32xf32>
    %567 = tpu.matmul %529, %566, %cst_366 {dimension_numbers = #tpu.dot_dimension_numbers<[1], [0], [0], [1], [0, 0, 1, 1], [], []>} : vector<8x32xbf16>, vector<32x32xbf16>, vector<8x32xf32> -> vector<8x32xf32>
    %c2_367 = arith.constant 2 : index
    %c0_368 = arith.constant 0 : index
    %c0_369 = arith.constant 0 : index
    %568 = vector.load %arg9[%c2_367, %c0_368, %c0_369] : memref<3x1x32xf32, #tpu.memory_space<vmem>>, vector<1x1x32xf32>
    %569 = vector.shape_cast %568 : vector<1x1x32xf32> to vector<1x32xf32>
    %570 = vector.broadcast %569 : vector<1x32xf32> to vector<8x32xf32>
    %571 = arith.addf %567, %570 : vector<8x32xf32>
    %c0_370 = arith.constant 0 : index
    %572 = arith.index_cast %524 : i32 to index
    %c0_371 = arith.constant 0 : index
    %573 = vector.load %arg14[%c0_370, %572, %c0_371] : memref<3x64x32xf32, #tpu.memory_space<vmem>>, vector<1x8x32xf32>
    %574 = vector.shape_cast %573 : vector<1x8x32xf32> to vector<8x32xf32>
    %c1_372 = arith.constant 1 : index
    %575 = arith.index_cast %524 : i32 to index
    %c0_373 = arith.constant 0 : index
    %576 = vector.load %arg14[%c1_372, %575, %c0_373] : memref<3x64x32xf32, #tpu.memory_space<vmem>>, vector<1x8x32xf32>
    %577 = vector.shape_cast %576 : vector<1x8x32xf32> to vector<8x32xf32>
    %c2_374 = arith.constant 2 : index
    %578 = arith.index_cast %524 : i32 to index
    %c0_375 = arith.constant 0 : index
    %579 = vector.load %arg14[%c2_374, %578, %c0_375] : memref<3x64x32xf32, #tpu.memory_space<vmem>>, vector<1x8x32xf32>
    %580 = vector.shape_cast %579 : vector<1x8x32xf32> to vector<8x32xf32>
    %c0_376 = arith.constant 0 : index
    %581 = arith.index_cast %527 : i32 to index
    %c0_377 = arith.constant 0 : index
    %582 = vector.load %arg15[%c0_376, %581, %c0_377] : memref<3x64x32xf32, #tpu.memory_space<vmem>>, vector<1x8x32xf32>
    %583 = vector.shape_cast %582 : vector<1x8x32xf32> to vector<8x32xf32>
    %c1_378 = arith.constant 1 : index
    %584 = arith.index_cast %527 : i32 to index
    %c0_379 = arith.constant 0 : index
    %585 = vector.load %arg15[%c1_378, %584, %c0_379] : memref<3x64x32xf32, #tpu.memory_space<vmem>>, vector<1x8x32xf32>
    %586 = vector.shape_cast %585 : vector<1x8x32xf32> to vector<8x32xf32>
    %c2_380 = arith.constant 2 : index
    %587 = arith.index_cast %527 : i32 to index
    %c0_381 = arith.constant 0 : index
    %588 = vector.load %arg15[%c2_380, %587, %c0_381] : memref<3x64x32xf32, #tpu.memory_space<vmem>>, vector<1x8x32xf32>
    %589 = vector.shape_cast %588 : vector<1x8x32xf32> to vector<8x32xf32>
    %590 = arith.addf %574, %536 : vector<8x32xf32>
    %591 = arith.negf %590 : vector<8x32xf32>
    %592 = math.exp %591 : vector<8x32xf32>
    %cst_382 = arith.constant 1.000000e+00 : f32
    %593 = vector.broadcast %cst_382 : f32 to vector<8x32xf32>
    %594 = arith.addf %593, %592 : vector<8x32xf32>
    %595 = arith.divf %593, %594 : vector<8x32xf32>
    %596 = arith.addf %577, %543 : vector<8x32xf32>
    %597 = arith.negf %596 : vector<8x32xf32>
    %598 = math.exp %597 : vector<8x32xf32>
    %cst_383 = arith.constant 1.000000e+00 : f32
    %599 = vector.broadcast %cst_383 : f32 to vector<8x32xf32>
    %600 = arith.addf %599, %598 : vector<8x32xf32>
    %601 = arith.divf %599, %600 : vector<8x32xf32>
    %602 = arith.mulf %595, %550 : vector<8x32xf32>
    %603 = arith.addf %580, %602 : vector<8x32xf32>
    %604 = math.tanh %603 : vector<8x32xf32>
    %cst_384 = arith.constant 1.000000e+00 : f32
    %605 = vector.broadcast %cst_384 : f32 to vector<8x32xf32>
    %606 = arith.subf %605, %601 : vector<8x32xf32>
    %607 = arith.mulf %606, %604 : vector<8x32xf32>
    %608 = arith.mulf %601, %494 : vector<8x32xf32>
    %609 = arith.addf %607, %608 : vector<8x32xf32>
    %610 = arith.addf %583, %557 : vector<8x32xf32>
    %611 = arith.negf %610 : vector<8x32xf32>
    %612 = math.exp %611 : vector<8x32xf32>
    %cst_385 = arith.constant 1.000000e+00 : f32
    %613 = vector.broadcast %cst_385 : f32 to vector<8x32xf32>
    %614 = arith.addf %613, %612 : vector<8x32xf32>
    %615 = arith.divf %613, %614 : vector<8x32xf32>
    %616 = arith.addf %586, %564 : vector<8x32xf32>
    %617 = arith.negf %616 : vector<8x32xf32>
    %618 = math.exp %617 : vector<8x32xf32>
    %cst_386 = arith.constant 1.000000e+00 : f32
    %619 = vector.broadcast %cst_386 : f32 to vector<8x32xf32>
    %620 = arith.addf %619, %618 : vector<8x32xf32>
    %621 = arith.divf %619, %620 : vector<8x32xf32>
    %622 = arith.mulf %615, %571 : vector<8x32xf32>
    %623 = arith.addf %589, %622 : vector<8x32xf32>
    %624 = math.tanh %623 : vector<8x32xf32>
    %cst_387 = arith.constant 1.000000e+00 : f32
    %625 = vector.broadcast %cst_387 : f32 to vector<8x32xf32>
    %626 = arith.subf %625, %621 : vector<8x32xf32>
    %627 = arith.mulf %626, %624 : vector<8x32xf32>
    %628 = arith.mulf %621, %514 : vector<8x32xf32>
    %629 = arith.addf %627, %628 : vector<8x32xf32>
    %c0_388 = arith.constant 0 : index
    %630 = arith.index_cast %524 : i32 to index
    %c0_389 = arith.constant 0 : index
    %631 = vector.load %arg12[%c0_388, %630, %c0_389] : memref<1x64x64xf32, #tpu.memory_space<vmem>>, vector<1x8x32xf32>
    %632 = vector.shape_cast %631 : vector<1x8x32xf32> to vector<8x32xf32>
    %633 = vector.shape_cast %609 : vector<8x32xf32> to vector<1x8x32xf32>
    tpu.vector_store %arg12[%c0_388, %630, %c0_389], %633 {strides = array<i32>} : memref<1x64x64xf32, #tpu.memory_space<vmem>>, vector<1x8x32xf32>,
    %c0_390 = arith.constant 0 : index
    %634 = arith.index_cast %527 : i32 to index
    %c32_391 = arith.constant 32 : index
    %635 = vector.load %arg12[%c0_390, %634, %c32_391] : memref<1x64x64xf32, #tpu.memory_space<vmem>>, vector<1x8x32xf32>
    %636 = vector.shape_cast %635 : vector<1x8x32xf32> to vector<8x32xf32>
    %637 = vector.shape_cast %629 : vector<8x32xf32> to vector<1x8x32xf32>
    tpu.vector_store %arg12[%c0_390, %634, %c32_391], %637 {strides = array<i32>} : memref<1x64x64xf32, #tpu.memory_space<vmem>>, vector<1x8x32xf32>,
    %c5_i32 = arith.constant 5 : i32
    %c8_i32_392 = arith.constant 8 : i32
    %638 = arith.muli %c5_i32, %c8_i32_392 : i32
    %639 = tpu.assume_multiple %638, 8 : i32
    %c7_i32_393 = arith.constant 7 : i32
    %640 = arith.subi %c7_i32_393, %c5_i32 : i32
    %c8_i32_394 = arith.constant 8 : i32
    %641 = arith.muli %640, %c8_i32_394 : i32
    %642 = tpu.assume_multiple %641, 8 : i32
    %643 = arith.truncf %609 : vector<8x32xf32> to vector<8x32xbf16>
    %644 = arith.truncf %629 : vector<8x32xf32> to vector<8x32xbf16>
    %c0_395 = arith.constant 0 : index
    %c0_396 = arith.constant 0 : index
    %c0_397 = arith.constant 0 : index
    %645 = vector.load %arg3[%c0_395, %c0_396, %c0_397] : memref<3x32x32xbf16, #tpu.memory_space<vmem>>, vector<1x32x32xbf16>
    %646 = vector.shape_cast %645 : vector<1x32x32xbf16> to vector<32x32xbf16>
    %cst_398 = arith.constant dense<0.000000e+00> : vector<8x32xf32>
    %647 = tpu.matmul %643, %646, %cst_398 {dimension_numbers = #tpu.dot_dimension_numbers<[1], [0], [0], [1], [0, 0, 1, 1], [], []>} : vector<8x32xbf16>, vector<32x32xbf16>, vector<8x32xf32> -> vector<8x32xf32>
    %c0_399 = arith.constant 0 : index
    %c0_400 = arith.constant 0 : index
    %c0_401 = arith.constant 0 : index
    %648 = vector.load %arg5[%c0_399, %c0_400, %c0_401] : memref<3x1x32xf32, #tpu.memory_space<vmem>>, vector<1x1x32xf32>
    %649 = vector.shape_cast %648 : vector<1x1x32xf32> to vector<1x32xf32>
    %650 = vector.broadcast %649 : vector<1x32xf32> to vector<8x32xf32>
    %651 = arith.addf %647, %650 : vector<8x32xf32>
    %c1_402 = arith.constant 1 : index
    %c0_403 = arith.constant 0 : index
    %c0_404 = arith.constant 0 : index
    %652 = vector.load %arg3[%c1_402, %c0_403, %c0_404] : memref<3x32x32xbf16, #tpu.memory_space<vmem>>, vector<1x32x32xbf16>
    %653 = vector.shape_cast %652 : vector<1x32x32xbf16> to vector<32x32xbf16>
    %cst_405 = arith.constant dense<0.000000e+00> : vector<8x32xf32>
    %654 = tpu.matmul %643, %653, %cst_405 {dimension_numbers = #tpu.dot_dimension_numbers<[1], [0], [0], [1], [0, 0, 1, 1], [], []>} : vector<8x32xbf16>, vector<32x32xbf16>, vector<8x32xf32> -> vector<8x32xf32>
    %c1_406 = arith.constant 1 : index
    %c0_407 = arith.constant 0 : index
    %c0_408 = arith.constant 0 : index
    %655 = vector.load %arg5[%c1_406, %c0_407, %c0_408] : memref<3x1x32xf32, #tpu.memory_space<vmem>>, vector<1x1x32xf32>
    %656 = vector.shape_cast %655 : vector<1x1x32xf32> to vector<1x32xf32>
    %657 = vector.broadcast %656 : vector<1x32xf32> to vector<8x32xf32>
    %658 = arith.addf %654, %657 : vector<8x32xf32>
    %c2_409 = arith.constant 2 : index
    %c0_410 = arith.constant 0 : index
    %c0_411 = arith.constant 0 : index
    %659 = vector.load %arg3[%c2_409, %c0_410, %c0_411] : memref<3x32x32xbf16, #tpu.memory_space<vmem>>, vector<1x32x32xbf16>
    %660 = vector.shape_cast %659 : vector<1x32x32xbf16> to vector<32x32xbf16>
    %cst_412 = arith.constant dense<0.000000e+00> : vector<8x32xf32>
    %661 = tpu.matmul %643, %660, %cst_412 {dimension_numbers = #tpu.dot_dimension_numbers<[1], [0], [0], [1], [0, 0, 1, 1], [], []>} : vector<8x32xbf16>, vector<32x32xbf16>, vector<8x32xf32> -> vector<8x32xf32>
    %c2_413 = arith.constant 2 : index
    %c0_414 = arith.constant 0 : index
    %c0_415 = arith.constant 0 : index
    %662 = vector.load %arg5[%c2_413, %c0_414, %c0_415] : memref<3x1x32xf32, #tpu.memory_space<vmem>>, vector<1x1x32xf32>
    %663 = vector.shape_cast %662 : vector<1x1x32xf32> to vector<1x32xf32>
    %664 = vector.broadcast %663 : vector<1x32xf32> to vector<8x32xf32>
    %665 = arith.addf %661, %664 : vector<8x32xf32>
    %c0_416 = arith.constant 0 : index
    %c0_417 = arith.constant 0 : index
    %c0_418 = arith.constant 0 : index
    %666 = vector.load %arg7[%c0_416, %c0_417, %c0_418] : memref<3x32x32xbf16, #tpu.memory_space<vmem>>, vector<1x32x32xbf16>
    %667 = vector.shape_cast %666 : vector<1x32x32xbf16> to vector<32x32xbf16>
    %cst_419 = arith.constant dense<0.000000e+00> : vector<8x32xf32>
    %668 = tpu.matmul %644, %667, %cst_419 {dimension_numbers = #tpu.dot_dimension_numbers<[1], [0], [0], [1], [0, 0, 1, 1], [], []>} : vector<8x32xbf16>, vector<32x32xbf16>, vector<8x32xf32> -> vector<8x32xf32>
    %c0_420 = arith.constant 0 : index
    %c0_421 = arith.constant 0 : index
    %c0_422 = arith.constant 0 : index
    %669 = vector.load %arg9[%c0_420, %c0_421, %c0_422] : memref<3x1x32xf32, #tpu.memory_space<vmem>>, vector<1x1x32xf32>
    %670 = vector.shape_cast %669 : vector<1x1x32xf32> to vector<1x32xf32>
    %671 = vector.broadcast %670 : vector<1x32xf32> to vector<8x32xf32>
    %672 = arith.addf %668, %671 : vector<8x32xf32>
    %c1_423 = arith.constant 1 : index
    %c0_424 = arith.constant 0 : index
    %c0_425 = arith.constant 0 : index
    %673 = vector.load %arg7[%c1_423, %c0_424, %c0_425] : memref<3x32x32xbf16, #tpu.memory_space<vmem>>, vector<1x32x32xbf16>
    %674 = vector.shape_cast %673 : vector<1x32x32xbf16> to vector<32x32xbf16>
    %cst_426 = arith.constant dense<0.000000e+00> : vector<8x32xf32>
    %675 = tpu.matmul %644, %674, %cst_426 {dimension_numbers = #tpu.dot_dimension_numbers<[1], [0], [0], [1], [0, 0, 1, 1], [], []>} : vector<8x32xbf16>, vector<32x32xbf16>, vector<8x32xf32> -> vector<8x32xf32>
    %c1_427 = arith.constant 1 : index
    %c0_428 = arith.constant 0 : index
    %c0_429 = arith.constant 0 : index
    %676 = vector.load %arg9[%c1_427, %c0_428, %c0_429] : memref<3x1x32xf32, #tpu.memory_space<vmem>>, vector<1x1x32xf32>
    %677 = vector.shape_cast %676 : vector<1x1x32xf32> to vector<1x32xf32>
    %678 = vector.broadcast %677 : vector<1x32xf32> to vector<8x32xf32>
    %679 = arith.addf %675, %678 : vector<8x32xf32>
    %c2_430 = arith.constant 2 : index
    %c0_431 = arith.constant 0 : index
    %c0_432 = arith.constant 0 : index
    %680 = vector.load %arg7[%c2_430, %c0_431, %c0_432] : memref<3x32x32xbf16, #tpu.memory_space<vmem>>, vector<1x32x32xbf16>
    %681 = vector.shape_cast %680 : vector<1x32x32xbf16> to vector<32x32xbf16>
    %cst_433 = arith.constant dense<0.000000e+00> : vector<8x32xf32>
    %682 = tpu.matmul %644, %681, %cst_433 {dimension_numbers = #tpu.dot_dimension_numbers<[1], [0], [0], [1], [0, 0, 1, 1], [], []>} : vector<8x32xbf16>, vector<32x32xbf16>, vector<8x32xf32> -> vector<8x32xf32>
    %c2_434 = arith.constant 2 : index
    %c0_435 = arith.constant 0 : index
    %c0_436 = arith.constant 0 : index
    %683 = vector.load %arg9[%c2_434, %c0_435, %c0_436] : memref<3x1x32xf32, #tpu.memory_space<vmem>>, vector<1x1x32xf32>
    %684 = vector.shape_cast %683 : vector<1x1x32xf32> to vector<1x32xf32>
    %685 = vector.broadcast %684 : vector<1x32xf32> to vector<8x32xf32>
    %686 = arith.addf %682, %685 : vector<8x32xf32>
    %c0_437 = arith.constant 0 : index
    %687 = arith.index_cast %639 : i32 to index
    %c0_438 = arith.constant 0 : index
    %688 = vector.load %arg14[%c0_437, %687, %c0_438] : memref<3x64x32xf32, #tpu.memory_space<vmem>>, vector<1x8x32xf32>
    %689 = vector.shape_cast %688 : vector<1x8x32xf32> to vector<8x32xf32>
    %c1_439 = arith.constant 1 : index
    %690 = arith.index_cast %639 : i32 to index
    %c0_440 = arith.constant 0 : index
    %691 = vector.load %arg14[%c1_439, %690, %c0_440] : memref<3x64x32xf32, #tpu.memory_space<vmem>>, vector<1x8x32xf32>
    %692 = vector.shape_cast %691 : vector<1x8x32xf32> to vector<8x32xf32>
    %c2_441 = arith.constant 2 : index
    %693 = arith.index_cast %639 : i32 to index
    %c0_442 = arith.constant 0 : index
    %694 = vector.load %arg14[%c2_441, %693, %c0_442] : memref<3x64x32xf32, #tpu.memory_space<vmem>>, vector<1x8x32xf32>
    %695 = vector.shape_cast %694 : vector<1x8x32xf32> to vector<8x32xf32>
    %c0_443 = arith.constant 0 : index
    %696 = arith.index_cast %642 : i32 to index
    %c0_444 = arith.constant 0 : index
    %697 = vector.load %arg15[%c0_443, %696, %c0_444] : memref<3x64x32xf32, #tpu.memory_space<vmem>>, vector<1x8x32xf32>
    %698 = vector.shape_cast %697 : vector<1x8x32xf32> to vector<8x32xf32>
    %c1_445 = arith.constant 1 : index
    %699 = arith.index_cast %642 : i32 to index
    %c0_446 = arith.constant 0 : index
    %700 = vector.load %arg15[%c1_445, %699, %c0_446] : memref<3x64x32xf32, #tpu.memory_space<vmem>>, vector<1x8x32xf32>
    %701 = vector.shape_cast %700 : vector<1x8x32xf32> to vector<8x32xf32>
    %c2_447 = arith.constant 2 : index
    %702 = arith.index_cast %642 : i32 to index
    %c0_448 = arith.constant 0 : index
    %703 = vector.load %arg15[%c2_447, %702, %c0_448] : memref<3x64x32xf32, #tpu.memory_space<vmem>>, vector<1x8x32xf32>
    %704 = vector.shape_cast %703 : vector<1x8x32xf32> to vector<8x32xf32>
    %705 = arith.addf %689, %651 : vector<8x32xf32>
    %706 = arith.negf %705 : vector<8x32xf32>
    %707 = math.exp %706 : vector<8x32xf32>
    %cst_449 = arith.constant 1.000000e+00 : f32
    %708 = vector.broadcast %cst_449 : f32 to vector<8x32xf32>
    %709 = arith.addf %708, %707 : vector<8x32xf32>
    %710 = arith.divf %708, %709 : vector<8x32xf32>
    %711 = arith.addf %692, %658 : vector<8x32xf32>
    %712 = arith.negf %711 : vector<8x32xf32>
    %713 = math.exp %712 : vector<8x32xf32>
    %cst_450 = arith.constant 1.000000e+00 : f32
    %714 = vector.broadcast %cst_450 : f32 to vector<8x32xf32>
    %715 = arith.addf %714, %713 : vector<8x32xf32>
    %716 = arith.divf %714, %715 : vector<8x32xf32>
    %717 = arith.mulf %710, %665 : vector<8x32xf32>
    %718 = arith.addf %695, %717 : vector<8x32xf32>
    %719 = math.tanh %718 : vector<8x32xf32>
    %cst_451 = arith.constant 1.000000e+00 : f32
    %720 = vector.broadcast %cst_451 : f32 to vector<8x32xf32>
    %721 = arith.subf %720, %716 : vector<8x32xf32>
    %722 = arith.mulf %721, %719 : vector<8x32xf32>
    %723 = arith.mulf %716, %609 : vector<8x32xf32>
    %724 = arith.addf %722, %723 : vector<8x32xf32>
    %725 = arith.addf %698, %672 : vector<8x32xf32>
    %726 = arith.negf %725 : vector<8x32xf32>
    %727 = math.exp %726 : vector<8x32xf32>
    %cst_452 = arith.constant 1.000000e+00 : f32
    %728 = vector.broadcast %cst_452 : f32 to vector<8x32xf32>
    %729 = arith.addf %728, %727 : vector<8x32xf32>
    %730 = arith.divf %728, %729 : vector<8x32xf32>
    %731 = arith.addf %701, %679 : vector<8x32xf32>
    %732 = arith.negf %731 : vector<8x32xf32>
    %733 = math.exp %732 : vector<8x32xf32>
    %cst_453 = arith.constant 1.000000e+00 : f32
    %734 = vector.broadcast %cst_453 : f32 to vector<8x32xf32>
    %735 = arith.addf %734, %733 : vector<8x32xf32>
    %736 = arith.divf %734, %735 : vector<8x32xf32>
    %737 = arith.mulf %730, %686 : vector<8x32xf32>
    %738 = arith.addf %704, %737 : vector<8x32xf32>
    %739 = math.tanh %738 : vector<8x32xf32>
    %cst_454 = arith.constant 1.000000e+00 : f32
    %740 = vector.broadcast %cst_454 : f32 to vector<8x32xf32>
    %741 = arith.subf %740, %736 : vector<8x32xf32>
    %742 = arith.mulf %741, %739 : vector<8x32xf32>
    %743 = arith.mulf %736, %629 : vector<8x32xf32>
    %744 = arith.addf %742, %743 : vector<8x32xf32>
    %c0_455 = arith.constant 0 : index
    %745 = arith.index_cast %639 : i32 to index
    %c0_456 = arith.constant 0 : index
    %746 = vector.load %arg12[%c0_455, %745, %c0_456] : memref<1x64x64xf32, #tpu.memory_space<vmem>>, vector<1x8x32xf32>
    %747 = vector.shape_cast %746 : vector<1x8x32xf32> to vector<8x32xf32>
    %748 = vector.shape_cast %724 : vector<8x32xf32> to vector<1x8x32xf32>
    tpu.vector_store %arg12[%c0_455, %745, %c0_456], %748 {strides = array<i32>} : memref<1x64x64xf32, #tpu.memory_space<vmem>>, vector<1x8x32xf32>,
    %c0_457 = arith.constant 0 : index
    %749 = arith.index_cast %642 : i32 to index
    %c32_458 = arith.constant 32 : index
    %750 = vector.load %arg12[%c0_457, %749, %c32_458] : memref<1x64x64xf32, #tpu.memory_space<vmem>>, vector<1x8x32xf32>
    %751 = vector.shape_cast %750 : vector<1x8x32xf32> to vector<8x32xf32>
    %752 = vector.shape_cast %744 : vector<8x32xf32> to vector<1x8x32xf32>
    tpu.vector_store %arg12[%c0_457, %749, %c32_458], %752 {strides = array<i32>} : memref<1x64x64xf32, #tpu.memory_space<vmem>>, vector<1x8x32xf32>,
    %c6_i32 = arith.constant 6 : i32
    %c8_i32_459 = arith.constant 8 : i32
    %753 = arith.muli %c6_i32, %c8_i32_459 : i32
    %754 = tpu.assume_multiple %753, 8 : i32
    %c7_i32_460 = arith.constant 7 : i32
    %755 = arith.subi %c7_i32_460, %c6_i32 : i32
    %c8_i32_461 = arith.constant 8 : i32
    %756 = arith.muli %755, %c8_i32_461 : i32
    %757 = tpu.assume_multiple %756, 8 : i32
    %758 = arith.truncf %724 : vector<8x32xf32> to vector<8x32xbf16>
    %759 = arith.truncf %744 : vector<8x32xf32> to vector<8x32xbf16>
    %c0_462 = arith.constant 0 : index
    %c0_463 = arith.constant 0 : index
    %c0_464 = arith.constant 0 : index
    %760 = vector.load %arg3[%c0_462, %c0_463, %c0_464] : memref<3x32x32xbf16, #tpu.memory_space<vmem>>, vector<1x32x32xbf16>
    %761 = vector.shape_cast %760 : vector<1x32x32xbf16> to vector<32x32xbf16>
    %cst_465 = arith.constant dense<0.000000e+00> : vector<8x32xf32>
    %762 = tpu.matmul %758, %761, %cst_465 {dimension_numbers = #tpu.dot_dimension_numbers<[1], [0], [0], [1], [0, 0, 1, 1], [], []>} : vector<8x32xbf16>, vector<32x32xbf16>, vector<8x32xf32> -> vector<8x32xf32>
    %c0_466 = arith.constant 0 : index
    %c0_467 = arith.constant 0 : index
    %c0_468 = arith.constant 0 : index
    %763 = vector.load %arg5[%c0_466, %c0_467, %c0_468] : memref<3x1x32xf32, #tpu.memory_space<vmem>>, vector<1x1x32xf32>
    %764 = vector.shape_cast %763 : vector<1x1x32xf32> to vector<1x32xf32>
    %765 = vector.broadcast %764 : vector<1x32xf32> to vector<8x32xf32>
    %766 = arith.addf %762, %765 : vector<8x32xf32>
    %c1_469 = arith.constant 1 : index
    %c0_470 = arith.constant 0 : index
    %c0_471 = arith.constant 0 : index
    %767 = vector.load %arg3[%c1_469, %c0_470, %c0_471] : memref<3x32x32xbf16, #tpu.memory_space<vmem>>, vector<1x32x32xbf16>
    %768 = vector.shape_cast %767 : vector<1x32x32xbf16> to vector<32x32xbf16>
    %cst_472 = arith.constant dense<0.000000e+00> : vector<8x32xf32>
    %769 = tpu.matmul %758, %768, %cst_472 {dimension_numbers = #tpu.dot_dimension_numbers<[1], [0], [0], [1], [0, 0, 1, 1], [], []>} : vector<8x32xbf16>, vector<32x32xbf16>, vector<8x32xf32> -> vector<8x32xf32>
    %c1_473 = arith.constant 1 : index
    %c0_474 = arith.constant 0 : index
    %c0_475 = arith.constant 0 : index
    %770 = vector.load %arg5[%c1_473, %c0_474, %c0_475] : memref<3x1x32xf32, #tpu.memory_space<vmem>>, vector<1x1x32xf32>
    %771 = vector.shape_cast %770 : vector<1x1x32xf32> to vector<1x32xf32>
    %772 = vector.broadcast %771 : vector<1x32xf32> to vector<8x32xf32>
    %773 = arith.addf %769, %772 : vector<8x32xf32>
    %c2_476 = arith.constant 2 : index
    %c0_477 = arith.constant 0 : index
    %c0_478 = arith.constant 0 : index
    %774 = vector.load %arg3[%c2_476, %c0_477, %c0_478] : memref<3x32x32xbf16, #tpu.memory_space<vmem>>, vector<1x32x32xbf16>
    %775 = vector.shape_cast %774 : vector<1x32x32xbf16> to vector<32x32xbf16>
    %cst_479 = arith.constant dense<0.000000e+00> : vector<8x32xf32>
    %776 = tpu.matmul %758, %775, %cst_479 {dimension_numbers = #tpu.dot_dimension_numbers<[1], [0], [0], [1], [0, 0, 1, 1], [], []>} : vector<8x32xbf16>, vector<32x32xbf16>, vector<8x32xf32> -> vector<8x32xf32>
    %c2_480 = arith.constant 2 : index
    %c0_481 = arith.constant 0 : index
    %c0_482 = arith.constant 0 : index
    %777 = vector.load %arg5[%c2_480, %c0_481, %c0_482] : memref<3x1x32xf32, #tpu.memory_space<vmem>>, vector<1x1x32xf32>
    %778 = vector.shape_cast %777 : vector<1x1x32xf32> to vector<1x32xf32>
    %779 = vector.broadcast %778 : vector<1x32xf32> to vector<8x32xf32>
    %780 = arith.addf %776, %779 : vector<8x32xf32>
    %c0_483 = arith.constant 0 : index
    %c0_484 = arith.constant 0 : index
    %c0_485 = arith.constant 0 : index
    %781 = vector.load %arg7[%c0_483, %c0_484, %c0_485] : memref<3x32x32xbf16, #tpu.memory_space<vmem>>, vector<1x32x32xbf16>
    %782 = vector.shape_cast %781 : vector<1x32x32xbf16> to vector<32x32xbf16>
    %cst_486 = arith.constant dense<0.000000e+00> : vector<8x32xf32>
    %783 = tpu.matmul %759, %782, %cst_486 {dimension_numbers = #tpu.dot_dimension_numbers<[1], [0], [0], [1], [0, 0, 1, 1], [], []>} : vector<8x32xbf16>, vector<32x32xbf16>, vector<8x32xf32> -> vector<8x32xf32>
    %c0_487 = arith.constant 0 : index
    %c0_488 = arith.constant 0 : index
    %c0_489 = arith.constant 0 : index
    %784 = vector.load %arg9[%c0_487, %c0_488, %c0_489] : memref<3x1x32xf32, #tpu.memory_space<vmem>>, vector<1x1x32xf32>
    %785 = vector.shape_cast %784 : vector<1x1x32xf32> to vector<1x32xf32>
    %786 = vector.broadcast %785 : vector<1x32xf32> to vector<8x32xf32>
    %787 = arith.addf %783, %786 : vector<8x32xf32>
    %c1_490 = arith.constant 1 : index
    %c0_491 = arith.constant 0 : index
    %c0_492 = arith.constant 0 : index
    %788 = vector.load %arg7[%c1_490, %c0_491, %c0_492] : memref<3x32x32xbf16, #tpu.memory_space<vmem>>, vector<1x32x32xbf16>
    %789 = vector.shape_cast %788 : vector<1x32x32xbf16> to vector<32x32xbf16>
    %cst_493 = arith.constant dense<0.000000e+00> : vector<8x32xf32>
    %790 = tpu.matmul %759, %789, %cst_493 {dimension_numbers = #tpu.dot_dimension_numbers<[1], [0], [0], [1], [0, 0, 1, 1], [], []>} : vector<8x32xbf16>, vector<32x32xbf16>, vector<8x32xf32> -> vector<8x32xf32>
    %c1_494 = arith.constant 1 : index
    %c0_495 = arith.constant 0 : index
    %c0_496 = arith.constant 0 : index
    %791 = vector.load %arg9[%c1_494, %c0_495, %c0_496] : memref<3x1x32xf32, #tpu.memory_space<vmem>>, vector<1x1x32xf32>
    %792 = vector.shape_cast %791 : vector<1x1x32xf32> to vector<1x32xf32>
    %793 = vector.broadcast %792 : vector<1x32xf32> to vector<8x32xf32>
    %794 = arith.addf %790, %793 : vector<8x32xf32>
    %c2_497 = arith.constant 2 : index
    %c0_498 = arith.constant 0 : index
    %c0_499 = arith.constant 0 : index
    %795 = vector.load %arg7[%c2_497, %c0_498, %c0_499] : memref<3x32x32xbf16, #tpu.memory_space<vmem>>, vector<1x32x32xbf16>
    %796 = vector.shape_cast %795 : vector<1x32x32xbf16> to vector<32x32xbf16>
    %cst_500 = arith.constant dense<0.000000e+00> : vector<8x32xf32>
    %797 = tpu.matmul %759, %796, %cst_500 {dimension_numbers = #tpu.dot_dimension_numbers<[1], [0], [0], [1], [0, 0, 1, 1], [], []>} : vector<8x32xbf16>, vector<32x32xbf16>, vector<8x32xf32> -> vector<8x32xf32>
    %c2_501 = arith.constant 2 : index
    %c0_502 = arith.constant 0 : index
    %c0_503 = arith.constant 0 : index
    %798 = vector.load %arg9[%c2_501, %c0_502, %c0_503] : memref<3x1x32xf32, #tpu.memory_space<vmem>>, vector<1x1x32xf32>
    %799 = vector.shape_cast %798 : vector<1x1x32xf32> to vector<1x32xf32>
    %800 = vector.broadcast %799 : vector<1x32xf32> to vector<8x32xf32>
    %801 = arith.addf %797, %800 : vector<8x32xf32>
    %c0_504 = arith.constant 0 : index
    %802 = arith.index_cast %754 : i32 to index
    %c0_505 = arith.constant 0 : index
    %803 = vector.load %arg14[%c0_504, %802, %c0_505] : memref<3x64x32xf32, #tpu.memory_space<vmem>>, vector<1x8x32xf32>
    %804 = vector.shape_cast %803 : vector<1x8x32xf32> to vector<8x32xf32>
    %c1_506 = arith.constant 1 : index
    %805 = arith.index_cast %754 : i32 to index
    %c0_507 = arith.constant 0 : index
    %806 = vector.load %arg14[%c1_506, %805, %c0_507] : memref<3x64x32xf32, #tpu.memory_space<vmem>>, vector<1x8x32xf32>
    %807 = vector.shape_cast %806 : vector<1x8x32xf32> to vector<8x32xf32>
    %c2_508 = arith.constant 2 : index
    %808 = arith.index_cast %754 : i32 to index
    %c0_509 = arith.constant 0 : index
    %809 = vector.load %arg14[%c2_508, %808, %c0_509] : memref<3x64x32xf32, #tpu.memory_space<vmem>>, vector<1x8x32xf32>
    %810 = vector.shape_cast %809 : vector<1x8x32xf32> to vector<8x32xf32>
    %c0_510 = arith.constant 0 : index
    %811 = arith.index_cast %757 : i32 to index
    %c0_511 = arith.constant 0 : index
    %812 = vector.load %arg15[%c0_510, %811, %c0_511] : memref<3x64x32xf32, #tpu.memory_space<vmem>>, vector<1x8x32xf32>
    %813 = vector.shape_cast %812 : vector<1x8x32xf32> to vector<8x32xf32>
    %c1_512 = arith.constant 1 : index
    %814 = arith.index_cast %757 : i32 to index
    %c0_513 = arith.constant 0 : index
    %815 = vector.load %arg15[%c1_512, %814, %c0_513] : memref<3x64x32xf32, #tpu.memory_space<vmem>>, vector<1x8x32xf32>
    %816 = vector.shape_cast %815 : vector<1x8x32xf32> to vector<8x32xf32>
    %c2_514 = arith.constant 2 : index
    %817 = arith.index_cast %757 : i32 to index
    %c0_515 = arith.constant 0 : index
    %818 = vector.load %arg15[%c2_514, %817, %c0_515] : memref<3x64x32xf32, #tpu.memory_space<vmem>>, vector<1x8x32xf32>
    %819 = vector.shape_cast %818 : vector<1x8x32xf32> to vector<8x32xf32>
    %820 = arith.addf %804, %766 : vector<8x32xf32>
    %821 = arith.negf %820 : vector<8x32xf32>
    %822 = math.exp %821 : vector<8x32xf32>
    %cst_516 = arith.constant 1.000000e+00 : f32
    %823 = vector.broadcast %cst_516 : f32 to vector<8x32xf32>
    %824 = arith.addf %823, %822 : vector<8x32xf32>
    %825 = arith.divf %823, %824 : vector<8x32xf32>
    %826 = arith.addf %807, %773 : vector<8x32xf32>
    %827 = arith.negf %826 : vector<8x32xf32>
    %828 = math.exp %827 : vector<8x32xf32>
    %cst_517 = arith.constant 1.000000e+00 : f32
    %829 = vector.broadcast %cst_517 : f32 to vector<8x32xf32>
    %830 = arith.addf %829, %828 : vector<8x32xf32>
    %831 = arith.divf %829, %830 : vector<8x32xf32>
    %832 = arith.mulf %825, %780 : vector<8x32xf32>
    %833 = arith.addf %810, %832 : vector<8x32xf32>
    %834 = math.tanh %833 : vector<8x32xf32>
    %cst_518 = arith.constant 1.000000e+00 : f32
    %835 = vector.broadcast %cst_518 : f32 to vector<8x32xf32>
    %836 = arith.subf %835, %831 : vector<8x32xf32>
    %837 = arith.mulf %836, %834 : vector<8x32xf32>
    %838 = arith.mulf %831, %724 : vector<8x32xf32>
    %839 = arith.addf %837, %838 : vector<8x32xf32>
    %840 = arith.addf %813, %787 : vector<8x32xf32>
    %841 = arith.negf %840 : vector<8x32xf32>
    %842 = math.exp %841 : vector<8x32xf32>
    %cst_519 = arith.constant 1.000000e+00 : f32
    %843 = vector.broadcast %cst_519 : f32 to vector<8x32xf32>
    %844 = arith.addf %843, %842 : vector<8x32xf32>
    %845 = arith.divf %843, %844 : vector<8x32xf32>
    %846 = arith.addf %816, %794 : vector<8x32xf32>
    %847 = arith.negf %846 : vector<8x32xf32>
    %848 = math.exp %847 : vector<8x32xf32>
    %cst_520 = arith.constant 1.000000e+00 : f32
    %849 = vector.broadcast %cst_520 : f32 to vector<8x32xf32>
    %850 = arith.addf %849, %848 : vector<8x32xf32>
    %851 = arith.divf %849, %850 : vector<8x32xf32>
    %852 = arith.mulf %845, %801 : vector<8x32xf32>
    %853 = arith.addf %819, %852 : vector<8x32xf32>
    %854 = math.tanh %853 : vector<8x32xf32>
    %cst_521 = arith.constant 1.000000e+00 : f32
    %855 = vector.broadcast %cst_521 : f32 to vector<8x32xf32>
    %856 = arith.subf %855, %851 : vector<8x32xf32>
    %857 = arith.mulf %856, %854 : vector<8x32xf32>
    %858 = arith.mulf %851, %744 : vector<8x32xf32>
    %859 = arith.addf %857, %858 : vector<8x32xf32>
    %c0_522 = arith.constant 0 : index
    %860 = arith.index_cast %754 : i32 to index
    %c0_523 = arith.constant 0 : index
    %861 = vector.load %arg12[%c0_522, %860, %c0_523] : memref<1x64x64xf32, #tpu.memory_space<vmem>>, vector<1x8x32xf32>
    %862 = vector.shape_cast %861 : vector<1x8x32xf32> to vector<8x32xf32>
    %863 = vector.shape_cast %839 : vector<8x32xf32> to vector<1x8x32xf32>
    tpu.vector_store %arg12[%c0_522, %860, %c0_523], %863 {strides = array<i32>} : memref<1x64x64xf32, #tpu.memory_space<vmem>>, vector<1x8x32xf32>,
    %c0_524 = arith.constant 0 : index
    %864 = arith.index_cast %757 : i32 to index
    %c32_525 = arith.constant 32 : index
    %865 = vector.load %arg12[%c0_524, %864, %c32_525] : memref<1x64x64xf32, #tpu.memory_space<vmem>>, vector<1x8x32xf32>
    %866 = vector.shape_cast %865 : vector<1x8x32xf32> to vector<8x32xf32>
    %867 = vector.shape_cast %859 : vector<8x32xf32> to vector<1x8x32xf32>
    tpu.vector_store %arg12[%c0_524, %864, %c32_525], %867 {strides = array<i32>} : memref<1x64x64xf32, #tpu.memory_space<vmem>>, vector<1x8x32xf32>,
    %c7_i32_526 = arith.constant 7 : i32
    %c8_i32_527 = arith.constant 8 : i32
    %868 = arith.muli %c7_i32_526, %c8_i32_527 : i32
    %869 = tpu.assume_multiple %868, 8 : i32
    %c7_i32_528 = arith.constant 7 : i32
    %870 = arith.subi %c7_i32_528, %c7_i32_526 : i32
    %c8_i32_529 = arith.constant 8 : i32
    %871 = arith.muli %870, %c8_i32_529 : i32
    %872 = tpu.assume_multiple %871, 8 : i32
    %873 = arith.truncf %839 : vector<8x32xf32> to vector<8x32xbf16>
    %874 = arith.truncf %859 : vector<8x32xf32> to vector<8x32xbf16>
    %c0_530 = arith.constant 0 : index
    %c0_531 = arith.constant 0 : index
    %c0_532 = arith.constant 0 : index
    %875 = vector.load %arg3[%c0_530, %c0_531, %c0_532] : memref<3x32x32xbf16, #tpu.memory_space<vmem>>, vector<1x32x32xbf16>
    %876 = vector.shape_cast %875 : vector<1x32x32xbf16> to vector<32x32xbf16>
    %cst_533 = arith.constant dense<0.000000e+00> : vector<8x32xf32>
    %877 = tpu.matmul %873, %876, %cst_533 {dimension_numbers = #tpu.dot_dimension_numbers<[1], [0], [0], [1], [0, 0, 1, 1], [], []>} : vector<8x32xbf16>, vector<32x32xbf16>, vector<8x32xf32> -> vector<8x32xf32>
    %c0_534 = arith.constant 0 : index
    %c0_535 = arith.constant 0 : index
    %c0_536 = arith.constant 0 : index
    %878 = vector.load %arg5[%c0_534, %c0_535, %c0_536] : memref<3x1x32xf32, #tpu.memory_space<vmem>>, vector<1x1x32xf32>
    %879 = vector.shape_cast %878 : vector<1x1x32xf32> to vector<1x32xf32>
    %880 = vector.broadcast %879 : vector<1x32xf32> to vector<8x32xf32>
    %881 = arith.addf %877, %880 : vector<8x32xf32>
    %c1_537 = arith.constant 1 : index
    %c0_538 = arith.constant 0 : index
    %c0_539 = arith.constant 0 : index
    %882 = vector.load %arg3[%c1_537, %c0_538, %c0_539] : memref<3x32x32xbf16, #tpu.memory_space<vmem>>, vector<1x32x32xbf16>
    %883 = vector.shape_cast %882 : vector<1x32x32xbf16> to vector<32x32xbf16>
    %cst_540 = arith.constant dense<0.000000e+00> : vector<8x32xf32>
    %884 = tpu.matmul %873, %883, %cst_540 {dimension_numbers = #tpu.dot_dimension_numbers<[1], [0], [0], [1], [0, 0, 1, 1], [], []>} : vector<8x32xbf16>, vector<32x32xbf16>, vector<8x32xf32> -> vector<8x32xf32>
    %c1_541 = arith.constant 1 : index
    %c0_542 = arith.constant 0 : index
    %c0_543 = arith.constant 0 : index
    %885 = vector.load %arg5[%c1_541, %c0_542, %c0_543] : memref<3x1x32xf32, #tpu.memory_space<vmem>>, vector<1x1x32xf32>
    %886 = vector.shape_cast %885 : vector<1x1x32xf32> to vector<1x32xf32>
    %887 = vector.broadcast %886 : vector<1x32xf32> to vector<8x32xf32>
    %888 = arith.addf %884, %887 : vector<8x32xf32>
    %c2_544 = arith.constant 2 : index
    %c0_545 = arith.constant 0 : index
    %c0_546 = arith.constant 0 : index
    %889 = vector.load %arg3[%c2_544, %c0_545, %c0_546] : memref<3x32x32xbf16, #tpu.memory_space<vmem>>, vector<1x32x32xbf16>
    %890 = vector.shape_cast %889 : vector<1x32x32xbf16> to vector<32x32xbf16>
    %cst_547 = arith.constant dense<0.000000e+00> : vector<8x32xf32>
    %891 = tpu.matmul %873, %890, %cst_547 {dimension_numbers = #tpu.dot_dimension_numbers<[1], [0], [0], [1], [0, 0, 1, 1], [], []>} : vector<8x32xbf16>, vector<32x32xbf16>, vector<8x32xf32> -> vector<8x32xf32>
    %c2_548 = arith.constant 2 : index
    %c0_549 = arith.constant 0 : index
    %c0_550 = arith.constant 0 : index
    %892 = vector.load %arg5[%c2_548, %c0_549, %c0_550] : memref<3x1x32xf32, #tpu.memory_space<vmem>>, vector<1x1x32xf32>
    %893 = vector.shape_cast %892 : vector<1x1x32xf32> to vector<1x32xf32>
    %894 = vector.broadcast %893 : vector<1x32xf32> to vector<8x32xf32>
    %895 = arith.addf %891, %894 : vector<8x32xf32>
    %c0_551 = arith.constant 0 : index
    %c0_552 = arith.constant 0 : index
    %c0_553 = arith.constant 0 : index
    %896 = vector.load %arg7[%c0_551, %c0_552, %c0_553] : memref<3x32x32xbf16, #tpu.memory_space<vmem>>, vector<1x32x32xbf16>
    %897 = vector.shape_cast %896 : vector<1x32x32xbf16> to vector<32x32xbf16>
    %cst_554 = arith.constant dense<0.000000e+00> : vector<8x32xf32>
    %898 = tpu.matmul %874, %897, %cst_554 {dimension_numbers = #tpu.dot_dimension_numbers<[1], [0], [0], [1], [0, 0, 1, 1], [], []>} : vector<8x32xbf16>, vector<32x32xbf16>, vector<8x32xf32> -> vector<8x32xf32>
    %c0_555 = arith.constant 0 : index
    %c0_556 = arith.constant 0 : index
    %c0_557 = arith.constant 0 : index
    %899 = vector.load %arg9[%c0_555, %c0_556, %c0_557] : memref<3x1x32xf32, #tpu.memory_space<vmem>>, vector<1x1x32xf32>
    %900 = vector.shape_cast %899 : vector<1x1x32xf32> to vector<1x32xf32>
    %901 = vector.broadcast %900 : vector<1x32xf32> to vector<8x32xf32>
    %902 = arith.addf %898, %901 : vector<8x32xf32>
    %c1_558 = arith.constant 1 : index
    %c0_559 = arith.constant 0 : index
    %c0_560 = arith.constant 0 : index
    %903 = vector.load %arg7[%c1_558, %c0_559, %c0_560] : memref<3x32x32xbf16, #tpu.memory_space<vmem>>, vector<1x32x32xbf16>
    %904 = vector.shape_cast %903 : vector<1x32x32xbf16> to vector<32x32xbf16>
    %cst_561 = arith.constant dense<0.000000e+00> : vector<8x32xf32>
    %905 = tpu.matmul %874, %904, %cst_561 {dimension_numbers = #tpu.dot_dimension_numbers<[1], [0], [0], [1], [0, 0, 1, 1], [], []>} : vector<8x32xbf16>, vector<32x32xbf16>, vector<8x32xf32> -> vector<8x32xf32>
    %c1_562 = arith.constant 1 : index
    %c0_563 = arith.constant 0 : index
    %c0_564 = arith.constant 0 : index
    %906 = vector.load %arg9[%c1_562, %c0_563, %c0_564] : memref<3x1x32xf32, #tpu.memory_space<vmem>>, vector<1x1x32xf32>
    %907 = vector.shape_cast %906 : vector<1x1x32xf32> to vector<1x32xf32>
    %908 = vector.broadcast %907 : vector<1x32xf32> to vector<8x32xf32>
    %909 = arith.addf %905, %908 : vector<8x32xf32>
    %c2_565 = arith.constant 2 : index
    %c0_566 = arith.constant 0 : index
    %c0_567 = arith.constant 0 : index
    %910 = vector.load %arg7[%c2_565, %c0_566, %c0_567] : memref<3x32x32xbf16, #tpu.memory_space<vmem>>, vector<1x32x32xbf16>
    %911 = vector.shape_cast %910 : vector<1x32x32xbf16> to vector<32x32xbf16>
    %cst_568 = arith.constant dense<0.000000e+00> : vector<8x32xf32>
    %912 = tpu.matmul %874, %911, %cst_568 {dimension_numbers = #tpu.dot_dimension_numbers<[1], [0], [0], [1], [0, 0, 1, 1], [], []>} : vector<8x32xbf16>, vector<32x32xbf16>, vector<8x32xf32> -> vector<8x32xf32>
    %c2_569 = arith.constant 2 : index
    %c0_570 = arith.constant 0 : index
    %c0_571 = arith.constant 0 : index
    %913 = vector.load %arg9[%c2_569, %c0_570, %c0_571] : memref<3x1x32xf32, #tpu.memory_space<vmem>>, vector<1x1x32xf32>
    %914 = vector.shape_cast %913 : vector<1x1x32xf32> to vector<1x32xf32>
    %915 = vector.broadcast %914 : vector<1x32xf32> to vector<8x32xf32>
    %916 = arith.addf %912, %915 : vector<8x32xf32>
    %c0_572 = arith.constant 0 : index
    %917 = arith.index_cast %869 : i32 to index
    %c0_573 = arith.constant 0 : index
    %918 = vector.load %arg14[%c0_572, %917, %c0_573] : memref<3x64x32xf32, #tpu.memory_space<vmem>>, vector<1x8x32xf32>
    %919 = vector.shape_cast %918 : vector<1x8x32xf32> to vector<8x32xf32>
    %c1_574 = arith.constant 1 : index
    %920 = arith.index_cast %869 : i32 to index
    %c0_575 = arith.constant 0 : index
    %921 = vector.load %arg14[%c1_574, %920, %c0_575] : memref<3x64x32xf32, #tpu.memory_space<vmem>>, vector<1x8x32xf32>
    %922 = vector.shape_cast %921 : vector<1x8x32xf32> to vector<8x32xf32>
    %c2_576 = arith.constant 2 : index
    %923 = arith.index_cast %869 : i32 to index
    %c0_577 = arith.constant 0 : index
    %924 = vector.load %arg14[%c2_576, %923, %c0_577] : memref<3x64x32xf32, #tpu.memory_space<vmem>>, vector<1x8x32xf32>
    %925 = vector.shape_cast %924 : vector<1x8x32xf32> to vector<8x32xf32>
    %c0_578 = arith.constant 0 : index
    %926 = arith.index_cast %872 : i32 to index
    %c0_579 = arith.constant 0 : index
    %927 = vector.load %arg15[%c0_578, %926, %c0_579] : memref<3x64x32xf32, #tpu.memory_space<vmem>>, vector<1x8x32xf32>
    %928 = vector.shape_cast %927 : vector<1x8x32xf32> to vector<8x32xf32>
    %c1_580 = arith.constant 1 : index
    %929 = arith.index_cast %872 : i32 to index
    %c0_581 = arith.constant 0 : index
    %930 = vector.load %arg15[%c1_580, %929, %c0_581] : memref<3x64x32xf32, #tpu.memory_space<vmem>>, vector<1x8x32xf32>
    %931 = vector.shape_cast %930 : vector<1x8x32xf32> to vector<8x32xf32>
    %c2_582 = arith.constant 2 : index
    %932 = arith.index_cast %872 : i32 to index
    %c0_583 = arith.constant 0 : index
    %933 = vector.load %arg15[%c2_582, %932, %c0_583] : memref<3x64x32xf32, #tpu.memory_space<vmem>>, vector<1x8x32xf32>
    %934 = vector.shape_cast %933 : vector<1x8x32xf32> to vector<8x32xf32>
    %935 = arith.addf %919, %881 : vector<8x32xf32>
    %936 = arith.negf %935 : vector<8x32xf32>
    %937 = math.exp %936 : vector<8x32xf32>
    %cst_584 = arith.constant 1.000000e+00 : f32
    %938 = vector.broadcast %cst_584 : f32 to vector<8x32xf32>
    %939 = arith.addf %938, %937 : vector<8x32xf32>
    %940 = arith.divf %938, %939 : vector<8x32xf32>
    %941 = arith.addf %922, %888 : vector<8x32xf32>
    %942 = arith.negf %941 : vector<8x32xf32>
    %943 = math.exp %942 : vector<8x32xf32>
    %cst_585 = arith.constant 1.000000e+00 : f32
    %944 = vector.broadcast %cst_585 : f32 to vector<8x32xf32>
    %945 = arith.addf %944, %943 : vector<8x32xf32>
    %946 = arith.divf %944, %945 : vector<8x32xf32>
    %947 = arith.mulf %940, %895 : vector<8x32xf32>
    %948 = arith.addf %925, %947 : vector<8x32xf32>
    %949 = math.tanh %948 : vector<8x32xf32>
    %cst_586 = arith.constant 1.000000e+00 : f32
    %950 = vector.broadcast %cst_586 : f32 to vector<8x32xf32>
    %951 = arith.subf %950, %946 : vector<8x32xf32>
    %952 = arith.mulf %951, %949 : vector<8x32xf32>
    %953 = arith.mulf %946, %839 : vector<8x32xf32>
    %954 = arith.addf %952, %953 : vector<8x32xf32>
    %955 = arith.addf %928, %902 : vector<8x32xf32>
    %956 = arith.negf %955 : vector<8x32xf32>
    %957 = math.exp %956 : vector<8x32xf32>
    %cst_587 = arith.constant 1.000000e+00 : f32
    %958 = vector.broadcast %cst_587 : f32 to vector<8x32xf32>
    %959 = arith.addf %958, %957 : vector<8x32xf32>
    %960 = arith.divf %958, %959 : vector<8x32xf32>
    %961 = arith.addf %931, %909 : vector<8x32xf32>
    %962 = arith.negf %961 : vector<8x32xf32>
    %963 = math.exp %962 : vector<8x32xf32>
    %cst_588 = arith.constant 1.000000e+00 : f32
    %964 = vector.broadcast %cst_588 : f32 to vector<8x32xf32>
    %965 = arith.addf %964, %963 : vector<8x32xf32>
    %966 = arith.divf %964, %965 : vector<8x32xf32>
    %967 = arith.mulf %960, %916 : vector<8x32xf32>
    %968 = arith.addf %934, %967 : vector<8x32xf32>
    %969 = math.tanh %968 : vector<8x32xf32>
    %cst_589 = arith.constant 1.000000e+00 : f32
    %970 = vector.broadcast %cst_589 : f32 to vector<8x32xf32>
    %971 = arith.subf %970, %966 : vector<8x32xf32>
    %972 = arith.mulf %971, %969 : vector<8x32xf32>
    %973 = arith.mulf %966, %859 : vector<8x32xf32>
    %974 = arith.addf %972, %973 : vector<8x32xf32>
    %c0_590 = arith.constant 0 : index
    %975 = arith.index_cast %869 : i32 to index
    %c0_591 = arith.constant 0 : index
    %976 = vector.load %arg12[%c0_590, %975, %c0_591] : memref<1x64x64xf32, #tpu.memory_space<vmem>>, vector<1x8x32xf32>
    %977 = vector.shape_cast %976 : vector<1x8x32xf32> to vector<8x32xf32>
    %978 = vector.shape_cast %954 : vector<8x32xf32> to vector<1x8x32xf32>
    tpu.vector_store %arg12[%c0_590, %975, %c0_591], %978 {strides = array<i32>} : memref<1x64x64xf32, #tpu.memory_space<vmem>>, vector<1x8x32xf32>,
    %c0_592 = arith.constant 0 : index
    %979 = arith.index_cast %872 : i32 to index
    %c32_593 = arith.constant 32 : index
    %980 = vector.load %arg12[%c0_592, %979, %c32_593] : memref<1x64x64xf32, #tpu.memory_space<vmem>>, vector<1x8x32xf32>
    %981 = vector.shape_cast %980 : vector<1x8x32xf32> to vector<8x32xf32>
    %982 = vector.shape_cast %974 : vector<8x32xf32> to vector<1x8x32xf32>
    tpu.vector_store %arg12[%c0_592, %979, %c32_593], %982 {strides = array<i32>} : memref<1x64x64xf32, #tpu.memory_space<vmem>>, vector<1x8x32xf32>,
    %c8_i32_594 = arith.constant 8 : i32
    %983 = tpu.concatenate %974, %954 in 1 : vector<8x32xf32>, vector<8x32xf32> -> vector<8x64xf32>
    %984 = arith.truncf %983 : vector<8x64xf32> to vector<8x64xbf16>
    %c0_595 = arith.constant 0 : index
    %c0_596 = arith.constant 0 : index
    %985 = vector.load %arg10[%c0_595, %c0_596] : memref<64x32xbf16, #tpu.memory_space<vmem>>, vector<64x32xbf16>
    %cst_597 = arith.constant dense<0.000000e+00> : vector<8x32xf32>
    %986 = tpu.matmul %984, %985, %cst_597 {dimension_numbers = #tpu.dot_dimension_numbers<[1], [0], [0], [1], [0, 0, 1, 1], [], []>} : vector<8x64xbf16>, vector<64x32xbf16>, vector<8x32xf32> -> vector<8x32xf32>
    %c0_598 = arith.constant 0 : index
    %c0_599 = arith.constant 0 : index
    %987 = vector.load %arg11[%c0_598, %c0_599] : memref<1x32xf32, #tpu.memory_space<vmem>>, vector<1x32xf32>
    %988 = vector.broadcast %987 : vector<1x32xf32> to vector<8x32xf32>
    %989 = arith.addf %986, %988 : vector<8x32xf32>
    %990 = math.tanh %989 : vector<8x32xf32>
    %c0_600 = arith.constant 0 : index
    %c0_601 = arith.constant 0 : index
    %c0_602 = arith.constant 0 : index
    %991 = vector.load %arg13[%c0_600, %c0_601, %c0_602] : memref<1x8x32xf32, #tpu.memory_space<vmem>>, vector<1x8x32xf32>
    %992 = vector.shape_cast %991 : vector<1x8x32xf32> to vector<8x32xf32>
    %993 = vector.shape_cast %990 : vector<8x32xf32> to vector<1x8x32xf32>
    tpu.vector_store %arg13[%c0_600, %c0_601, %c0_602], %993 {strides = array<i32>} : memref<1x8x32xf32, #tpu.memory_space<vmem>>, vector<1x8x32xf32>,
    return
  }
  func.func @transform_0(%arg0: i32) -> (i32, i32, i32) {
    %c0_i32 = arith.constant 0 : i32
    %c0_i32_0 = arith.constant 0 : i32
    %c0_i32_1 = arith.constant 0 : i32
    return %arg0, %c0_i32, %c0_i32_0 : i32, i32, i32
  }
  func.func @transform_1(%arg0: i32) -> (i32, i32, i32) {
    %c0_i32 = arith.constant 0 : i32
    %c0_i32_0 = arith.constant 0 : i32
    %c0_i32_1 = arith.constant 0 : i32
    %c0_i32_2 = arith.constant 0 : i32
    return %c0_i32, %c0_i32_0, %c0_i32_1 : i32, i32, i32
  }
  func.func @transform_2(%arg0: i32) -> (i32, i32, i32) {
    %c0_i32 = arith.constant 0 : i32
    %c0_i32_0 = arith.constant 0 : i32
    %c0_i32_1 = arith.constant 0 : i32
    %c0_i32_2 = arith.constant 0 : i32
    return %c0_i32, %c0_i32_0, %c0_i32_1 : i32, i32, i32
  }
  func.func @transform_3(%arg0: i32) -> (i32, i32, i32) {
    %c0_i32 = arith.constant 0 : i32
    %c0_i32_0 = arith.constant 0 : i32
    %c0_i32_1 = arith.constant 0 : i32
    %c0_i32_2 = arith.constant 0 : i32
    return %c0_i32, %c0_i32_0, %c0_i32_1 : i32, i32, i32
  }
  func.func @transform_4(%arg0: i32) -> (i32, i32, i32) {
    %c0_i32 = arith.constant 0 : i32
    %c0_i32_0 = arith.constant 0 : i32
    %c0_i32_1 = arith.constant 0 : i32
    %c0_i32_2 = arith.constant 0 : i32
    return %c0_i32, %c0_i32_0, %c0_i32_1 : i32, i32, i32
  }
  func.func @transform_5(%arg0: i32) -> (i32, i32, i32) {
    %c0_i32 = arith.constant 0 : i32
    %c0_i32_0 = arith.constant 0 : i32
    %c0_i32_1 = arith.constant 0 : i32
    %c0_i32_2 = arith.constant 0 : i32
    return %c0_i32, %c0_i32_0, %c0_i32_1 : i32, i32, i32
  }
  func.func @transform_6(%arg0: i32) -> (i32, i32, i32) {
    %c0_i32 = arith.constant 0 : i32
    %c0_i32_0 = arith.constant 0 : i32
    %c0_i32_1 = arith.constant 0 : i32
    %c0_i32_2 = arith.constant 0 : i32
    return %c0_i32, %c0_i32_0, %c0_i32_1 : i32, i32, i32
  }
  func.func @transform_7(%arg0: i32) -> (i32, i32, i32) {
    %c0_i32 = arith.constant 0 : i32
    %c0_i32_0 = arith.constant 0 : i32
    %c0_i32_1 = arith.constant 0 : i32
    %c0_i32_2 = arith.constant 0 : i32
    return %c0_i32, %c0_i32_0, %c0_i32_1 : i32, i32, i32
  }
  func.func @transform_8(%arg0: i32) -> (i32, i32, i32) {
    %c0_i32 = arith.constant 0 : i32
    %c0_i32_0 = arith.constant 0 : i32
    %c0_i32_1 = arith.constant 0 : i32
    %c0_i32_2 = arith.constant 0 : i32
    return %c0_i32, %c0_i32_0, %c0_i32_1 : i32, i32, i32
  }
  func.func @transform_9(%arg0: i32) -> (i32, i32) {
    %c0_i32 = arith.constant 0 : i32
    %c0_i32_0 = arith.constant 0 : i32
    %c0_i32_1 = arith.constant 0 : i32
    return %c0_i32, %c0_i32_0 : i32, i32
  }
  func.func @transform_10(%arg0: i32) -> (i32, i32) {
    %c0_i32 = arith.constant 0 : i32
    %c0_i32_0 = arith.constant 0 : i32
    %c0_i32_1 = arith.constant 0 : i32
    return %c0_i32, %c0_i32_0 : i32, i32
  }
  func.func @transform_11(%arg0: i32) -> (i32, i32, i32) {
    %c0_i32 = arith.constant 0 : i32
    %c0_i32_0 = arith.constant 0 : i32
    %c0_i32_1 = arith.constant 0 : i32
    return %arg0, %c0_i32, %c0_i32_0 : i32, i32, i32
  }
  func.func @transform_12(%arg0: i32) -> (i32, i32, i32) {
    %c0_i32 = arith.constant 0 : i32
    %c0_i32_0 = arith.constant 0 : i32
    %c0_i32_1 = arith.constant 0 : i32
    return %arg0, %c0_i32, %c0_i32_0 : i32, i32, i32
  }
}

</mosaic_0001>

<bundles_post_ra>
// kernel: tpu_custom_call.1
= control target key start
LH: loop header
LB: loop body
LE: loop exit
PB: predicated region body
PF: predicated region fallthrough
CT: control target
= control target key end

     0   :  { %18 = vsyncpa [#allocation5], 0  ;;  %s6833_s0 = inlined_call_operand.vmem [shape: bf16[1,64,32], index: 0, kind: input, shape index: {}]   ;;  %s6834_s1 = inlined_call_operand.vmem [shape: bf16[3,32,32], index: 1, kind: input, shape index: {}]   ;;  %s6835_s2 = inlined_call_operand.vmem [shape: bf16[3,32,32], index: 2, kind: input, shape index: {}]   ;;  %s6836_s3 = inlined_call_operand.hbm [shape: f32[3,1,32], index: 3, kind: input, shape index: {}]   ;;  %s6837_s4 = inlined_call_operand.hbm [shape: f32[3,1,32], index: 4, kind: input, shape index: {}]   ;;  %s6838_s5 = inlined_call_operand.hbm [shape: bf16[3,32,32], index: 5, kind: input, shape index: {}]   ;;  %s6839_s6 = inlined_call_operand.hbm [shape: bf16[3,32,32], index: 6, kind: input, shape index: {}]   ;;  %s6840_s7 = inlined_call_operand.vmem [shape: f32[3,1,32], index: 7, kind: input, shape index: {}]   ;;  %s6841_s8 = inlined_call_operand.vmem [shape: f32[3,1,32], index: 8, kind: input, shape index: {}]   ;;  %s6842_s9 = inlined_call_operand.vmem [shape: bf16[64,32], index: 9, kind: input, shape index: {}]   ;;  %s6843_s10 = inlined_call_operand.vmem [shape: f32[1,32], index: 10, kind: input, shape index: {}]   ;;  %s6844_s11 = inlined_call_operand.hbm [shape: f32[1,64,64], index: 11, kind: output, shape index: {0}]   ;;  %s6845_s12 = inlined_call_operand.hbm [shape: f32[1,8,32], index: 12, kind: output, shape index: {1}]  }
   0x1   :  { %19 = vsyncpa [#allocation8], 0 }
   0x2   :  { %20 = vsyncpa [#allocation11], 0 }
   0x3   :  { %21 = vsyncpa [#allocation6], 0 }
   0x4   :  { %22 = vsyncpa [#allocation14], 0  ;;  %s5929_s21 = smov [#allocation7]   ;;  %s5930_s23 = smov [#allocation4]  }
   0x5   :  { %s46_s22 = sshll.u32 %s5929_s21, 4  ;;  %s34_s24 = sshll.u32 %s5930_s23, 4  ;;  %s47_s22 = int_to_ptr.vmem [resolvable:$true] %s46_s22  ;;  %s6010_s24 = int_to_ptr.vmem [resolvable:$true] %s34_s24 }
   0x6   :  { %s5787_s27 = scalar_lea.hbm %s6837_s4, 48 }
   0x7   :  { %p5788_p0 = scmp.ne.s32.totalorder %s6837_s4, %s5787_s27  ;;  %p5791_p1 = scmp.lt.u32.totalorder %s5787_s27, %s6837_s4 }
   0x9   :  { %p5793_p2 = pnand %p5791_p1, %p5788_p0 }
   0xb   :  { %5796 = shalt.err (!%p5793_p2)
}
   0xc   :  { %s5797_s14 = scalar_lea.vmem %s47_s22, 48  ;;  %s5801_s15 = scalar_lea.vmem %s47_s22, 64 }
   0xd   :  { %p5798_p3 = scmp.ne.s32.totalorder %s47_s22, %s5797_s14  ;;  %p5802_p4 = scmp.lt.s32.totalorder %s47_s22, %s47_s22 }
   0xe   :  { %p5803_p5 = scmp.lt.s32.totalorder %s5801_s15, %s5797_s14 }
  0x10   :  { %p5804_p6 = por %p5803_p5, %p5802_p4 }
  0x12   :  { %p5805_p7 = pnand %p5804_p6, %p5798_p3 }
  0x14   :  { %5808 = shalt.err (!%p5805_p7)
}
  0x15   :  { %s5931_s16 = smov 16   ;;  %s5932_s17 = smov 1  }
  0x16   :  { %52 = dma.hbm_to_vmem [thread:$0]  %s6837_s4, 48, %s47_s22, [#allocation8], %s5931_s16, %s5931_s16, %s5932_s17  }
  0x17   :  { %s5809_s23 = scalar_lea.hbm %s6836_s3, 48 }
  0x18   :  { %p5810_p8 = scmp.ne.s32.totalorder %s6836_s3, %s5809_s23  ;;  %p5813_p9 = scmp.lt.u32.totalorder %s5809_s23, %s6836_s3 }
  0x1a   :  { %p5815_p10 = pnand %p5813_p9, %p5810_p8 }
  0x1c   :  { %5818 = shalt.err (!%p5815_p10)
}
  0x1d   :  { %s5819_s29 = scalar_lea.vmem %s6010_s24, 48  ;;  %s5823_s4 = scalar_lea.vmem %s6010_s24, 64 }
  0x1e   :  { %p5820_p11 = scmp.ne.s32.totalorder %s6010_s24, %s5819_s29  ;;  %p5824_p12 = scmp.lt.s32.totalorder %s6010_s24, %s6010_s24 }
  0x1f   :  { %p5825_p13 = scmp.lt.s32.totalorder %s5823_s4, %s5819_s29 }
  0x21   :  { %p5826_p0 = por %p5825_p13, %p5824_p12 }
  0x23   :  { %p5827_p1 = pnand %p5826_p0, %p5820_p11 }
  0x25   :  { %5830 = shalt.err (!%p5827_p1)
}
  0x26   :  { %40 = dma.hbm_to_vmem [thread:$0]  %s6836_s3, 48, %s6010_s24, [#allocation5], %s5931_s16, %s5931_s16, %s5932_s17  }
  0x27   :  { %s5933_s13 = smov [#allocation9]   ;;  %s5831_s19 = scalar_lea.hbm %s6838_s5, 768 }
  0x28   :  { %s58_s14 = sshll.u32 %s5933_s13, 4  ;;  %p5832_p2 = scmp.ne.s32.totalorder %s6838_s5, %s5831_s19  ;;  %s59_s14 = int_to_ptr.vmem [resolvable:$true] %s58_s14 }
  0x29   :  { %p5835_p3 = scmp.lt.u32.totalorder %s5831_s19, %s6838_s5 }
  0x2b   :  { %p5837_p4 = pnand %p5835_p3, %p5832_p2 }
  0x2d   :  { %5840 = shalt.err (!%p5837_p4)
}
  0x2e   :  { %s5841_s26 = scalar_lea.vmem %s59_s14, 768  ;;  %p5846_p6 = scmp.lt.s32.totalorder %s59_s14, %s59_s14 }
  0x2f   :  { %p5842_p5 = scmp.ne.s32.totalorder %s59_s14, %s5841_s26  ;;  %p5847_p7 = scmp.lt.s32.totalorder %s5841_s26, %s5841_s26 }
  0x31   :  { %p5848_p8 = por %p5847_p7, %p5846_p6 }
  0x33   :  { %p5849_p9 = pnand %p5848_p8, %p5842_p5 }
  0x35   :  { %5852 = shalt.err (!%p5849_p9)
}
  0x36   :  { %s5934_s3 = smov 64   ;;  %s5935_s24 = smov 4  }
  0x37   :  { %64 = dma.hbm_to_vmem [thread:$0]  %s6838_s5, 768, %s59_s14, [#allocation8], %s5934_s3, %s5934_s3, %s5935_s24  }
  0x38   :  { %s5936_s27 = smov [#allocation10]   ;;  %s5853_s22 = scalar_lea.hbm %s6839_s6, 768 }
  0x39   :  { %s70_s28 = sshll.u32 %s5936_s27, 4  ;;  %p5854_p10 = scmp.ne.s32.totalorder %s6839_s6, %s5853_s22  ;;  %s71_s28 = int_to_ptr.vmem [resolvable:$true] %s70_s28 }
  0x3a   :  { %p5857_p11 = scmp.lt.u32.totalorder %s5853_s22, %s6839_s6 }
  0x3c   :  { %p5859_p12 = pnand %p5857_p11, %p5854_p10 }
  0x3e   :  { %5862 = shalt.err (!%p5859_p12)
}
  0x3f   :  { %s5863_s19 = scalar_lea.vmem %s71_s28, 768  ;;  %p5868_p0 = scmp.lt.s32.totalorder %s71_s28, %s71_s28 }
  0x40   :  { %p5864_p13 = scmp.ne.s32.totalorder %s71_s28, %s5863_s19  ;;  %p5869_p1 = scmp.lt.s32.totalorder %s5863_s19, %s5863_s19 }
  0x42   :  { %p5870_p2 = por %p5869_p1, %p5868_p0 }
  0x44   :  { %p5871_p3 = pnand %p5870_p2, %p5864_p13 }
  0x46   :  { %5874 = shalt.err (!%p5871_p3)
}
  0x47   :  { %76 = dma.hbm_to_vmem [thread:$0]  %s6839_s6, 768, %s71_s28, [#allocation11], %s5934_s3, %s5934_s3, %s5935_s24  }
  0x48   :  { %5919 = dma.done.wait [#allocation5], 48  }
  0x49   :  { %5920 = vsyncadd [#allocation5], 4294967248 }
  0x4a   :  { %5921 = dma.done.wait [#allocation8], 816  }
  0x4b   :  { %5922 = vsyncadd [#allocation8], 4294966480 }
  0x4c   :  { %5923 = dma.done.wait [#allocation11], 768  }
  0x4d   :  { %5924 = vsyncadd [#allocation11], 4294966528  ;;  %v5509_v0 = vld [vmem:[%s6834_s1] sm:$0xff]   ;;  %v5510_v1 = vld [vmem:[%s6834_s1 + $0x8] sm:$0xff]   ;;  %vm149_vm0 = vcmask 261120   ;;  %v5937_v15 = vmov 0.0  }
  0x4e   :  { %5021 = vmatprep.subr.bf16.mxu0 %v5509_v0  ;;  %5489 = vmatprep.subr.bf16.mxu1 %v5509_v0  ;;  %v6075_v2 = vld [vmem:[%s6833_s0] sm:$0xff]   ;;  %v6080_v3 = vld [vmem:[%s6833_s0 + $0x10] sm:$0xff]   ;;  %v6085_v4 = vld [vmem:[%s6833_s0 + $0x8] sm:$0xff]   ;;  %vm5938_vm1 = vmmov 0   ;;  %v5939_v23 = vmov 0   ;;  %s5940_s18 = smov 32  }
  0x4f   :  { %5022 = vmatpush3.bf16.msra.mxu0 %v5509_v0  ;;  %5491 = vmatpush3.bf16.msra.mxu1 %v5509_v0  ;;  %v6094_v5 = vld [vmem:[%s6833_s0 + $0x18] sm:$0xff]   ;;  %v5515_v6 = vld [vmem:[#allocation9] sm:$0xff]   ;;  %v5516_v7 = vld [vmem:[%s6834_s1 + $0x10] sm:$0xff]   ;;  %vm1179_vm2 = vcmask 523520   ;;  %vm4365_vm3 = vcmask 523264  }
  0x50   :  { %5023 = vmatprep.subr.bf16.mxu0 %v5510_v1  ;;  %5490 = vmatprep.subr.bf16.mxu1 %v5510_v1  ;;  %v5517_v8 = vld [vmem:[#allocation9 + $0x8] sm:$0xff]   ;;  %v5518_v9 = vld [vmem:[%s6834_s1 + $0x18] sm:$0xff]   ;;  %v5520_v11 = vld [vmem:[%s6834_s1 + $0x20] sm:$0xff]  }
  0x51   :  { %5025 = vmatprep.mubr.msk.bf16.mxu0 %vm149_vm0, %v6075_v2  ;;  %5029 = vmatprep.mubr.msk.bf16.mxu1 %vm149_vm0, %v6080_v3  ;;  %v5519_v10 = vld [vmem:[#allocation9 + $0x10] sm:$0xff]   ;;  %v5521_v12 = vld [vmem:[#allocation9 + $0x18] sm:$0xff]   ;;  %v5522_v13 = vld [vmem:[%s6834_s1 + $0x28] sm:$0xff]  }
  0x52   :  { %v5523_v14 = vld [vmem:[#allocation9 + $0x20] sm:$0xff]   ;;  %v5524_v16 = vld [vmem:[%s6835_s2] sm:$0xff]   ;;  %v5525_v17 = vld [vmem:[#allocation9 + $0x28] sm:$0xff]  }
  0x53   :  { %5024 = vmatpush3.bf16.msra.mxu0 %v5510_v1  ;;  %5492 = vmatpush3.bf16.msra.mxu1 %v5510_v1  ;;  %v5526_v18 = vld [vmem:[%s6835_s2 + $0x8] sm:$0xff]   ;;  %v5527_v19 = vld [vmem:[%s6835_s2 + $0x10] sm:$0xff]   ;;  %v5528_v20 = vld [vmem:[%s6835_s2 + $0x20] sm:$0xff]  }
  0x54   :  { %5033 = vmatprep.subr.bf16.mxu1 %v5515_v6  ;;  %5045 = vmatprep.subr.bf16.mxu0 %v5516_v7  ;;  %v5529_v21 = vld [vmem:[%s6835_s2 + $0x28] sm:$0xff]   ;;  %v5530_v22 = vld [vmem:[%s6835_s2 + $0x18] sm:$0xff]   ;;  %v5532_v25 = vld [vmem:[#allocation10 + $0x18] sm:$0xff]  }
  0x55   :  { %v5531_v24 = vld [vmem:[#allocation10 + $0x10] sm:$0xff]   ;;  %v5533_v26 = vld [vmem:[#allocation10] sm:$0xff]   ;;  %v5534_v27 = vld [vmem:[#allocation10 + $0x8] sm:$0xff]  }
  0x56   :  { %5026 = vmatmul.mubr.msk.bf16.vlgmr.msra.gmra.mrb[0].mxu0 %vm149_vm0, %v6085_v4  ;;  %5030 = vmatmul.mubr.msk.bf16.vlgmr.msra.gmra.mrb[0].mxu1 %vm149_vm0, %v6094_v5  ;;  %v5535_v28 = vld [vmem:[#allocation10 + $0x20] sm:$0xff]   ;;  %v5536_v29 = vld [vmem:[#allocation10 + $0x28] sm:$0xff]   ;;  %v5538_v31 = vld [vmem:[%s6835_s2 + $0x10] sm:$0xff]  }
  0x57   :  { %5034 = vmatpush3.bf16.msra.mxu1 %v5515_v6  ;;  %5046 = vmatpush3.bf16.msra.mxu0 %v5516_v7  ;;  %v5537_v30 = vld [vmem:[%s6835_s2] sm:$0xff]   ;;  %v5539_v32 = vld [vmem:[%s6835_s2 + $0x8] sm:$0xff]   ;;  %v5540_v33 = vld [vmem:[%s6835_s2 + $0x18] sm:$0xff]  }
  0x58   :  { %5035 = vmatprep.subr.bf16.mxu1 %v5517_v8  ;;  %5047 = vmatprep.subr.bf16.mxu0 %v5518_v9  ;;  %v4476_v34 = vld [vmem:[#allocation4] ss:$0 sm:$0xff]  ;;  %v4498_v52 = vld [vmem:[#allocation4 + $0x1] ss:$0 sm:$0xff] }
  0x59   :  { %5037 = vmatprep.mubr.msk.bf16.mxu1 %vm149_vm0, %v6075_v2  ;;  %5049 = vmatprep.mubr.msk.bf16.mxu0 %vm149_vm0, %v6075_v2  ;;  %v4487_v51 = vld [vmem:[%s6840_s7] ss:$0 sm:$0xff] }
  0x5b   :  { %5036 = vmatpush3.bf16.msra.mxu1 %v5517_v8  ;;  %5048 = vmatpush3.bf16.msra.mxu0 %v5518_v9 }
  0x5c   :  { %5057 = vmatprep.subr.bf16.mxu1 %v5519_v10  ;;  %5069 = vmatprep.subr.bf16.mxu0 %v5520_v11 }
  0x5e   :  { %5038 = vmatmul.mubr.msk.bf16.vlgmr.msra.gmra.mrb[4].mxu1 %vm149_vm0, %v6085_v4  ;;  %5050 = vmatmul.mubr.msk.bf16.vlgmr.msra.gmra.mrb[4].mxu0 %vm149_vm0, %v6085_v4 }
  0x5f   :  { %5058 = vmatpush3.bf16.msra.mxu1 %v5519_v10  ;;  %5070 = vmatpush3.bf16.msra.mxu0 %v5520_v11 }
  0x60   :  { %5041 = vmatprep.mubr.msk.bf16.mxu1 %vm149_vm0, %v6080_v3  ;;  %5053 = vmatprep.mubr.msk.bf16.mxu0 %vm149_vm0, %v6080_v3 }
  0x61   :  { %5059 = vmatprep.subr.bf16.mxu1 %v5521_v12  ;;  %5071 = vmatprep.subr.bf16.mxu0 %v5522_v13 }
  0x63   :  { %5060 = vmatpush3.bf16.msra.mxu1 %v5521_v12  ;;  %5072 = vmatpush3.bf16.msra.mxu0 %v5522_v13 }
  0x64   :  { %5081 = vmatprep.subr.bf16.mxu1 %v5523_v14  ;;  %5093 = vmatprep.subr.bf16.mxu0 %v5937_v15 }
  0x66   :  { %5042 = vmatmul.mubr.msk.bf16.gmra.mrb[8].mxu1 %vm149_vm0, %v6094_v5  ;;  %5054 = vmatmul.mubr.msk.bf16.gmra.mrb[8].mxu0 %vm149_vm0, %v6094_v5 }
  0x67   :  { %5061 = vmatprep.mubr.msk.bf16.mxu1 %vm149_vm0, %v6075_v2  ;;  %5073 = vmatprep.mubr.msk.bf16.mxu0 %vm149_vm0, %v6075_v2 }
  0x6e   :  { %5062 = vmatmul.mubr.msk.bf16.vlgmr.msra.gmra.mrb[12].mxu1 %vm149_vm0, %v6085_v4  ;;  %5074 = vmatmul.mubr.msk.bf16.vlgmr.msra.gmra.mrb[12].mxu0 %vm149_vm0, %v6085_v4 }
  0x6f   :  { %5082 = vmatpush3.bf16.msra.mxu1 %v5523_v14  ;;  %5094 = vmatpush3.bf16.msra.mxu0 %v5524_v16 }
  0x70   :  { %5065 = vmatprep.mubr.msk.bf16.mxu1 %vm149_vm0, %v6080_v3  ;;  %5077 = vmatprep.mubr.msk.bf16.mxu0 %vm149_vm0, %v6080_v3 }
  0x71   :  { %5083 = vmatprep.subr.bf16.mxu1 %v5525_v17  ;;  %5095 = vmatprep.subr.bf16.mxu0 %v5937_v15 }
  0x73   :  { %5084 = vmatpush3.bf16.msra.mxu1 %v5525_v17  ;;  %5096 = vmatpush3.bf16.msra.mxu0 %v5526_v18 }
  0x74   :  { %5101 = vmatprep.subr.bf16.mxu1 %v5937_v15  ;;  %5109 = vmatprep.subr.bf16.mxu0 %v5937_v15 }
  0x76   :  { %5066 = vmatmul.mubr.msk.bf16.gmra.mrb[16].mxu1 %vm149_vm0, %v6094_v5  ;;  %5078 = vmatmul.mubr.msk.bf16.gmra.mrb[16].mxu0 %vm149_vm0, %v6094_v5 }
  0x77   :  { %5085 = vmatprep.mubr.msk.bf16.mxu1 %vm149_vm0, %v6075_v2  ;;  %5097 = vmatprep.mubr.msk.bf16.mxu0 %vm5938_vm1, %v5937_v15 }
  0x7e   :  { %5086 = vmatmul.mubr.msk.bf16.vlgmr.msra.gmra.mrb[20].mxu1 %vm149_vm0, %v6085_v4  ;;  %5098 = vmatmul.mubr.bf16.vlgmr.msra.gmra.mrb[20].mxu0 %v5939_v23 }
  0x7f   :  { %5102 = vmatpush3.bf16.msra.mxu1 %v5527_v19  ;;  %5110 = vmatpush3.bf16.msra.mxu0 %v5528_v20 }
  0x80   :  { %5111 = vmatprep.subr.bf16.mxu0 %v5937_v15  ;;  %5089 = vmatprep.mubr.msk.bf16.mxu1 %vm149_vm0, %v6080_v3 }
  0x81   :  { %5113 = vmatprep.mubr.msk.bf16.mxu0 %vm5938_vm1, %v5937_v15  ;;  %5103 = vmatprep.subr.bf16.mxu1 %v5937_v15 }
  0x83   :  { %5112 = vmatpush3.bf16.msra.mxu0 %v5529_v21  ;;  %5104 = vmatpush3.bf16.msra.mxu1 %v5530_v22  ;;  %v4506_v22 = vld [vmem:[%s6840_s7 + $0x1] ss:$0 sm:$0xff] }
  0x84   :  { %5125 = vmatprep.subr.bf16.mxu0 %v5937_v15  ;;  %5117 = vmatprep.subr.bf16.mxu1 %v5937_v15 }
  0x86   :  { %5090 = vmatmul.mubr.msk.bf16.gmra.mrb[24].mxu1 %vm149_vm0, %v6094_v5  ;;  %5114 = vmatmul.mubr.bf16.vlgmr.msra.gmra.mrb[24].mxu0 %v5939_v23 }
  0x87   :  { %5126 = vmatpush3.bf16.msra.mxu0 %v5531_v24  ;;  %5105 = vmatprep.mubr.msk.bf16.mxu1 %vm5938_vm1, %v5937_v15 }
  0x88   :  { %5127 = vmatprep.subr.bf16.mxu0 %v5937_v15  ;;  %5129 = vmatprep.mubr.msk.bf16.mxu0 %vm5938_vm1, %v5937_v15 }
  0x8b   :  { %5128 = vmatpush3.bf16.msra.mxu0 %v5532_v25 }
  0x8c   :  { %5141 = vmatprep.subr.bf16.mxu0 %v5937_v15 }
  0x8e   :  { %5106 = vmatmul.mubr.bf16.vlgmr.msra.gmra.mrb[28].mxu1 %v5939_v23  ;;  %5130 = vmatmul.mubr.bf16.vlgmr.msra.gmra.mrb[28].mxu0 %v5939_v23 }
  0x8f   :  { %5118 = vmatpush3.bf16.msra.mxu1 %v5533_v26  ;;  %5121 = vmatprep.mubr.msk.bf16.mxu1 %vm5938_vm1, %v5937_v15 }
  0x90   :  { %5119 = vmatprep.subr.bf16.mxu1 %v5937_v15  ;;  %5145 = vmatprep.mubr.msk.bf16.mxu0 %vm5938_vm1, %v5937_v15 }
  0x91   :  { %5142 = vmatpush3.bf16.msra.mxu0 %v5537_v30 }
  0x92   :  { %5143 = vmatprep.subr.bf16.mxu0 %v5937_v15 }
  0x93   :  { %5120 = vmatpush3.bf16.msra.mxu1 %v5534_v27 }
  0x94   :  { %5133 = vmatprep.subr.bf16.mxu1 %v5937_v15 }
  0x95   :  { %5144 = vmatpush3.bf16.msra.mxu0 %v5539_v32 }
  0x96   :  { %5122 = vmatmul.mubr.bf16.vlgmr.msra.gmra.mrb[32].mxu1 %v5939_v23  ;;  %5157 = vmatprep.subr.bf16.mxu0 %v5937_v15 }
  0x97   :  { %5134 = vmatpush3.bf16.msra.mxu1 %v5535_v28  ;;  %5137 = vmatprep.mubr.msk.bf16.mxu1 %vm5938_vm1, %v5937_v15 }
  0x98   :  { %5135 = vmatprep.subr.bf16.mxu1 %v5937_v15 }
  0x9b   :  { %5136 = vmatpush3.bf16.msra.mxu1 %v5536_v29 }
  0x9c   :  { %5149 = vmatprep.subr.bf16.mxu1 %v5937_v15 }
  0x9e   :  { %5138 = vmatmul.mubr.bf16.vlgmr.msra.gmra.mrb[36].mxu1 %v5939_v23  ;;  %v4517_v23 = vld [vmem:[#allocation4 + $0x2] ss:$0 sm:$0xff] }
  0x9f   :  { %5153 = vmatprep.mubr.msk.bf16.mxu1 %vm5938_vm1, %v5937_v15  ;;  %5150 = vmatpush3.bf16.msra.mxu1 %v5538_v31 }
  0xa0   :  { %5151 = vmatprep.subr.bf16.mxu1 %v5937_v15 }
  0xa3   :  { %5152 = vmatpush3.bf16.msra.mxu1 %v5540_v33 }
  0xa4   :  { %5165 = vmatprep.subr.bf16.mxu1 %v5937_v15 }
 0x129   :  { %v5031_v35 = vpop.f32.mrb[0].mxu1  ;;  %v5027_v36 = vpop.f32.mrb[0].mxu0 }
 0x12a   :  { %v221_v37 = vadd.f32 %v5031_v35, %v4476_v34  ;;  %v205_v38 = vadd.f32 %v5027_v36, %v4476_v34  ;;  %v212_v39 = vpop.f32.mrb[1].mxu1  ;;  %v196_v40 = vpop.f32.mrb[1].mxu0 }
 0x12b   :  { %v213_v41 = vadd.f32 %v4476_v34, %v212_v39  ;;  %v197_v42 = vadd.f32 %v4476_v34, %v196_v40  ;;  %v5032_v43 = vpop.f32.mrb[2].mxu1  ;;  %v5028_v44 = vpop.f32.mrb[2].mxu0 }
 0x12c   :  { %233 = vst.msk [vmem:[#allocation2 + $0x30] sm:$0xff] %vm149_vm0, %v221_v37  ;;  %229 = vst.msk [vmem:[#allocation2 + $0x10] sm:$0xff] %vm149_vm0, %v205_v38  ;;  %v224_v45 = vadd.f32 %v5032_v43, %v4476_v34  ;;  %v208_v46 = vadd.f32 %v5028_v44, %v4476_v34  ;;  %v215_v47 = vpop.f32.mrb[3].mxu1  ;;  %v199_v48 = vpop.f32.mrb[3].mxu0 }
 0x12d   :  { %231 = vst.msk [vmem:[#allocation2 + $0x20] sm:$0xff] %vm149_vm0, %v213_v41  ;;  %227 = vst.msk [vmem:[#allocation2] sm:$0xff] %vm149_vm0, %v197_v42  ;;  %v216_v49 = vadd.f32 %v4476_v34, %v215_v47  ;;  %v200_v50 = vadd.f32 %v4476_v34, %v199_v48 }
 0x12e   :  { %234 = vst.msk [vmem:[#allocation2 + $0x38] sm:$0xff] %vm149_vm0, %v224_v45  ;;  %230 = vst.msk [vmem:[#allocation2 + $0x18] sm:$0xff] %vm149_vm0, %v208_v46 }
 0x12f   :  { %232 = vst.msk [vmem:[#allocation2 + $0x28] sm:$0xff] %vm149_vm0, %v216_v49  ;;  %228 = vst.msk [vmem:[#allocation2 + $0x8] sm:$0xff] %vm149_vm0, %v200_v50 }
 0x131   :  { %v5039_v53 = vpop.f32.mrb[4].mxu1  ;;  %v5051_v54 = vpop.f32.mrb[4].mxu0 }
 0x132   :  { %v301_v55 = vadd.f32 %v5039_v53, %v4487_v51  ;;  %v292_v56 = vpop.f32.mrb[5].mxu1  ;;  %v399_v57 = vadd.f32 %v5051_v54, %v4498_v52  ;;  %v390_v58 = vpop.f32.mrb[5].mxu0 }
 0x133   :  { %v293_v59 = vadd.f32 %v4487_v51, %v292_v56  ;;  %v5040_v60 = vpop.f32.mrb[6].mxu1  ;;  %v391_v61 = vadd.f32 %v4498_v52, %v390_v58  ;;  %v5052_v62 = vpop.f32.mrb[6].mxu0  ;;  %v4525_v56 = vld [vmem:[%s6840_s7 + $0x2] ss:$0 sm:$0xff] }
 0x134   :  { %325 = vst.msk [vmem:[#allocation3 + $0x10] sm:$0xff] %vm149_vm0, %v301_v55  ;;  %424 = vst.msk [vmem:[#allocation2 + $0x50] sm:$0xff] %vm149_vm0, %v399_v57  ;;  %v304_v63 = vadd.f32 %v5040_v60, %v4487_v51  ;;  %v295_v0 = vpop.f32.mrb[7].mxu1  ;;  %v402_v1 = vadd.f32 %v5052_v62, %v4498_v52  ;;  %v393_v2 = vpop.f32.mrb[7].mxu0  ;;  %v6265_v57 = vld [vmem:[#allocation7] ss:$0 sm:$0xff] }
 0x135   :  { %323 = vst.msk [vmem:[#allocation3] sm:$0xff] %vm149_vm0, %v293_v59  ;;  %422 = vst.msk [vmem:[#allocation2 + $0x40] sm:$0xff] %vm149_vm0, %v391_v61  ;;  %v296_v3 = vadd.f32 %v4487_v51, %v295_v0  ;;  %v394_v4 = vadd.f32 %v4498_v52, %v393_v2  ;;  %v1116_v0 = vld [vmem:[#allocation2] sm:$0xff] }
 0x136   :  { %326 = vst.msk [vmem:[#allocation3 + $0x18] sm:$0xff] %vm149_vm0, %v304_v63  ;;  %425 = vst.msk [vmem:[#allocation2 + $0x58] sm:$0xff] %vm149_vm0, %v402_v1 }
 0x137   :  { %324 = vst.msk [vmem:[#allocation3 + $0x8] sm:$0xff] %vm149_vm0, %v296_v3  ;;  %423 = vst.msk [vmem:[#allocation2 + $0x48] sm:$0xff] %vm149_vm0, %v394_v4 }
 0x139   :  { %v5043_v5 = vpop.f32.mrb[8].mxu1  ;;  %v5055_v6 = vpop.f32.mrb[8].mxu0 }
 0x13a   :  { %v317_v7 = vadd.f32 %v5043_v5, %v4487_v51  ;;  %v308_v8 = vpop.f32.mrb[9].mxu1  ;;  %v415_v9 = vadd.f32 %v5055_v6, %v4498_v52  ;;  %v406_v10 = vpop.f32.mrb[9].mxu0 }
 0x13b   :  { %v309_v11 = vadd.f32 %v4487_v51, %v308_v8  ;;  %v5044_v12 = vpop.f32.mrb[10].mxu1  ;;  %v407_v13 = vadd.f32 %v4498_v52, %v406_v10  ;;  %v5056_v14 = vpop.f32.mrb[10].mxu0 }
 0x13c   :  { %329 = vst.msk [vmem:[#allocation3 + $0x30] sm:$0xff] %vm149_vm0, %v317_v7  ;;  %428 = vst.msk [vmem:[#allocation2 + $0x70] sm:$0xff] %vm149_vm0, %v415_v9  ;;  %v320_v16 = vadd.f32 %v5044_v12, %v4487_v51  ;;  %v311_v17 = vpop.f32.mrb[11].mxu1  ;;  %v418_v18 = vadd.f32 %v5056_v14, %v4498_v52  ;;  %v409_v19 = vpop.f32.mrb[11].mxu0 }
 0x13d   :  { %327 = vst.msk [vmem:[#allocation3 + $0x20] sm:$0xff] %vm149_vm0, %v309_v11  ;;  %426 = vst.msk [vmem:[#allocation2 + $0x60] sm:$0xff] %vm149_vm0, %v407_v13  ;;  %v312_v20 = vadd.f32 %v4487_v51, %v311_v17  ;;  %v410_v21 = vadd.f32 %v4498_v52, %v409_v19 }
 0x13e   :  { %330 = vst.msk [vmem:[#allocation3 + $0x38] sm:$0xff] %vm149_vm0, %v320_v16  ;;  %429 = vst.msk [vmem:[#allocation2 + $0x78] sm:$0xff] %vm149_vm0, %v418_v18 }
 0x13f   :  { %328 = vst.msk [vmem:[#allocation3 + $0x28] sm:$0xff] %vm149_vm0, %v312_v20  ;;  %427 = vst.msk [vmem:[#allocation2 + $0x68] sm:$0xff] %vm149_vm0, %v410_v21 }
 0x141   :  { %v5063_v24 = vpop.f32.mrb[12].mxu1  ;;  %v5075_v25 = vpop.f32.mrb[12].mxu0 }
 0x142   :  { %v498_v26 = vadd.f32 %v5063_v24, %v4506_v22  ;;  %v489_v27 = vpop.f32.mrb[13].mxu1  ;;  %v597_v28 = vadd.f32 %v5075_v25, %v4517_v23  ;;  %v588_v29 = vpop.f32.mrb[13].mxu0 }
 0x143   :  { %v490_v30 = vadd.f32 %v4506_v22, %v489_v27  ;;  %v5064_v31 = vpop.f32.mrb[14].mxu1  ;;  %v589_v32 = vadd.f32 %v4517_v23, %v588_v29  ;;  %v5076_v33 = vpop.f32.mrb[14].mxu0 }
 0x144   :  { %523 = vst.msk [vmem:[#allocation3 + $0x50] sm:$0xff] %vm149_vm0, %v498_v26  ;;  %622 = vst.msk [vmem:[#allocation2 + $0x90] sm:$0xff] %vm149_vm0, %v597_v28  ;;  %v501_v34 = vadd.f32 %v5064_v31, %v4506_v22  ;;  %v492_v35 = vpop.f32.mrb[15].mxu1  ;;  %v600_v36 = vadd.f32 %v5076_v33, %v4517_v23  ;;  %v591_v37 = vpop.f32.mrb[15].mxu0  ;;  %v1119_v31 = vld [vmem:[#allocation2 + $0x40] sm:$0xff] }
 0x145   :  { %521 = vst.msk [vmem:[#allocation3 + $0x40] sm:$0xff] %vm149_vm0, %v490_v30  ;;  %620 = vst.msk [vmem:[#allocation2 + $0x80] sm:$0xff] %vm149_vm0, %v589_v32  ;;  %v493_v38 = vadd.f32 %v4506_v22, %v492_v35  ;;  %v592_v39 = vadd.f32 %v4517_v23, %v591_v37 }
 0x146   :  { %524 = vst.msk [vmem:[#allocation3 + $0x58] sm:$0xff] %vm149_vm0, %v501_v34  ;;  %623 = vst.msk [vmem:[#allocation2 + $0x98] sm:$0xff] %vm149_vm0, %v600_v36 }
 0x147   :  { %522 = vst.msk [vmem:[#allocation3 + $0x48] sm:$0xff] %vm149_vm0, %v493_v38  ;;  %621 = vst.msk [vmem:[#allocation2 + $0x88] sm:$0xff] %vm149_vm0, %v592_v39  ;;  %v6282_v38 = vld [vmem:[%s6841_s8 + $0x1] ss:$0 sm:$0xff]  ;;  %v6287_v39 = vld [vmem:[%s6841_s8] ss:$0 sm:$0xff] }
 0x149   :  { %v5067_v40 = vpop.f32.mrb[16].mxu1  ;;  %v5079_v41 = vpop.f32.mrb[16].mxu0 }
 0x14a   :  { %v514_v42 = vadd.f32 %v5067_v40, %v4506_v22  ;;  %v505_v43 = vpop.f32.mrb[17].mxu1  ;;  %v613_v44 = vadd.f32 %v5079_v41, %v4517_v23  ;;  %v604_v45 = vpop.f32.mrb[17].mxu0  ;;  %v6289_v40 = vld [vmem:[#allocation7 + $0x2] ss:$0 sm:$0xff] }
 0x14b   :  { %v506_v46 = vadd.f32 %v4506_v22, %v505_v43  ;;  %v5068_v47 = vpop.f32.mrb[18].mxu1  ;;  %v605_v48 = vadd.f32 %v4517_v23, %v604_v45  ;;  %v5080_v49 = vpop.f32.mrb[18].mxu0  ;;  %v1124_v45 = vld [vmem:[#allocation3 + $0x38] sm:$0xff] }
 0x14c   :  { %527 = vst.msk [vmem:[#allocation3 + $0x70] sm:$0xff] %vm149_vm0, %v514_v42  ;;  %626 = vst.msk [vmem:[#allocation2 + $0xb0] sm:$0xff] %vm149_vm0, %v613_v44  ;;  %v517_v50 = vadd.f32 %v5068_v47, %v4506_v22  ;;  %v508_v51 = vpop.f32.mrb[19].mxu1  ;;  %v616_v52 = vadd.f32 %v5080_v49, %v4517_v23  ;;  %v607_v53 = vpop.f32.mrb[19].mxu0 }
 0x14d   :  { %525 = vst.msk [vmem:[#allocation3 + $0x60] sm:$0xff] %vm149_vm0, %v506_v46  ;;  %624 = vst.msk [vmem:[#allocation2 + $0xa0] sm:$0xff] %vm149_vm0, %v605_v48  ;;  %v509_v54 = vadd.f32 %v4506_v22, %v508_v51  ;;  %v608_v55 = vadd.f32 %v4517_v23, %v607_v53  ;;  %v6276_v23 = vld [vmem:[#allocation7 + $0x1] ss:$0 sm:$0xff] }
 0x14e   :  { %528 = vst.msk [vmem:[#allocation3 + $0x78] sm:$0xff] %vm149_vm0, %v517_v50  ;;  %627 = vst.msk [vmem:[#allocation2 + $0xb8] sm:$0xff] %vm149_vm0, %v616_v52 }
 0x14f   :  { %526 = vst.msk [vmem:[#allocation3 + $0x68] sm:$0xff] %vm149_vm0, %v509_v54  ;;  %625 = vst.msk [vmem:[#allocation2 + $0xa8] sm:$0xff] %vm149_vm0, %v608_v55 }
 0x151   :  { %v5087_v58 = vpop.f32.mrb[20].mxu1  ;;  %v787_v59 = vpop.f32.mrb[20].mxu0 }
 0x152   :  { %v696_v60 = vadd.f32 %v5087_v58, %v4525_v56  ;;  %v788_v61 = vadd.f32 %v6265_v57, %v787_v59  ;;  %v687_v62 = vpop.f32.mrb[21].mxu1  ;;  %v5099_v63 = vpop.f32.mrb[21].mxu0  ;;  %v1122_v58 = vld [vmem:[#allocation2 + $0x80] sm:$0xff] }
 0x153   :  { %v688_v1 = vadd.f32 %v4525_v56, %v687_v62  ;;  %v5088_v2 = vpop.f32.mrb[22].mxu1  ;;  %v790_v3 = vpop.f32.mrb[22].mxu0 }
 0x154   :  { %721 = vst.msk [vmem:[#allocation3 + $0x90] sm:$0xff] %vm149_vm0, %v696_v60  ;;  %v1131_v4 = vadd.f32 %v1116_v0, %v788_v61  ;;  %v699_v5 = vadd.f32 %v5088_v2, %v4525_v56  ;;  %v690_v6 = vpop.f32.mrb[23].mxu1  ;;  %v5100_v7 = vpop.f32.mrb[23].mxu0 }
 0x155   :  { %719 = vst.msk [vmem:[#allocation3 + $0x80] sm:$0xff] %vm149_vm0, %v688_v1  ;;  %v691_v8 = vadd.f32 %v4525_v56, %v690_v6  ;;  %v1127_v50 = vld [vmem:[#allocation3 + $0x78] sm:$0xff]  ;;  %v6297_v7 = vld [vmem:[%s6841_s8 + $0x2] ss:$0 sm:$0xff] }
 0x156   :  { %v4560_v9 = vmul.f32 -1.442695, %v1131_v4  ;;  %722 = vst.msk [vmem:[#allocation3 + $0x98] sm:$0xff] %vm149_vm0, %v699_v5 }
 0x157   :  { %720 = vst.msk [vmem:[#allocation3 + $0x88] sm:$0xff] %vm149_vm0, %v691_v8 }
 0x158   :  { %5625 = vpow2.f32 %v4560_v9 }
 0x159   :  { %v5091_v10 = vpop.f32.mrb[24].mxu1  ;;  %v917_v11 = vpop.f32.mrb[24].mxu0 }
 0x15a   :  { %v712_v12 = vadd.f32 %v5091_v10, %v4525_v56  ;;  %v703_v13 = vpop.f32.mrb[25].mxu1  ;;  %v5115_v14 = vpop.f32.mrb[25].mxu0  ;;  %v918_v47 = vadd.f32 %v6289_v40, %v917_v11 }
 0x15b   :  { %v704_v16 = vadd.f32 %v4525_v56, %v703_v13  ;;  %v5092_v17 = vpop.f32.mrb[26].mxu1  ;;  %v920_v18 = vpop.f32.mrb[26].mxu0  ;;  %v5541_v13 = vld [vmem:[%s6835_s2 + $0x20] sm:$0xff]  }
 0x15c   :  { %725 = vst.msk [vmem:[#allocation3 + $0xb0] sm:$0xff] %vm149_vm0, %v712_v12  ;;  %v715_v19 = vadd.f32 %v5092_v17, %v4525_v56  ;;  %v706_v20 = vpop.f32.mrb[27].mxu1  ;;  %v5116_v21 = vpop.f32.mrb[27].mxu0 }
 0x15d   :  { %723 = vst.msk [vmem:[#allocation3 + $0xa0] sm:$0xff] %vm149_vm0, %v704_v16  ;;  %v707_v22 = vadd.f32 %v4525_v56, %v706_v20  ;;  %v5543_v16 = vld [vmem:[#allocation10] sm:$0xff]   ;;  %v5542_v20 = vld [vmem:[%s6835_s2 + $0x28] sm:$0xff]  }
 0x15e   :  { %726 = vst.msk [vmem:[#allocation3 + $0xb8] sm:$0xff] %vm149_vm0, %v715_v19 }
 0x15f   :  { %724 = vst.msk [vmem:[#allocation3 + $0xa8] sm:$0xff] %vm149_vm0, %v707_v22  ;;  %v5545_v22 = vld [vmem:[#allocation10 + $0x8] sm:$0xff]  }
 0x161   :  { %v852_v24 = vpop.f32.mrb[28].mxu1  ;;  %v1045_v25 = vpop.f32.mrb[28].mxu0 }
 0x162   :  { %v5626_v26 = vpop.eup %5625  ;;  %v853_v27 = vadd.f32 %v6276_v23, %v852_v24  ;;  %v5107_v28 = vpop.f32.mrb[29].mxu1  ;;  %v1046_v42 = vadd.f32 %v6282_v38, %v1045_v25  ;;  %v5544_v24 = vld [vmem:[#allocation10 + $0x10] sm:$0xff]   ;;  %v5546_v25 = vld [vmem:[#allocation10 + $0x18] sm:$0xff]  }
 0x163   :  { %v5131_v29 = vpop.f32.mrb[29].mxu0  ;;  %v1135_v30 = vadd.f32 1.0, %v5626_v26  ;;  %v855_v32 = vpop.f32.mrb[30].mxu1 }
 0x164   :  { %v1048_v33 = vpop.f32.mrb[30].mxu0  ;;  %v1138_v34 = vadd.f32 %v1119_v31, %v853_v27  ;;  %v5108_v35 = vpop.f32.mrb[31].mxu1  ;;  %v1159_v51 = vadd.f32 %v1127_v50, %v1046_v42  ;;  %v5547_v32 = vld [vmem:[#allocation10 + $0x20] sm:$0xff]  }
 0x165   :  { %v5132_v36 = vpop.f32.mrb[31].mxu0  ;;  %5627 = vrcp.f32 %v1135_v30  ;;  %v1130_v19 = vld [vmem:[#allocation3 + $0xb8] sm:$0xff]  ;;  %v5549_v35 = vld [vmem:[%s6835_s2] sm:$0xff]  }
 0x166   :  { %v4561_v37 = vmul.f32 -1.442695, %v1138_v34  ;;  %v4563_v59 = vmul.f32 -1.442695, %v1159_v51  ;;  %v5548_v34 = vld [vmem:[#allocation10 + $0x28] sm:$0xff]   ;;  %v5550_v36 = vld [vmem:[%s6835_s2 + $0x10] sm:$0xff]  }
 0x168   :  { %5629 = vpow2.f32 %v4561_v37  ;;  %v5551_v37 = vld [vmem:[%s6835_s2 + $0x8] sm:$0xff]  }
 0x169   :  { %v980_v41 = vpop.f32.mrb[32].mxu1 }
 0x16a   :  { %v981_v43 = vadd.f32 %v6287_v39, %v980_v41  ;;  %v5123_v44 = vpop.f32.mrb[33].mxu1  ;;  %v5552_v41 = vld [vmem:[%s6835_s2 + $0x18] sm:$0xff]  }
 0x16b   :  { %v983_v46 = vpop.f32.mrb[34].mxu1 }
 0x16c   :  { %v1152_v48 = vadd.f32 %v1124_v45, %v981_v43  ;;  %v5124_v49 = vpop.f32.mrb[35].mxu1 }
 0x16e   :  { %v4562_v52 = vmul.f32 -1.442695, %v1152_v48 }
 0x16f   :  { %v5628_v53 = vpop.eup %5627 }
 0x170   :  { %v1145_v54 = vmul.f32 %v5628_v53, %v918_v47  ;;  %5631 = vpow2.f32 %v4562_v52  ;;  %v1568_v47 = vld [vmem:[#allocation2 + $0x8] sm:$0xff] }
 0x171   :  { %v1110_v55 = vpop.f32.mrb[36].mxu1 }
 0x172   :  { %v5630_v56 = vpop.eup %5629  ;;  %v5139_v60 = vpop.f32.mrb[37].mxu1  ;;  %v1146_v61 = vadd.f32 %v1145_v54, %v1122_v58  ;;  %v1111_v11 = vadd.f32 %v6297_v7, %v1110_v55  ;;  %v1571_v55 = vld [vmem:[#allocation2 + $0x48] sm:$0xff] }
 0x173   :  { %v1142_v62 = vadd.f32 1.0, %v5630_v56  ;;  %v1113_v63 = vpop.f32.mrb[38].mxu1 }
 0x174   :  { %v5140_v0 = vpop.f32.mrb[39].mxu1 }
 0x175   :  { %5633 = vrcp.f32 %v1142_v62 }
 0x176   :  { %5635 = vpow2.f32 %v4563_v59 }
 0x177   :  { %5637 = vtanh.f32 %v1146_v61 }
 0x17a   :  { %v5632_v1 = vpop.eup %5631 }
 0x17b   :  { %v1156_v2 = vadd.f32 1.0, %v5632_v1 }
 0x17d   :  { %5639 = vrcp.f32 %v1156_v2 }
 0x17f   :  { %v5634_v3 = vpop.eup %5633 }
 0x180   :  { %v5636_v4 = vpop.eup %5635  ;;  %v1148_v5 = vsub.f32 1.0, %v5634_v3  ;;  %v1150_v8 = vmul.f32 0.0, %v5634_v3 }
 0x181   :  { %v5638_v6 = vpop.eup %5637  ;;  %v1163_v10 = vadd.f32 1.0, %v5636_v4 }
 0x182   :  { %v1149_v9 = vmul.f32 %v5638_v6, %v1148_v5 }
 0x183   :  { %5641 = vrcp.f32 %v1163_v10 }
 0x184   :  { %v6300_v12 = vadd.f32 %v1150_v8, %v1149_v9  ;;  %v1576_v8 = vld [vmem:[#allocation3 + $0x30] sm:$0xff] }
 0x186   :  { %v1181_v14 = vpack.c.bf16 %v6300_v12, %v6300_v12  ;;  %1173 = vst.msk [vmem:[#allocation12] sm:$0xff] %vm149_vm0, %v6300_v12 }
 0x187   :  { %v5640_v17 = vpop.eup %5639 }
 0x188   :  { %v1166_v18 = vmul.f32 %v5640_v17, %v1111_v11  ;;  %5146 = vmatmul.mubr.msk.bf16.vlgmr.msra.gmra.mrb[32].mxu0 %vm149_vm0, %v1181_v14  ;;  %5154 = vmatmul.mubr.msk.bf16.vlgmr.msra.gmra.mrb[40].mxu1 %vm149_vm0, %v1181_v14  ;;  %v1579_v17 = vld [vmem:[#allocation3 + $0x70] sm:$0xff] }
 0x189   :  { %5158 = vmatpush3.bf16.msra.mxu0 %v5541_v13  ;;  %5161 = vmatprep.mubr.msk.bf16.mxu0 %vm5938_vm1, %v5937_v15 }
 0x18a   :  { %v1167_v21 = vadd.f32 %v1166_v18, %v1130_v19  ;;  %5159 = vmatprep.subr.bf16.mxu0 %v5937_v15  ;;  %5166 = vmatpush3.bf16.msra.mxu1 %v5543_v16 }
 0x18b   :  { %5167 = vmatprep.subr.bf16.mxu1 %v5937_v15  ;;  %5169 = vmatprep.mubr.msk.bf16.mxu1 %vm5938_vm1, %v5937_v15 }
 0x18c   :  { %5643 = vtanh.f32 %v1167_v21 }
 0x18d   :  { %5160 = vmatpush3.bf16.msra.mxu0 %v5542_v20  ;;  %v5642_v26 = vpop.eup %5641 }
 0x18e   :  { %5173 = vmatprep.subr.bf16.mxu0 %v5937_v15  ;;  %5168 = vmatpush3.bf16.msra.mxu1 %v5545_v22  ;;  %v1169_v27 = vsub.f32 1.0, %v5642_v26  ;;  %v1171_v29 = vmul.f32 0.0, %v5642_v26 }
 0x18f   :  { %5181 = vmatprep.subr.bf16.mxu1 %v5937_v15 }
 0x190   :  { %5162 = vmatmul.mubr.msk.bf16.vlgmr.msra.gmra.mrb[36].mxu0 %vm149_vm0, %v1181_v14 }
 0x191   :  { %5174 = vmatpush3.bf16.msra.mxu0 %v5544_v24  ;;  %5177 = vmatprep.mubr.msk.bf16.mxu0 %vm5938_vm1, %v5937_v15 }
 0x192   :  { %5175 = vmatprep.subr.bf16.mxu0 %v5937_v15 }
 0x195   :  { %5176 = vmatpush3.bf16.msra.mxu0 %v5546_v25 }
 0x196   :  { %v5644_v28 = vpop.eup %5643  ;;  %5189 = vmatprep.subr.bf16.mxu0 %v5937_v15 }
 0x197   :  { %v1170_v30 = vmul.f32 %v5644_v28, %v1169_v27 }
 0x199   :  { %v6327_v31 = vadd.f32 %v1171_v29, %v1170_v30  ;;  %v1574_v29 = vld [vmem:[#allocation2 + $0x88] sm:$0xff] }
 0x19b   :  { %v1182_v33 = vpack.c.bf16 %v6327_v31, %v6327_v31 }
 0x19d   :  { %5170 = vmatmul.mubr.msk.bf16.vlgmr.msra.gmra.mrb[44].mxu1 %vm149_vm0, %v1182_v33  ;;  %5178 = vmatmul.mubr.msk.bf16.vlgmr.msra.gmra.mrb[40].mxu0 %vm149_vm0, %v1182_v33 }
 0x19e   :  { %5182 = vmatpush3.bf16.msra.mxu1 %v5547_v32  ;;  %5185 = vmatprep.mubr.msk.bf16.mxu1 %vm5938_vm1, %v5937_v15 }
 0x19f   :  { %5183 = vmatprep.subr.bf16.mxu1 %v5937_v15  ;;  %5193 = vmatprep.mubr.msk.bf16.mxu0 %vm5938_vm1, %v5937_v15 }
 0x1a0   :  { %5190 = vmatpush3.bf16.msra.mxu0 %v5549_v35 }
 0x1a1   :  { %5191 = vmatprep.subr.bf16.mxu0 %v5937_v15 }
 0x1a2   :  { %5184 = vmatpush3.bf16.msra.mxu1 %v5548_v34 }
 0x1a3   :  { %5197 = vmatprep.subr.bf16.mxu1 %v5937_v15 }
 0x1a4   :  { %5192 = vmatpush3.bf16.msra.mxu0 %v5551_v37 }
 0x1a5   :  { %5186 = vmatmul.mubr.msk.bf16.vlgmr.msra.gmra.mrb[48].mxu1 %vm149_vm0, %v1182_v33  ;;  %5205 = vmatprep.subr.bf16.mxu0 %v5937_v15 }
 0x1a6   :  { %5201 = vmatprep.mubr.msk.bf16.mxu1 %vm5938_vm1, %v5937_v15  ;;  %5198 = vmatpush3.bf16.msra.mxu1 %v5550_v36 }
 0x1a7   :  { %5199 = vmatprep.subr.bf16.mxu1 %v5937_v15 }
 0x1aa   :  { %5200 = vmatpush3.bf16.msra.mxu1 %v5552_v41 }
 0x1ab   :  { %5213 = vmatprep.subr.bf16.mxu1 %v5937_v15 }
 0x25b   :  { %v1243_v42 = vpop.f32.mrb[32].mxu0  ;;  %v1306_v43 = vpop.f32.mrb[40].mxu1 }
 0x25c   :  { %v1244_v44 = vadd.f32 %v6265_v57, %v1243_v42  ;;  %v5147_v45 = vpop.f32.mrb[33].mxu0  ;;  %v5155_v46 = vpop.f32.mrb[41].mxu1  ;;  %v1307_v48 = vadd.f32 %v6276_v23, %v1306_v43 }
 0x25d   :  { %v1246_v49 = vpop.f32.mrb[34].mxu0  ;;  %v1309_v50 = vpop.f32.mrb[42].mxu1  ;;  %v5553_v46 = vld [vmem:[%s6835_s2 + $0x20] sm:$0xff]  }
 0x25e   :  { %v1583_v51 = vadd.f32 %v1568_v47, %v1244_v44  ;;  %v5148_v52 = vpop.f32.mrb[35].mxu0  ;;  %v5156_v53 = vpop.f32.mrb[43].mxu1  ;;  %v1590_v56 = vadd.f32 %v1571_v55, %v1307_v48  ;;  %v5555_v49 = vld [vmem:[#allocation10] sm:$0xff]   ;;  %v5556_v55 = vld [vmem:[#allocation10 + $0x10] sm:$0xff]  }
 0x25f   :  { %v5554_v52 = vld [vmem:[%s6835_s2 + $0x28] sm:$0xff]  }
 0x260   :  { %v4598_v54 = vmul.f32 -1.442695, %v1583_v51  ;;  %v4599_v60 = vmul.f32 -1.442695, %v1590_v56  ;;  %v1582_v51 = vld [vmem:[#allocation3 + $0xb0] sm:$0xff] }
 0x261   :  { %v5558_v56 = vld [vmem:[#allocation10 + $0x18] sm:$0xff]  }
 0x262   :  { %5645 = vpow2.f32 %v4598_v54  ;;  %v5557_v54 = vld [vmem:[#allocation10 + $0x8] sm:$0xff]  }
 0x263   :  { %v1369_v58 = vpop.f32.mrb[36].mxu0  ;;  %5647 = vpow2.f32 %v4599_v60 }
 0x264   :  { %v5163_v59 = vpop.f32.mrb[37].mxu0  ;;  %v1370_v21 = vadd.f32 %v6289_v40, %v1369_v58 }
 0x265   :  { %v1372_v61 = vpop.f32.mrb[38].mxu0 }
 0x266   :  { %v5164_v62 = vpop.f32.mrb[39].mxu0 }
 0x26c   :  { %v5646_v63 = vpop.eup %5645 }
 0x26d   :  { %v1587_v0 = vadd.f32 1.0, %v5646_v63  ;;  %v5648_v11 = vpop.eup %5647 }
 0x26e   :  { %v1594_v20 = vadd.f32 1.0, %v5648_v11 }
 0x26f   :  { %5649 = vrcp.f32 %v1587_v0  ;;  %v5559_v0 = vld [vmem:[#allocation10 + $0x20] sm:$0xff]  }
 0x270   :  { %v1435_v1 = vpop.f32.mrb[44].mxu1  ;;  %v1498_v2 = vpop.f32.mrb[40].mxu0 }
 0x271   :  { %v1436_v3 = vadd.f32 %v6287_v39, %v1435_v1  ;;  %v1499_v4 = vadd.f32 %v6282_v38, %v1498_v2  ;;  %v5171_v5 = vpop.f32.mrb[45].mxu1  ;;  %v5179_v6 = vpop.f32.mrb[41].mxu0  ;;  %v5560_v2 = vld [vmem:[#allocation10 + $0x28] sm:$0xff]  }
 0x272   :  { %v1438_v9 = vpop.f32.mrb[46].mxu1  ;;  %v1501_v10 = vpop.f32.mrb[42].mxu0  ;;  %v5563_v5 = vld [vmem:[%s6835_s2 + $0x8] sm:$0xff]   ;;  %v5564_v6 = vld [vmem:[%s6835_s2 + $0x18] sm:$0xff]  }
 0x273   :  { %v1604_v13 = vadd.f32 %v1576_v8, %v1436_v3  ;;  %v5172_v14 = vpop.f32.mrb[47].mxu1  ;;  %v5180_v16 = vpop.f32.mrb[43].mxu0  ;;  %v1611_v19 = vadd.f32 %v1579_v17, %v1499_v4  ;;  %v5561_v3 = vld [vmem:[%s6835_s2] sm:$0xff]   ;;  %v5562_v4 = vld [vmem:[%s6835_s2 + $0x10] sm:$0xff]  }
 0x274   :  { %v2020_v16 = vld [vmem:[#allocation2 + $0x10] sm:$0xff] }
 0x275   :  { %v4600_v18 = vmul.f32 -1.442695, %v1604_v13  ;;  %v4601_v25 = vmul.f32 -1.442695, %v1611_v19 }
 0x277   :  { %5651 = vpow2.f32 %v4600_v18 }
 0x278   :  { %v1561_v22 = vpop.f32.mrb[48].mxu1  ;;  %5653 = vrcp.f32 %v1594_v20 }
 0x279   :  { %v5650_v24 = vpop.eup %5649  ;;  %v5187_v26 = vpop.f32.mrb[49].mxu1  ;;  %5655 = vpow2.f32 %v4601_v25  ;;  %v1562_v47 = vadd.f32 %v6297_v7, %v1561_v22  ;;  %v2023_v25 = vld [vmem:[#allocation2 + $0x50] sm:$0xff] }
 0x27a   :  { %v1597_v27 = vmul.f32 %v5650_v24, %v1370_v21  ;;  %v1564_v28 = vpop.f32.mrb[50].mxu1 }
 0x27b   :  { %v5188_v30 = vpop.f32.mrb[51].mxu1 }
 0x27c   :  { %v1598_v32 = vadd.f32 %v1597_v27, %v1574_v29 }
 0x27e   :  { %5657 = vtanh.f32 %v1598_v32 }
 0x281   :  { %v5652_v33 = vpop.eup %5651 }
 0x282   :  { %v1608_v34 = vadd.f32 1.0, %v5652_v33  ;;  %v5654_v35 = vpop.eup %5653 }
 0x283   :  { %v5656_v36 = vpop.eup %5655  ;;  %v1600_v37 = vsub.f32 1.0, %v5654_v35  ;;  %v1602_v42 = vmul.f32 %v5654_v35, %v6300_v12 }
 0x284   :  { %5659 = vrcp.f32 %v1608_v34  ;;  %v1615_v44 = vadd.f32 1.0, %v5656_v36 }
 0x286   :  { %5661 = vrcp.f32 %v1615_v44  ;;  %v2028_v44 = vld [vmem:[#allocation3 + $0x28] sm:$0xff] }
 0x288   :  { %v5658_v41 = vpop.eup %5657 }
 0x289   :  { %v1601_v43 = vmul.f32 %v5658_v41, %v1600_v37 }
 0x28b   :  { %v6364_v45 = vadd.f32 %v1602_v42, %v1601_v43 }
 0x28d   :  { %v1633_v48 = vpack.c.bf16 %v6364_v45, %v6364_v45  ;;  %1626 = vst.msk [vmem:[#allocation12 + $0x8] sm:$0xff] %vm149_vm0, %v6364_v45 }
 0x28e   :  { %v5660_v50 = vpop.eup %5659 }
 0x28f   :  { %v1618_v12 = vmul.f32 %v5660_v50, %v1562_v47  ;;  %5194 = vmatmul.mubr.msk.bf16.vlgmr.msra.gmra.mrb[44].mxu0 %vm149_vm0, %v1633_v48  ;;  %5202 = vmatmul.mubr.msk.bf16.vlgmr.msra.gmra.mrb[52].mxu1 %vm149_vm0, %v1633_v48 }
 0x290   :  { %5206 = vmatpush3.bf16.msra.mxu0 %v5553_v46  ;;  %5209 = vmatprep.mubr.msk.bf16.mxu0 %vm5938_vm1, %v5937_v15  ;;  %v5662_v58 = vpop.eup %5661 }
 0x291   :  { %v1619_v53 = vadd.f32 %v1618_v12, %v1582_v51  ;;  %5207 = vmatprep.subr.bf16.mxu0 %v5937_v15  ;;  %5214 = vmatpush3.bf16.msra.mxu1 %v5555_v49  ;;  %v1621_v59 = vsub.f32 1.0, %v5662_v58  ;;  %v1623_v62 = vmul.f32 %v5662_v58, %v6327_v31  ;;  %v2031_v51 = vld [vmem:[#allocation3 + $0x68] sm:$0xff] }
 0x292   :  { %5215 = vmatprep.subr.bf16.mxu1 %v5937_v15  ;;  %5217 = vmatprep.mubr.msk.bf16.mxu1 %vm5938_vm1, %v5937_v15 }
 0x293   :  { %5663 = vtanh.f32 %v1619_v53 }
 0x294   :  { %5208 = vmatpush3.bf16.msra.mxu0 %v5554_v52 }
 0x295   :  { %5221 = vmatprep.subr.bf16.mxu0 %v5937_v15  ;;  %5216 = vmatpush3.bf16.msra.mxu1 %v5557_v54 }
 0x296   :  { %5229 = vmatprep.subr.bf16.mxu1 %v5937_v15 }
 0x297   :  { %5210 = vmatmul.mubr.msk.bf16.vlgmr.msra.gmra.mrb[48].mxu0 %vm149_vm0, %v1633_v48 }
 0x298   :  { %5222 = vmatpush3.bf16.msra.mxu0 %v5556_v55  ;;  %5225 = vmatprep.mubr.msk.bf16.mxu0 %vm5938_vm1, %v5937_v15 }
 0x299   :  { %5223 = vmatprep.subr.bf16.mxu0 %v5937_v15 }
 0x29c   :  { %5224 = vmatpush3.bf16.msra.mxu0 %v5558_v56 }
 0x29d   :  { %v5664_v60 = vpop.eup %5663  ;;  %5237 = vmatprep.subr.bf16.mxu0 %v5937_v15 }
 0x29e   :  { %v1622_v61 = vmul.f32 %v5664_v60, %v1621_v59 }
 0x2a0   :  { %v6393_v63 = vadd.f32 %v1623_v62, %v1622_v61 }
 0x2a2   :  { %1628 = vrot.lane.b32.xlu1 %v6393_v63, %s5940_s18  ;;  %v1634_v1 = vpack.c.bf16 %v6393_v63, %v6393_v63 }
 0x2a4   :  { %5218 = vmatmul.mubr.msk.bf16.vlgmr.msra.gmra.mrb[56].mxu1 %vm149_vm0, %v1634_v1  ;;  %5226 = vmatmul.mubr.msk.bf16.vlgmr.msra.gmra.mrb[52].mxu0 %vm149_vm0, %v1634_v1 }
 0x2a5   :  { %5230 = vmatpush3.bf16.msra.mxu1 %v5559_v0  ;;  %5233 = vmatprep.mubr.msk.bf16.mxu1 %vm5938_vm1, %v5937_v15  ;;  %v2026_v0 = vld [vmem:[#allocation2 + $0x90] sm:$0xff] }
 0x2a6   :  { %5231 = vmatprep.subr.bf16.mxu1 %v5937_v15  ;;  %5241 = vmatprep.mubr.msk.bf16.mxu0 %vm5938_vm1, %v5937_v15 }
 0x2a7   :  { %5238 = vmatpush3.bf16.msra.mxu0 %v5561_v3 }
 0x2a8   :  { %5239 = vmatprep.subr.bf16.mxu0 %v5937_v15 }
 0x2a9   :  { %5232 = vmatpush3.bf16.msra.mxu1 %v5560_v2 }
 0x2aa   :  { %5245 = vmatprep.subr.bf16.mxu1 %v5937_v15 }
 0x2ab   :  { %5240 = vmatpush3.bf16.msra.mxu0 %v5563_v5 }
 0x2ac   :  { %5234 = vmatmul.mubr.msk.bf16.vlgmr.msra.gmra.mrb[60].mxu1 %vm149_vm0, %v1634_v1  ;;  %5253 = vmatprep.subr.bf16.mxu0 %v5937_v15 }
 0x2ad   :  { %5249 = vmatprep.mubr.msk.bf16.mxu1 %vm5938_vm1, %v5937_v15  ;;  %5246 = vmatpush3.bf16.msra.mxu1 %v5562_v4 }
 0x2ae   :  { %5247 = vmatprep.subr.bf16.mxu1 %v5937_v15 }
 0x2b1   :  { %5248 = vmatpush3.bf16.msra.mxu1 %v5564_v6 }
 0x2b2   :  { %5261 = vmatprep.subr.bf16.mxu1 %v5937_v15 }
 0x314   :  { %v1629_v8 = vpop.permute.xlu1 %1628 }
 0x315   :  { %1632 = vst.msk [vmem:[#allocation12 + $0x30] sm:$0xff] %vm1179_vm2, %v1629_v8 }
 0x362   :  { %v1695_v9 = vpop.f32.mrb[44].mxu0  ;;  %v1758_v10 = vpop.f32.mrb[52].mxu1 }
 0x363   :  { %v1696_v11 = vadd.f32 %v6265_v57, %v1695_v9  ;;  %v5195_v13 = vpop.f32.mrb[45].mxu0  ;;  %v5203_v14 = vpop.f32.mrb[53].mxu1  ;;  %v1759_v17 = vadd.f32 %v6276_v23, %v1758_v10 }
 0x364   :  { %v1698_v18 = vpop.f32.mrb[46].mxu0  ;;  %v1761_v19 = vpop.f32.mrb[54].mxu1 }
 0x365   :  { %v2035_v20 = vadd.f32 %v2020_v16, %v1696_v11  ;;  %v5196_v21 = vpop.f32.mrb[47].mxu0  ;;  %v5204_v22 = vpop.f32.mrb[55].mxu1  ;;  %v2042_v26 = vadd.f32 %v2023_v25, %v1759_v17  ;;  %v5565_v16 = vld [vmem:[%s6835_s2 + $0x20] sm:$0xff]   ;;  %v5567_v19 = vld [vmem:[#allocation10] sm:$0xff]  }
 0x366   :  { %v2034_v21 = vld [vmem:[#allocation3 + $0xa8] sm:$0xff]  ;;  %v5569_v25 = vld [vmem:[#allocation10 + $0x8] sm:$0xff]  }
 0x367   :  { %v4636_v24 = vmul.f32 -1.442695, %v2035_v20  ;;  %v4637_v29 = vmul.f32 -1.442695, %v2042_v26  ;;  %v5566_v22 = vld [vmem:[%s6835_s2 + $0x28] sm:$0xff]  }
 0x368   :  { %v5568_v26 = vld [vmem:[#allocation10 + $0x10] sm:$0xff]  }
 0x369   :  { %5665 = vpow2.f32 %v4636_v24 }
 0x36a   :  { %v1821_v27 = vpop.f32.mrb[48].mxu0  ;;  %5667 = vpow2.f32 %v4637_v29 }
 0x36b   :  { %v5211_v28 = vpop.f32.mrb[49].mxu0  ;;  %v1822_v55 = vadd.f32 %v6289_v40, %v1821_v27  ;;  %v5570_v27 = vld [vmem:[#allocation10 + $0x18] sm:$0xff]  }
 0x36c   :  { %v1824_v30 = vpop.f32.mrb[50].mxu0 }
 0x36d   :  { %v5212_v32 = vpop.f32.mrb[51].mxu0 }
 0x373   :  { %v5666_v33 = vpop.eup %5665 }
 0x374   :  { %v2039_v34 = vadd.f32 1.0, %v5666_v33  ;;  %v5668_v48 = vpop.eup %5667 }
 0x375   :  { %v2046_v54 = vadd.f32 1.0, %v5668_v48 }
 0x376   :  { %5669 = vrcp.f32 %v2039_v34 }
 0x377   :  { %v1887_v35 = vpop.f32.mrb[56].mxu1  ;;  %v1950_v36 = vpop.f32.mrb[52].mxu0 }
 0x378   :  { %v1888_v37 = vadd.f32 %v6287_v39, %v1887_v35  ;;  %v1951_v41 = vadd.f32 %v6282_v38, %v1950_v36  ;;  %v5219_v42 = vpop.f32.mrb[57].mxu1  ;;  %v5227_v43 = vpop.f32.mrb[53].mxu0  ;;  %v5571_v35 = vld [vmem:[#allocation10 + $0x20] sm:$0xff]  }
 0x379   :  { %v1890_v46 = vpop.f32.mrb[58].mxu1  ;;  %v1953_v47 = vpop.f32.mrb[54].mxu0  ;;  %v5575_v42 = vld [vmem:[%s6835_s2 + $0x8] sm:$0xff]   ;;  %v5576_v43 = vld [vmem:[%s6835_s2 + $0x18] sm:$0xff]  }
 0x37a   :  { %v2056_v49 = vadd.f32 %v2028_v44, %v1888_v37  ;;  %v5220_v50 = vpop.f32.mrb[59].mxu1  ;;  %v5228_v12 = vpop.f32.mrb[55].mxu0  ;;  %v2063_v53 = vadd.f32 %v2031_v51, %v1951_v41  ;;  %v5572_v37 = vld [vmem:[#allocation10 + $0x28] sm:$0xff]   ;;  %v5574_v41 = vld [vmem:[%s6835_s2 + $0x10] sm:$0xff]  }
 0x37b   :  { %v2472_v12 = vld [vmem:[#allocation2 + $0x18] sm:$0xff] }
 0x37c   :  { %v4638_v52 = vmul.f32 -1.442695, %v2056_v49  ;;  %v4639_v59 = vmul.f32 -1.442695, %v2063_v53 }
 0x37e   :  { %5671 = vpow2.f32 %v4638_v52 }
 0x37f   :  { %v2013_v56 = vpop.f32.mrb[60].mxu1  ;;  %5673 = vrcp.f32 %v2046_v54 }
 0x380   :  { %v5670_v58 = vpop.eup %5669  ;;  %v5235_v60 = vpop.f32.mrb[61].mxu1  ;;  %5675 = vpow2.f32 %v4639_v59  ;;  %v2014_v17 = vadd.f32 %v6297_v7, %v2013_v56  ;;  %v2475_v59 = vld [vmem:[#allocation2 + $0x58] sm:$0xff] }
 0x381   :  { %v2049_v61 = vmul.f32 %v5670_v58, %v1822_v55  ;;  %v2016_v62 = vpop.f32.mrb[62].mxu1 }
 0x382   :  { %v5236_v1 = vpop.f32.mrb[63].mxu1 }
 0x383   :  { %v2050_v2 = vadd.f32 %v2049_v61, %v2026_v0 }
 0x385   :  { %5677 = vtanh.f32 %v2050_v2 }
 0x388   :  { %v5672_v3 = vpop.eup %5671 }
 0x389   :  { %v2060_v4 = vadd.f32 1.0, %v5672_v3  ;;  %v5674_v5 = vpop.eup %5673 }
 0x38a   :  { %v5676_v6 = vpop.eup %5675  ;;  %v2052_v8 = vsub.f32 1.0, %v5674_v5  ;;  %v2054_v10 = vmul.f32 %v5674_v5, %v6364_v45 }
 0x38b   :  { %5679 = vrcp.f32 %v2060_v4  ;;  %v2067_v13 = vadd.f32 1.0, %v5676_v6 }
 0x38d   :  { %5681 = vrcp.f32 %v2067_v13 }
 0x38f   :  { %v5678_v9 = vpop.eup %5677 }
 0x390   :  { %v2053_v11 = vmul.f32 %v5678_v9, %v2052_v8 }
 0x392   :  { %v6433_v14 = vadd.f32 %v2054_v10, %v2053_v11  ;;  %v2480_v10 = vld [vmem:[#allocation3 + $0x20] sm:$0xff] }
 0x394   :  { %v2085_v18 = vpack.c.bf16 %v6433_v14, %v6433_v14  ;;  %2078 = vst.msk [vmem:[#allocation12 + $0x10] sm:$0xff] %vm149_vm0, %v6433_v14 }
 0x395   :  { %v5680_v20 = vpop.eup %5679 }
 0x396   :  { %v2070_v45 = vmul.f32 %v5680_v20, %v2014_v17  ;;  %5242 = vmatmul.mubr.msk.bf16.vlgmr.msra.gmra.mrb[56].mxu0 %vm149_vm0, %v2085_v18  ;;  %5250 = vmatmul.mubr.msk.bf16.vlgmr.msra.gmra.mrb[64].mxu1 %vm149_vm0, %v2085_v18  ;;  %v2483_v20 = vld [vmem:[#allocation3 + $0x60] sm:$0xff] }
 0x397   :  { %5254 = vmatpush3.bf16.msra.mxu0 %v5565_v16  ;;  %5257 = vmatprep.mubr.msk.bf16.mxu0 %vm5938_vm1, %v5937_v15  ;;  %v5682_v28 = vpop.eup %5681 }
 0x398   :  { %v2071_v24 = vadd.f32 %v2070_v45, %v2034_v21  ;;  %5255 = vmatprep.subr.bf16.mxu0 %v5937_v15  ;;  %5262 = vmatpush3.bf16.msra.mxu1 %v5567_v19  ;;  %v2073_v29 = vsub.f32 1.0, %v5682_v28  ;;  %v2075_v33 = vmul.f32 %v5682_v28, %v6393_v63  ;;  %v5573_v63 = vld [vmem:[%s6835_s2] sm:$0xff]  }
 0x399   :  { %5263 = vmatprep.subr.bf16.mxu1 %v5937_v15  ;;  %5265 = vmatprep.mubr.msk.bf16.mxu1 %vm5938_vm1, %v5937_v15 }
 0x39a   :  { %5683 = vtanh.f32 %v2071_v24 }
 0x39b   :  { %5256 = vmatpush3.bf16.msra.mxu0 %v5566_v22 }
 0x39c   :  { %5269 = vmatprep.subr.bf16.mxu0 %v5937_v15  ;;  %5264 = vmatpush3.bf16.msra.mxu1 %v5569_v25 }
 0x39d   :  { %5277 = vmatprep.subr.bf16.mxu1 %v5937_v15 }
 0x39e   :  { %5258 = vmatmul.mubr.msk.bf16.vlgmr.msra.gmra.mrb[60].mxu0 %vm149_vm0, %v2085_v18 }
 0x39f   :  { %5270 = vmatpush3.bf16.msra.mxu0 %v5568_v26  ;;  %5273 = vmatprep.mubr.msk.bf16.mxu0 %vm5938_vm1, %v5937_v15 }
 0x3a0   :  { %5271 = vmatprep.subr.bf16.mxu0 %v5937_v15 }
 0x3a3   :  { %5272 = vmatpush3.bf16.msra.mxu0 %v5570_v27 }
 0x3a4   :  { %v5684_v30 = vpop.eup %5683  ;;  %5285 = vmatprep.subr.bf16.mxu0 %v5937_v15 }
 0x3a5   :  { %v2074_v32 = vmul.f32 %v5684_v30, %v2073_v29  ;;  %v2478_v29 = vld [vmem:[#allocation2 + $0x98] sm:$0xff] }
 0x3a7   :  { %v6462_v34 = vadd.f32 %v2075_v33, %v2074_v32 }
 0x3a9   :  { %2080 = vrot.lane.b32.xlu1 %v6462_v34, %s5940_s18  ;;  %v2086_v36 = vpack.c.bf16 %v6462_v34, %v6462_v34 }
 0x3ab   :  { %5266 = vmatmul.mubr.msk.bf16.vlgmr.msra.gmra.mrb[68].mxu1 %vm149_vm0, %v2086_v36  ;;  %5274 = vmatmul.mubr.msk.bf16.vlgmr.msra.gmra.mrb[64].mxu0 %vm149_vm0, %v2086_v36 }
 0x3ac   :  { %5278 = vmatpush3.bf16.msra.mxu1 %v5571_v35  ;;  %5281 = vmatprep.mubr.msk.bf16.mxu1 %vm5938_vm1, %v5937_v15 }
 0x3ad   :  { %5279 = vmatprep.subr.bf16.mxu1 %v5937_v15  ;;  %5289 = vmatprep.mubr.msk.bf16.mxu0 %vm5938_vm1, %v5937_v15 }
 0x3ae   :  { %5286 = vmatpush3.bf16.msra.mxu0 %v5573_v63 }
 0x3af   :  { %5287 = vmatprep.subr.bf16.mxu0 %v5937_v15 }
 0x3b0   :  { %5280 = vmatpush3.bf16.msra.mxu1 %v5572_v37 }
 0x3b1   :  { %5293 = vmatprep.subr.bf16.mxu1 %v5937_v15 }
 0x3b2   :  { %5288 = vmatpush3.bf16.msra.mxu0 %v5575_v42 }
 0x3b3   :  { %5282 = vmatmul.mubr.msk.bf16.vlgmr.msra.gmra.mrb[72].mxu1 %vm149_vm0, %v2086_v36  ;;  %5301 = vmatprep.subr.bf16.mxu0 %v5937_v15 }
 0x3b4   :  { %5297 = vmatprep.mubr.msk.bf16.mxu1 %vm5938_vm1, %v5937_v15  ;;  %5294 = vmatpush3.bf16.msra.mxu1 %v5574_v41 }
 0x3b5   :  { %5295 = vmatprep.subr.bf16.mxu1 %v5937_v15 }
 0x3b8   :  { %5296 = vmatpush3.bf16.msra.mxu1 %v5576_v43 }
 0x3b9   :  { %5309 = vmatprep.subr.bf16.mxu1 %v5937_v15 }
 0x41b   :  { %v2081_v44 = vpop.permute.xlu1 %2080 }
 0x41c   :  { %2084 = vst.msk [vmem:[#allocation12 + $0x28] sm:$0xff] %vm1179_vm2, %v2081_v44 }
 0x469   :  { %v2147_v46 = vpop.f32.mrb[56].mxu0  ;;  %v2210_v47 = vpop.f32.mrb[64].mxu1 }
 0x46a   :  { %v2148_v48 = vadd.f32 %v6265_v57, %v2147_v46  ;;  %v5243_v49 = vpop.f32.mrb[57].mxu0  ;;  %v5251_v50 = vpop.f32.mrb[65].mxu1  ;;  %v2211_v51 = vadd.f32 %v6276_v23, %v2210_v47  ;;  %v5577_v46 = vld [vmem:[%s6835_s2 + $0x20] sm:$0xff]  }
 0x46b   :  { %v2150_v52 = vpop.f32.mrb[58].mxu0  ;;  %v2213_v53 = vpop.f32.mrb[66].mxu1  ;;  %v5579_v49 = vld [vmem:[#allocation10] sm:$0xff]  }
 0x46c   :  { %v2487_v54 = vadd.f32 %v2472_v12, %v2148_v48  ;;  %v5244_v55 = vpop.f32.mrb[59].mxu0  ;;  %v5252_v56 = vpop.f32.mrb[67].mxu1  ;;  %v2494_v60 = vadd.f32 %v2475_v59, %v2211_v51  ;;  %v2486_v12 = vld [vmem:[#allocation3 + $0xa0] sm:$0xff]  ;;  %v5580_v53 = vld [vmem:[#allocation10 + $0x10] sm:$0xff]  }
 0x46d   :  { %v5581_v52 = vld [vmem:[#allocation10 + $0x8] sm:$0xff]  }
 0x46e   :  { %v4674_v58 = vmul.f32 -1.442695, %v2487_v54  ;;  %v4675_v0 = vmul.f32 -1.442695, %v2494_v60  ;;  %v5582_v54 = vld [vmem:[#allocation10 + $0x18] sm:$0xff]  }
 0x470   :  { %5685 = vpow2.f32 %v4674_v58 }
 0x471   :  { %v2273_v61 = vpop.f32.mrb[60].mxu0  ;;  %5687 = vpow2.f32 %v4675_v0 }
 0x472   :  { %v5259_v62 = vpop.f32.mrb[61].mxu0  ;;  %v2274_v24 = vadd.f32 %v6289_v40, %v2273_v61 }
 0x473   :  { %v2276_v1 = vpop.f32.mrb[62].mxu0  ;;  %v5583_v62 = vld [vmem:[#allocation10 + $0x20] sm:$0xff]  }
 0x474   :  { %v5260_v2 = vpop.f32.mrb[63].mxu0  ;;  %v5584_v1 = vld [vmem:[#allocation10 + $0x28] sm:$0xff]  }
 0x475   :  { %v5586_v2 = vld [vmem:[%s6835_s2 + $0x10] sm:$0xff]  }
 0x47a   :  { %v5686_v57 = vpop.eup %5685 }
 0x47b   :  { %v2491_v3 = vadd.f32 1.0, %v5686_v57  ;;  %v5688_v16 = vpop.eup %5687  ;;  %v5587_v57 = vld [vmem:[%s6835_s2 + $0x8] sm:$0xff]  }
 0x47c   :  { %v2498_v22 = vadd.f32 1.0, %v5688_v16 }
 0x47d   :  { %5689 = vrcp.f32 %v2491_v3  ;;  %v5588_v3 = vld [vmem:[%s6835_s2 + $0x18] sm:$0xff]  }
 0x47e   :  { %v2339_v4 = vpop.f32.mrb[68].mxu1  ;;  %v2402_v23 = vpop.f32.mrb[64].mxu0 }
 0x47f   :  { %v2340_v5 = vadd.f32 %v6287_v39, %v2339_v4  ;;  %v2403_v6 = vadd.f32 %v6282_v38, %v2402_v23  ;;  %v5267_v8 = vpop.f32.mrb[69].mxu1  ;;  %v5275_v9 = vpop.f32.mrb[65].mxu0  ;;  %v6562_v4 = vld [vmem:[#allocation7] ss:$0 sm:$0xff]  ;;  %v6564_v23 = vld [vmem:[#allocation7 + $0x1] ss:$0 sm:$0xff] }
 0x480   :  { %v2342_v11 = vpop.f32.mrb[70].mxu1  ;;  %v2405_v13 = vpop.f32.mrb[66].mxu0 }
 0x481   :  { %v2508_v17 = vadd.f32 %v2480_v10, %v2340_v5  ;;  %v5268_v18 = vpop.f32.mrb[71].mxu1  ;;  %v5276_v19 = vpop.f32.mrb[67].mxu0  ;;  %v2515_v21 = vadd.f32 %v2483_v20, %v2403_v6  ;;  %v2924_v11 = vld [vmem:[#allocation2 + $0x20] sm:$0xff] }
 0x483   :  { %v4676_v45 = vmul.f32 -1.442695, %v2508_v17  ;;  %v4677_v26 = vmul.f32 -1.442695, %v2515_v21  ;;  %v2926_v21 = vld [vmem:[#allocation2 + $0x60] sm:$0xff] }
 0x485   :  { %5691 = vpow2.f32 %v4676_v45 }
 0x486   :  { %v2465_v25 = vpop.f32.mrb[72].mxu1  ;;  %5693 = vrcp.f32 %v2498_v22 }
 0x487   :  { %v5690_v39 = vpop.eup %5689  ;;  %v5283_v38 = vpop.f32.mrb[73].mxu1  ;;  %5695 = vpow2.f32 %v4677_v26  ;;  %v2466_v47 = vadd.f32 %v6297_v7, %v2465_v25  ;;  %v5578_v7 = vld [vmem:[%s6835_s2 + $0x28] sm:$0xff]  }
 0x488   :  { %v2501_v27 = vmul.f32 %v5690_v39, %v2274_v24  ;;  %v2468_v28 = vpop.f32.mrb[74].mxu1 }
 0x489   :  { %v5284_v30 = vpop.f32.mrb[75].mxu1 }
 0x48a   :  { %v2502_v32 = vadd.f32 %v2501_v27, %v2478_v29  ;;  %v6571_v29 = vld [vmem:[%s6841_s8] ss:$0 sm:$0xff]  ;;  %v6576_v30 = vld [vmem:[%s6841_s8 + $0x1] ss:$0 sm:$0xff] }
 0x48c   :  { %5697 = vtanh.f32 %v2502_v32 }
 0x48f   :  { %v5692_v33 = vpop.eup %5691 }
 0x490   :  { %v2512_v35 = vadd.f32 1.0, %v5692_v33  ;;  %v5694_v36 = vpop.eup %5693 }
 0x491   :  { %v5696_v37 = vpop.eup %5695  ;;  %v2504_v63 = vsub.f32 1.0, %v5694_v36  ;;  %v2506_v40 = vmul.f32 %v5694_v36, %v6433_v14 }
 0x492   :  { %5699 = vrcp.f32 %v2512_v35  ;;  %v2519_v43 = vadd.f32 1.0, %v5696_v37 }
 0x494   :  { %5701 = vrcp.f32 %v2519_v43 }
 0x496   :  { %v5698_v41 = vpop.eup %5697 }
 0x497   :  { %v2505_v42 = vmul.f32 %v5698_v41, %v2504_v63  ;;  %v2930_v41 = vld [vmem:[#allocation3 + $0x18] sm:$0xff] }
 0x499   :  { %v6502_v44 = vadd.f32 %v2506_v40, %v2505_v42 }
 0x49b   :  { %v2537_v48 = vpack.c.bf16 %v6502_v44, %v6502_v44  ;;  %2530 = vst.msk [vmem:[#allocation12 + $0x18] sm:$0xff] %vm149_vm0, %v6502_v44 }
 0x49c   :  { %v5700_v50 = vpop.eup %5699 }
 0x49d   :  { %v2522_v14 = vmul.f32 %v5700_v50, %v2466_v47  ;;  %5290 = vmatmul.mubr.msk.bf16.vlgmr.msra.gmra.mrb[68].mxu0 %vm149_vm0, %v2537_v48  ;;  %5298 = vmatmul.mubr.msk.bf16.vlgmr.msra.gmra.mrb[76].mxu1 %vm149_vm0, %v2537_v48  ;;  %v6580_v50 = vld [vmem:[#allocation7 + $0x2] ss:$0 sm:$0xff] }
 0x49e   :  { %5302 = vmatpush3.bf16.msra.mxu0 %v5577_v46  ;;  %5305 = vmatprep.mubr.msk.bf16.mxu0 %vm5938_vm1, %v5937_v15  ;;  %v5702_v55 = vpop.eup %5701 }
 0x49f   :  { %v2523_v51 = vadd.f32 %v2522_v14, %v2486_v12  ;;  %5303 = vmatprep.subr.bf16.mxu0 %v5937_v15  ;;  %5310 = vmatpush3.bf16.msra.mxu1 %v5579_v49  ;;  %v2525_v56 = vsub.f32 1.0, %v5702_v55  ;;  %v2527_v59 = vmul.f32 %v5702_v55, %v6462_v34  ;;  %v5585_v34 = vld [vmem:[%s6835_s2] sm:$0xff]   ;;  %v2932_v49 = vld [vmem:[#allocation3 + $0x58] sm:$0xff] }
 0x4a0   :  { %5311 = vmatprep.subr.bf16.mxu1 %v5937_v15  ;;  %5313 = vmatprep.mubr.msk.bf16.mxu1 %vm5938_vm1, %v5937_v15 }
 0x4a1   :  { %5703 = vtanh.f32 %v2523_v51 }
 0x4a2   :  { %5304 = vmatpush3.bf16.msra.mxu0 %v5578_v7 }
 0x4a3   :  { %5317 = vmatprep.subr.bf16.mxu0 %v5937_v15  ;;  %5312 = vmatpush3.bf16.msra.mxu1 %v5581_v52 }
 0x4a4   :  { %5325 = vmatprep.subr.bf16.mxu1 %v5937_v15 }
 0x4a5   :  { %5306 = vmatmul.mubr.msk.bf16.vlgmr.msra.gmra.mrb[72].mxu0 %vm149_vm0, %v2537_v48 }
 0x4a6   :  { %5318 = vmatpush3.bf16.msra.mxu0 %v5580_v53  ;;  %5321 = vmatprep.mubr.msk.bf16.mxu0 %vm5938_vm1, %v5937_v15 }
 0x4a7   :  { %5319 = vmatprep.subr.bf16.mxu0 %v5937_v15 }
 0x4aa   :  { %5320 = vmatpush3.bf16.msra.mxu0 %v5582_v54 }
 0x4ab   :  { %v5704_v58 = vpop.eup %5703  ;;  %5333 = vmatprep.subr.bf16.mxu0 %v5937_v15 }
 0x4ac   :  { %v2526_v60 = vmul.f32 %v5704_v58, %v2525_v56 }
 0x4ae   :  { %v6531_v61 = vadd.f32 %v2527_v59, %v2526_v60  ;;  %v2928_v59 = vld [vmem:[#allocation2 + $0xa0] sm:$0xff] }
 0x4b0   :  { %v2538_v0 = vpack.c.bf16 %v6531_v61, %v6531_v61 }
 0x4b2   :  { %5314 = vmatmul.mubr.msk.bf16.vlgmr.msra.gmra.mrb[80].mxu1 %vm149_vm0, %v2538_v0  ;;  %5322 = vmatmul.mubr.msk.bf16.vlgmr.msra.gmra.mrb[76].mxu0 %vm149_vm0, %v2538_v0 }
 0x4b3   :  { %5326 = vmatpush3.bf16.msra.mxu1 %v5583_v62  ;;  %5329 = vmatprep.mubr.msk.bf16.mxu1 %vm5938_vm1, %v5937_v15 }
 0x4b4   :  { %5327 = vmatprep.subr.bf16.mxu1 %v5937_v15  ;;  %5337 = vmatprep.mubr.msk.bf16.mxu0 %vm5938_vm1, %v5937_v15 }
 0x4b5   :  { %5334 = vmatpush3.bf16.msra.mxu0 %v5585_v34 }
 0x4b6   :  { %5335 = vmatprep.subr.bf16.mxu0 %v5937_v15 }
 0x4b7   :  { %5328 = vmatpush3.bf16.msra.mxu1 %v5584_v1 }
 0x4b8   :  { %5341 = vmatprep.subr.bf16.mxu1 %v5937_v15 }
 0x4b9   :  { %5336 = vmatpush3.bf16.msra.mxu0 %v5587_v57 }
 0x4ba   :  { %5330 = vmatmul.mubr.msk.bf16.vlgmr.msra.gmra.mrb[84].mxu1 %vm149_vm0, %v2538_v0  ;;  %5349 = vmatprep.subr.bf16.mxu0 %v5937_v15 }
 0x4bb   :  { %5345 = vmatprep.mubr.msk.bf16.mxu1 %vm5938_vm1, %v5937_v15  ;;  %5342 = vmatpush3.bf16.msra.mxu1 %v5586_v2 }
 0x4bc   :  { %5343 = vmatprep.subr.bf16.mxu1 %v5937_v15 }
 0x4bf   :  { %5344 = vmatpush3.bf16.msra.mxu1 %v5588_v3 }
 0x4c0   :  { %5357 = vmatprep.subr.bf16.mxu1 %v5937_v15 }
 0x570   :  { %v2599_v5 = vpop.f32.mrb[68].mxu0  ;;  %v2662_v6 = vpop.f32.mrb[76].mxu1 }
 0x571   :  { %v2600_v8 = vadd.f32 %v6562_v4, %v2599_v5  ;;  %v5291_v9 = vpop.f32.mrb[69].mxu0  ;;  %v5299_v10 = vpop.f32.mrb[77].mxu1  ;;  %v2663_v13 = vadd.f32 %v6564_v23, %v2662_v6 }
 0x572   :  { %v2602_v16 = vpop.f32.mrb[70].mxu0  ;;  %v2665_v17 = vpop.f32.mrb[78].mxu1 }
 0x573   :  { %v2935_v18 = vadd.f32 %v2924_v11, %v2600_v8  ;;  %v5292_v19 = vpop.f32.mrb[71].mxu0  ;;  %v5300_v20 = vpop.f32.mrb[79].mxu1  ;;  %v2942_v22 = vadd.f32 %v2926_v21, %v2663_v13  ;;  %v6587_v8 = vld [vmem:[%s6841_s8 + $0x2] ss:$0 sm:$0xff]  ;;  %v5591_v17 = vld [vmem:[#allocation10] sm:$0xff]  }
 0x574   :  { %v5589_v11 = vld [vmem:[%s6835_s2 + $0x20] sm:$0xff]   ;;  %v2934_v19 = vld [vmem:[#allocation3 + $0x98] sm:$0xff]  ;;  %v5590_v20 = vld [vmem:[%s6835_s2 + $0x28] sm:$0xff]  }
 0x575   :  { %v4712_v45 = vmul.f32 -1.442695, %v2935_v18  ;;  %v4713_v39 = vmul.f32 -1.442695, %v2942_v22  ;;  %v5593_v21 = vld [vmem:[#allocation10 + $0x8] sm:$0xff]   ;;  %v5592_v22 = vld [vmem:[#allocation10 + $0x10] sm:$0xff]  }
 0x577   :  { %5705 = vpow2.f32 %v4712_v45 }
 0x578   :  { %v2725_v24 = vpop.f32.mrb[72].mxu0  ;;  %5707 = vpow2.f32 %v4713_v39 }
 0x579   :  { %v5307_v25 = vpop.f32.mrb[73].mxu0  ;;  %v2726_v51 = vadd.f32 %v6580_v50, %v2725_v24  ;;  %v5594_v24 = vld [vmem:[#allocation10 + $0x18] sm:$0xff]  }
 0x57a   :  { %v2728_v26 = vpop.f32.mrb[74].mxu0 }
 0x57b   :  { %v5308_v38 = vpop.f32.mrb[75].mxu0 }
 0x581   :  { %v5706_v27 = vpop.eup %5705 }
 0x582   :  { %v2939_v28 = vadd.f32 1.0, %v5706_v27  ;;  %v5708_v43 = vpop.eup %5707 }
 0x583   :  { %v2946_v7 = vadd.f32 1.0, %v5708_v43 }
 0x584   :  { %5709 = vrcp.f32 %v2939_v28 }
 0x585   :  { %v2791_v32 = vpop.f32.mrb[80].mxu1  ;;  %v2854_v33 = vpop.f32.mrb[76].mxu0 }
 0x586   :  { %v2792_v35 = vadd.f32 %v6571_v29, %v2791_v32  ;;  %v2855_v36 = vadd.f32 %v6576_v30, %v2854_v33  ;;  %v5315_v37 = vpop.f32.mrb[81].mxu1  ;;  %v5323_v63 = vpop.f32.mrb[77].mxu0  ;;  %v5595_v32 = vld [vmem:[#allocation10 + $0x20] sm:$0xff]  }
 0x587   :  { %v2794_v40 = vpop.f32.mrb[82].mxu1  ;;  %v2857_v42 = vpop.f32.mrb[78].mxu0  ;;  %v5598_v37 = vld [vmem:[%s6835_s2 + $0x10] sm:$0xff]   ;;  %v5599_v63 = vld [vmem:[%s6835_s2 + $0x8] sm:$0xff]  }
 0x588   :  { %v2956_v46 = vadd.f32 %v2930_v41, %v2792_v35  ;;  %v5316_v47 = vpop.f32.mrb[83].mxu1  ;;  %v5324_v48 = vpop.f32.mrb[79].mxu0  ;;  %v2963_v12 = vadd.f32 %v2932_v49, %v2855_v36  ;;  %v5596_v35 = vld [vmem:[#allocation10 + $0x28] sm:$0xff]   ;;  %v5600_v41 = vld [vmem:[%s6835_s2 + $0x18] sm:$0xff]   ;;  %v3370_v49 = vld [vmem:[#allocation2 + $0x28] sm:$0xff] }
 0x589   :  { %v5597_v36 = vld [vmem:[%s6835_s2] sm:$0xff]  }
 0x58a   :  { %v4714_v14 = vmul.f32 -1.442695, %v2956_v46  ;;  %v4715_v54 = vmul.f32 -1.442695, %v2963_v12 }
 0x58c   :  { %5711 = vpow2.f32 %v4714_v14 }
 0x58d   :  { %v2917_v52 = vpop.f32.mrb[84].mxu1  ;;  %5713 = vrcp.f32 %v2946_v7 }
 0x58e   :  { %v5710_v53 = vpop.eup %5709  ;;  %v5331_v55 = vpop.f32.mrb[85].mxu1  ;;  %5715 = vpow2.f32 %v4715_v54  ;;  %v2918_v13 = vadd.f32 %v6587_v8, %v2917_v52 }
 0x58f   :  { %v2949_v56 = vmul.f32 %v5710_v53, %v2726_v51  ;;  %v2920_v58 = vpop.f32.mrb[86].mxu1  ;;  %v3372_v55 = vld [vmem:[#allocation2 + $0x68] sm:$0xff] }
 0x590   :  { %v5332_v60 = vpop.f32.mrb[87].mxu1 }
 0x591   :  { %v2950_v62 = vadd.f32 %v2949_v56, %v2928_v59 }
 0x593   :  { %5717 = vtanh.f32 %v2950_v62 }
 0x596   :  { %v5712_v0 = vpop.eup %5711 }
 0x597   :  { %v2960_v1 = vadd.f32 1.0, %v5712_v0  ;;  %v5714_v34 = vpop.eup %5713 }
 0x598   :  { %v5716_v2 = vpop.eup %5715  ;;  %v2952_v57 = vsub.f32 1.0, %v5714_v34  ;;  %v2954_v5 = vmul.f32 %v5714_v34, %v6502_v44 }
 0x599   :  { %5719 = vrcp.f32 %v2960_v1  ;;  %v2967_v9 = vadd.f32 1.0, %v5716_v2 }
 0x59b   :  { %5721 = vrcp.f32 %v2967_v9 }
 0x59d   :  { %v5718_v3 = vpop.eup %5717 }
 0x59e   :  { %v2953_v6 = vmul.f32 %v5718_v3, %v2952_v57 }
 0x5a0   :  { %v6589_v10 = vadd.f32 %v2954_v5, %v2953_v6 }
 0x5a2   :  { %v2983_v16 = vpack.c.bf16 %v6589_v10, %v6589_v10 }
 0x5a3   :  { %v5720_v44 = vpop.eup %5719 }
 0x5a4   :  { %v2970_v18 = vmul.f32 %v5720_v44, %v2918_v13  ;;  %5338 = vmatmul.mubr.msk.bf16.vlgmr.msra.gmra.mrb[80].mxu0 %vm149_vm0, %v2983_v16  ;;  %5346 = vmatmul.mubr.msk.bf16.vlgmr.msra.gmra.mrb[88].mxu1 %vm149_vm0, %v2983_v16 }
 0x5a5   :  { %5350 = vmatpush3.bf16.msra.mxu0 %v5589_v11  ;;  %5353 = vmatprep.mubr.msk.bf16.mxu0 %vm5938_vm1, %v5937_v15  ;;  %v5722_v25 = vpop.eup %5721  ;;  %v3376_v11 = vld [vmem:[#allocation3 + $0x10] sm:$0xff] }
 0x5a6   :  { %v2971_v45 = vadd.f32 %v2970_v18, %v2934_v19  ;;  %5351 = vmatprep.subr.bf16.mxu0 %v5937_v15  ;;  %5358 = vmatpush3.bf16.msra.mxu1 %v5591_v17  ;;  %v2973_v39 = vsub.f32 1.0, %v5722_v25  ;;  %v2975_v27 = vmul.f32 %v5722_v25, %v6531_v61 }
 0x5a7   :  { %5359 = vmatprep.subr.bf16.mxu1 %v5937_v15  ;;  %5361 = vmatprep.mubr.msk.bf16.mxu1 %vm5938_vm1, %v5937_v15 }
 0x5a8   :  { %5723 = vtanh.f32 %v2971_v45 }
 0x5a9   :  { %5352 = vmatpush3.bf16.msra.mxu0 %v5590_v20  ;;  %v3378_v20 = vld [vmem:[#allocation3 + $0x50] sm:$0xff] }
 0x5aa   :  { %5365 = vmatprep.subr.bf16.mxu0 %v5937_v15  ;;  %5360 = vmatpush3.bf16.msra.mxu1 %v5593_v21 }
 0x5ab   :  { %5373 = vmatprep.subr.bf16.mxu1 %v5937_v15 }
 0x5ac   :  { %5354 = vmatmul.mubr.msk.bf16.vlgmr.msra.gmra.mrb[84].mxu0 %vm149_vm0, %v2983_v16 }
 0x5ad   :  { %5366 = vmatpush3.bf16.msra.mxu0 %v5592_v22  ;;  %5369 = vmatprep.mubr.msk.bf16.mxu0 %vm5938_vm1, %v5937_v15 }
 0x5ae   :  { %5367 = vmatprep.subr.bf16.mxu0 %v5937_v15 }
 0x5b1   :  { %5368 = vmatpush3.bf16.msra.mxu0 %v5594_v24 }
 0x5b2   :  { %v5724_v26 = vpop.eup %5723  ;;  %5381 = vmatprep.subr.bf16.mxu0 %v5937_v15 }
 0x5b3   :  { %v2974_v38 = vmul.f32 %v5724_v26, %v2973_v39 }
 0x5b5   :  { %v6616_v28 = vadd.f32 %v2975_v27, %v2974_v38 }
 0x5b7   :  { %2979 = vrot.lane.b32.xlu1 %v6616_v28, %s5940_s18  ;;  %v2984_v33 = vpack.c.bf16 %v6616_v28, %v6616_v28 }
 0x5b9   :  { %5362 = vmatmul.mubr.msk.bf16.vlgmr.msra.gmra.mrb[92].mxu1 %vm149_vm0, %v2984_v33  ;;  %5370 = vmatmul.mubr.msk.bf16.vlgmr.msra.gmra.mrb[88].mxu0 %vm149_vm0, %v2984_v33 }
 0x5ba   :  { %5374 = vmatpush3.bf16.msra.mxu1 %v5595_v32  ;;  %5377 = vmatprep.mubr.msk.bf16.mxu1 %vm5938_vm1, %v5937_v15 }
 0x5bb   :  { %5375 = vmatprep.subr.bf16.mxu1 %v5937_v15  ;;  %5385 = vmatprep.mubr.msk.bf16.mxu0 %vm5938_vm1, %v5937_v15 }
 0x5bc   :  { %5382 = vmatpush3.bf16.msra.mxu0 %v5597_v36 }
 0x5bd   :  { %5383 = vmatprep.subr.bf16.mxu0 %v5937_v15 }
 0x5be   :  { %5376 = vmatpush3.bf16.msra.mxu1 %v5596_v35 }
 0x5bf   :  { %5389 = vmatprep.subr.bf16.mxu1 %v5937_v15 }
 0x5c0   :  { %5384 = vmatpush3.bf16.msra.mxu0 %v5599_v63 }
 0x5c1   :  { %5378 = vmatmul.mubr.msk.bf16.vlgmr.msra.gmra.mrb[96].mxu1 %vm149_vm0, %v2984_v33  ;;  %5397 = vmatprep.subr.bf16.mxu0 %v5937_v15  ;;  %v3374_v33 = vld [vmem:[#allocation2 + $0xa8] sm:$0xff] }
 0x5c2   :  { %5393 = vmatprep.mubr.msk.bf16.mxu1 %vm5938_vm1, %v5937_v15  ;;  %5390 = vmatpush3.bf16.msra.mxu1 %v5598_v37 }
 0x5c3   :  { %5391 = vmatprep.subr.bf16.mxu1 %v5937_v15 }
 0x5c6   :  { %5392 = vmatpush3.bf16.msra.mxu1 %v5600_v41 }
 0x5c7   :  { %5405 = vmatprep.subr.bf16.mxu1 %v5937_v15 }
 0x629   :  { %v2980_v40 = vpop.permute.xlu1 %2979 }
 0x62a   :  { %2982 = vst.msk [vmem:[#allocation12 + $0x18] sm:$0xff] %vm1179_vm2, %v2980_v40 }
 0x677   :  { %v3045_v42 = vpop.f32.mrb[80].mxu0  ;;  %v3108_v43 = vpop.f32.mrb[88].mxu1 }
 0x678   :  { %v3046_v46 = vadd.f32 %v6562_v4, %v3045_v42  ;;  %v5339_v47 = vpop.f32.mrb[81].mxu0  ;;  %v5347_v48 = vpop.f32.mrb[89].mxu1  ;;  %v3109_v14 = vadd.f32 %v6564_v23, %v3108_v43 }
 0x679   :  { %v3048_v12 = vpop.f32.mrb[82].mxu0  ;;  %v3111_v7 = vpop.f32.mrb[90].mxu1 }
 0x67a   :  { %v3381_v51 = vadd.f32 %v3370_v49, %v3046_v46  ;;  %v5340_v52 = vpop.f32.mrb[83].mxu0  ;;  %v5348_v53 = vpop.f32.mrb[91].mxu1  ;;  %v3388_v56 = vadd.f32 %v3372_v55, %v3109_v14  ;;  %v5601_v14 = vld [vmem:[%s6835_s2 + $0x20] sm:$0xff]   ;;  %v5602_v55 = vld [vmem:[%s6835_s2 + $0x28] sm:$0xff]  }
 0x67c   :  { %v4750_v54 = vmul.f32 -1.442695, %v3381_v51  ;;  %v4751_v60 = vmul.f32 -1.442695, %v3388_v56  ;;  %v5603_v51 = vld [vmem:[#allocation10] sm:$0xff]  }
 0x67e   :  { %5725 = vpow2.f32 %v4750_v54  ;;  %v3380_v54 = vld [vmem:[#allocation3 + $0x90] sm:$0xff] }
 0x67f   :  { %v3171_v58 = vpop.f32.mrb[84].mxu0  ;;  %5727 = vpow2.f32 %v4751_v60  ;;  %v5606_v60 = vld [vmem:[#allocation10 + $0x18] sm:$0xff]  }
 0x680   :  { %v5355_v59 = vpop.f32.mrb[85].mxu0  ;;  %v3172_v24 = vadd.f32 %v6580_v50, %v3171_v58  ;;  %v5605_v58 = vld [vmem:[#allocation10 + $0x8] sm:$0xff]  }
 0x681   :  { %v3174_v62 = vpop.f32.mrb[86].mxu0  ;;  %v5604_v59 = vld [vmem:[#allocation10 + $0x10] sm:$0xff]  }
 0x682   :  { %v5356_v0 = vpop.f32.mrb[87].mxu0 }
 0x688   :  { %v5726_v1 = vpop.eup %5725 }
 0x689   :  { %v3385_v34 = vadd.f32 1.0, %v5726_v1  ;;  %v5728_v17 = vpop.eup %5727 }
 0x68a   :  { %v3392_v22 = vadd.f32 1.0, %v5728_v17 }
 0x68b   :  { %5729 = vrcp.f32 %v3385_v34 }
 0x68c   :  { %v3237_v2 = vpop.f32.mrb[92].mxu1  ;;  %v3300_v57 = vpop.f32.mrb[88].mxu0 }
 0x68d   :  { %v3238_v3 = vadd.f32 %v6571_v29, %v3237_v2  ;;  %v3301_v5 = vadd.f32 %v6576_v30, %v3300_v57  ;;  %v5363_v6 = vpop.f32.mrb[93].mxu1  ;;  %v5371_v9 = vpop.f32.mrb[89].mxu0 }
 0x68e   :  { %v3240_v13 = vpop.f32.mrb[94].mxu1  ;;  %v3303_v16 = vpop.f32.mrb[90].mxu0  ;;  %v5608_v6 = vld [vmem:[#allocation10 + $0x28] sm:$0xff]   ;;  %v5610_v9 = vld [vmem:[%s6835_s2 + $0x10] sm:$0xff]  }
 0x68f   :  { %v3402_v44 = vadd.f32 %v3376_v11, %v3238_v3  ;;  %v5364_v18 = vpop.f32.mrb[95].mxu1  ;;  %v5372_v19 = vpop.f32.mrb[91].mxu0  ;;  %v3409_v21 = vadd.f32 %v3378_v20, %v3301_v5  ;;  %v5607_v3 = vld [vmem:[#allocation10 + $0x20] sm:$0xff]   ;;  %v5611_v11 = vld [vmem:[%s6835_s2 + $0x8] sm:$0xff]   ;;  %v3816_v20 = vld [vmem:[#allocation2 + $0x30] sm:$0xff] }
 0x690   :  { %v5612_v13 = vld [vmem:[%s6835_s2 + $0x18] sm:$0xff]  }
 0x691   :  { %v4752_v45 = vmul.f32 -1.442695, %v3402_v44  ;;  %v4753_v26 = vmul.f32 -1.442695, %v3409_v21 }
 0x693   :  { %5731 = vpow2.f32 %v4752_v45 }
 0x694   :  { %v3363_v25 = vpop.f32.mrb[96].mxu1  ;;  %5733 = vrcp.f32 %v3392_v22 }
 0x695   :  { %v5730_v39 = vpop.eup %5729  ;;  %v5379_v38 = vpop.f32.mrb[97].mxu1  ;;  %5735 = vpow2.f32 %v4753_v26  ;;  %v3364_v12 = vadd.f32 %v6587_v8, %v3363_v25 }
 0x696   :  { %v3395_v27 = vmul.f32 %v5730_v39, %v3172_v24  ;;  %v3366_v32 = vpop.f32.mrb[98].mxu1  ;;  %v3818_v38 = vld [vmem:[#allocation2 + $0x70] sm:$0xff] }
 0x697   :  { %v5380_v35 = vpop.f32.mrb[99].mxu1 }
 0x698   :  { %v3396_v36 = vadd.f32 %v3395_v27, %v3374_v33 }
 0x69a   :  { %5737 = vtanh.f32 %v3396_v36 }
 0x69d   :  { %v5732_v37 = vpop.eup %5731 }
 0x69e   :  { %v3406_v63 = vadd.f32 1.0, %v5732_v37  ;;  %v5734_v41 = vpop.eup %5733 }
 0x69f   :  { %v5736_v40 = vpop.eup %5735  ;;  %v3398_v42 = vsub.f32 1.0, %v5734_v41  ;;  %v3400_v46 = vmul.f32 %v5734_v41, %v6589_v10 }
 0x6a0   :  { %5739 = vrcp.f32 %v3406_v63  ;;  %v3413_v48 = vadd.f32 1.0, %v5736_v40 }
 0x6a2   :  { %5741 = vrcp.f32 %v3413_v48 }
 0x6a4   :  { %v5738_v43 = vpop.eup %5737 }
 0x6a5   :  { %v3399_v47 = vmul.f32 %v5738_v43, %v3398_v42 }
 0x6a7   :  { %v6656_v49 = vadd.f32 %v3400_v46, %v3399_v47 }
 0x6a9   :  { %3423 = vst.msk [vmem:[#allocation12 + $0x28] sm:$0xff] %vm149_vm0, %v6656_v49  ;;  %v3429_v7 = vpack.c.bf16 %v6656_v49, %v6656_v49 }
 0x6aa   :  { %v5740_v52 = vpop.eup %5739 }
 0x6ab   :  { %v3416_v53 = vmul.f32 %v5740_v52, %v3364_v12  ;;  %5386 = vmatmul.mubr.msk.bf16.vlgmr.msra.gmra.mrb[92].mxu0 %vm149_vm0, %v3429_v7  ;;  %5394 = vmatmul.mubr.msk.bf16.vlgmr.msra.gmra.mrb[100].mxu1 %vm149_vm0, %v3429_v7 }
 0x6ac   :  { %5398 = vmatpush3.bf16.msra.mxu0 %v5601_v14  ;;  %5401 = vmatprep.mubr.msk.bf16.mxu0 %vm5938_vm1, %v5937_v15  ;;  %v5742_v62 = vpop.eup %5741  ;;  %v3822_v14 = vld [vmem:[#allocation3 + $0x8] sm:$0xff] }
 0x6ad   :  { %v3417_v56 = vadd.f32 %v3416_v53, %v3380_v54  ;;  %5399 = vmatprep.subr.bf16.mxu0 %v5937_v15  ;;  %5406 = vmatpush3.bf16.msra.mxu1 %v5603_v51  ;;  %v3419_v0 = vsub.f32 1.0, %v5742_v62  ;;  %v3421_v34 = vmul.f32 %v5742_v62, %v6616_v28  ;;  %v5609_v28 = vld [vmem:[%s6835_s2] sm:$0xff]  }
 0x6ae   :  { %5407 = vmatprep.subr.bf16.mxu1 %v5937_v15  ;;  %5409 = vmatprep.mubr.msk.bf16.mxu1 %vm5938_vm1, %v5937_v15 }
 0x6af   :  { %5743 = vtanh.f32 %v3417_v56 }
 0x6b0   :  { %5400 = vmatpush3.bf16.msra.mxu0 %v5602_v55  ;;  %v3824_v55 = vld [vmem:[#allocation3 + $0x48] sm:$0xff] }
 0x6b1   :  { %5413 = vmatprep.subr.bf16.mxu0 %v5937_v15  ;;  %5408 = vmatpush3.bf16.msra.mxu1 %v5605_v58 }
 0x6b2   :  { %5421 = vmatprep.subr.bf16.mxu1 %v5937_v15 }
 0x6b3   :  { %5402 = vmatmul.mubr.msk.bf16.vlgmr.msra.gmra.mrb[96].mxu0 %vm149_vm0, %v3429_v7 }
 0x6b4   :  { %5414 = vmatpush3.bf16.msra.mxu0 %v5604_v59  ;;  %5417 = vmatprep.mubr.msk.bf16.mxu0 %vm5938_vm1, %v5937_v15 }
 0x6b5   :  { %5415 = vmatprep.subr.bf16.mxu0 %v5937_v15 }
 0x6b8   :  { %5416 = vmatpush3.bf16.msra.mxu0 %v5606_v60 }
 0x6b9   :  { %v5744_v1 = vpop.eup %5743  ;;  %5429 = vmatprep.subr.bf16.mxu0 %v5937_v15 }
 0x6ba   :  { %v3420_v2 = vmul.f32 %v5744_v1, %v3419_v0 }
 0x6bc   :  { %v6685_v57 = vadd.f32 %v3421_v34, %v3420_v2 }
 0x6be   :  { %v3430_v5 = vpack.c.bf16 %v6685_v57, %v6685_v57 }
 0x6c0   :  { %5410 = vmatmul.mubr.msk.bf16.vlgmr.msra.gmra.mrb[104].mxu1 %vm149_vm0, %v3430_v5  ;;  %5418 = vmatmul.mubr.msk.bf16.vlgmr.msra.gmra.mrb[100].mxu0 %vm149_vm0, %v3430_v5 }
 0x6c1   :  { %5422 = vmatpush3.bf16.msra.mxu1 %v5607_v3  ;;  %5425 = vmatprep.mubr.msk.bf16.mxu1 %vm5938_vm1, %v5937_v15 }
 0x6c2   :  { %5423 = vmatprep.subr.bf16.mxu1 %v5937_v15  ;;  %5433 = vmatprep.mubr.msk.bf16.mxu0 %vm5938_vm1, %v5937_v15 }
 0x6c3   :  { %5430 = vmatpush3.bf16.msra.mxu0 %v5609_v28 }
 0x6c4   :  { %5431 = vmatprep.subr.bf16.mxu0 %v5937_v15 }
 0x6c5   :  { %5424 = vmatpush3.bf16.msra.mxu1 %v5608_v6 }
 0x6c6   :  { %5437 = vmatprep.subr.bf16.mxu1 %v5937_v15 }
 0x6c7   :  { %5432 = vmatpush3.bf16.msra.mxu0 %v5611_v11 }
 0x6c8   :  { %5426 = vmatmul.mubr.msk.bf16.vlgmr.msra.gmra.mrb[108].mxu1 %vm149_vm0, %v3430_v5  ;;  %5445 = vmatprep.subr.bf16.mxu0 %v5937_v15  ;;  %v3820_v5 = vld [vmem:[#allocation2 + $0xb0] sm:$0xff] }
 0x6c9   :  { %5441 = vmatprep.mubr.msk.bf16.mxu1 %vm5938_vm1, %v5937_v15  ;;  %5438 = vmatpush3.bf16.msra.mxu1 %v5610_v9 }
 0x6ca   :  { %5439 = vmatprep.subr.bf16.mxu1 %v5937_v15 }
 0x6cd   :  { %5440 = vmatpush3.bf16.msra.mxu1 %v5612_v13 }
 0x6ce   :  { %5453 = vmatprep.subr.bf16.mxu1 %v5937_v15 }
 0x77e   :  { %v3491_v16 = vpop.f32.mrb[92].mxu0  ;;  %v3554_v17 = vpop.f32.mrb[100].mxu1 }
 0x77f   :  { %v3492_v44 = vadd.f32 %v6562_v4, %v3491_v16  ;;  %v5387_v18 = vpop.f32.mrb[93].mxu0  ;;  %v5395_v19 = vpop.f32.mrb[101].mxu1  ;;  %v3555_v45 = vadd.f32 %v6564_v23, %v3554_v17 }
 0x780   :  { %v3494_v21 = vpop.f32.mrb[94].mxu0  ;;  %v3557_v22 = vpop.f32.mrb[102].mxu1 }
 0x781   :  { %v3827_v24 = vadd.f32 %v3816_v20, %v3492_v44  ;;  %v5388_v25 = vpop.f32.mrb[95].mxu0  ;;  %v5396_v39 = vpop.f32.mrb[103].mxu1  ;;  %v3834_v27 = vadd.f32 %v3818_v38, %v3555_v45  ;;  %v5613_v21 = vld [vmem:[%s6835_s2 + $0x20] sm:$0xff]   ;;  %v5614_v38 = vld [vmem:[%s6835_s2 + $0x28] sm:$0xff]  }
 0x782   :  { %v5615_v25 = vld [vmem:[#allocation10] sm:$0xff]  }
 0x783   :  { %v4788_v26 = vmul.f32 -1.442695, %v3827_v24  ;;  %v4789_v35 = vmul.f32 -1.442695, %v3834_v27 }
 0x785   :  { %5745 = vpow2.f32 %v4788_v26  ;;  %v3826_v26 = vld [vmem:[#allocation3 + $0x88] sm:$0xff] }
 0x786   :  { %v3617_v32 = vpop.f32.mrb[96].mxu0  ;;  %5747 = vpow2.f32 %v4789_v35  ;;  %v5618_v35 = vld [vmem:[#allocation10 + $0x18] sm:$0xff]  }
 0x787   :  { %v5403_v33 = vpop.f32.mrb[97].mxu0  ;;  %v3618_v60 = vadd.f32 %v6580_v50, %v3617_v32  ;;  %v5617_v32 = vld [vmem:[#allocation10 + $0x8] sm:$0xff]  }
 0x788   :  { %v3620_v36 = vpop.f32.mrb[98].mxu0  ;;  %v5616_v33 = vld [vmem:[#allocation10 + $0x10] sm:$0xff]  }
 0x789   :  { %v5404_v37 = vpop.f32.mrb[99].mxu0 }
 0x78f   :  { %v5746_v63 = vpop.eup %5745 }
 0x790   :  { %v3831_v41 = vadd.f32 1.0, %v5746_v63  ;;  %v5748_v51 = vpop.eup %5747 }
 0x791   :  { %v3838_v59 = vadd.f32 1.0, %v5748_v51 }
 0x792   :  { %5749 = vrcp.f32 %v3831_v41 }
 0x793   :  { %v3683_v40 = vpop.f32.mrb[104].mxu1  ;;  %v3746_v42 = vpop.f32.mrb[100].mxu0 }
 0x794   :  { %v3684_v43 = vadd.f32 %v6571_v29, %v3683_v40  ;;  %v3747_v46 = vadd.f32 %v6576_v30, %v3746_v42  ;;  %v5411_v47 = vpop.f32.mrb[105].mxu1  ;;  %v5419_v48 = vpop.f32.mrb[101].mxu0 }
 0x795   :  { %v3686_v12 = vpop.f32.mrb[106].mxu1  ;;  %v3749_v7 = vpop.f32.mrb[102].mxu0  ;;  %v5620_v47 = vld [vmem:[#allocation10 + $0x28] sm:$0xff]  }
 0x796   :  { %v3848_v52 = vadd.f32 %v3822_v14, %v3684_v43  ;;  %v5412_v53 = vpop.f32.mrb[107].mxu1  ;;  %v5420_v54 = vpop.f32.mrb[103].mxu0  ;;  %v3855_v58 = vadd.f32 %v3824_v55, %v3747_v46  ;;  %v5619_v43 = vld [vmem:[#allocation10 + $0x20] sm:$0xff]   ;;  %v5621_v14 = vld [vmem:[%s6842_s9] sm:$0xff]   ;;  %v5622_v12 = vld [vmem:[%s6842_s9 + $0x8] sm:$0xff]  }
 0x797   :  { %v5623_v7 = vld [vmem:[%s6842_s9 + $0x10] sm:$0xff]  }
 0x798   :  { %v4790_v56 = vmul.f32 -1.442695, %v3848_v52  ;;  %v4791_v1 = vmul.f32 -1.442695, %v3855_v58 }
 0x79a   :  { %5751 = vpow2.f32 %v4790_v56  ;;  %v4262_v56 = vld [vmem:[#allocation2 + $0x38] sm:$0xff] }
 0x79b   :  { %v3809_v62 = vpop.f32.mrb[108].mxu1  ;;  %5753 = vrcp.f32 %v3838_v59 }
 0x79c   :  { %v5750_v0 = vpop.eup %5749  ;;  %v5427_v34 = vpop.f32.mrb[109].mxu1  ;;  %5755 = vpow2.f32 %v4791_v1  ;;  %v3810_v22 = vadd.f32 %v6587_v8, %v3809_v62 }
 0x79d   :  { %v3841_v2 = vmul.f32 %v5750_v0, %v3618_v60  ;;  %v3812_v3 = vpop.f32.mrb[110].mxu1 }
 0x79e   :  { %v5428_v6 = vpop.f32.mrb[111].mxu1 }
 0x79f   :  { %v3842_v28 = vadd.f32 %v3841_v2, %v3820_v5  ;;  %v4264_v2 = vld [vmem:[#allocation2 + $0x78] sm:$0xff] }
 0x7a1   :  { %5757 = vtanh.f32 %v3842_v28 }
 0x7a4   :  { %v5752_v9 = vpop.eup %5751 }
 0x7a5   :  { %v3852_v11 = vadd.f32 1.0, %v5752_v9  ;;  %v5754_v13 = vpop.eup %5753 }
 0x7a6   :  { %v5756_v16 = vpop.eup %5755  ;;  %v3844_v17 = vsub.f32 1.0, %v5754_v13  ;;  %v3846_v18 = vmul.f32 %v5754_v13, %v6656_v49 }
 0x7a7   :  { %5759 = vrcp.f32 %v3852_v11  ;;  %v3859_v20 = vadd.f32 1.0, %v5756_v16 }
 0x7a9   :  { %5761 = vrcp.f32 %v3859_v20 }
 0x7ab   :  { %v5758_v44 = vpop.eup %5757 }
 0x7ac   :  { %v3845_v19 = vmul.f32 %v5758_v44, %v3844_v17 }
 0x7ae   :  { %v6722_v45 = vadd.f32 %v3846_v18, %v3845_v19  ;;  %v4267_v19 = vld [vmem:[#allocation3] sm:$0xff] }
 0x7b0   :  { %3869 = vst.msk [vmem:[#allocation12 + $0x30] sm:$0xff] %vm149_vm0, %v6722_v45  ;;  %v3875_v24 = vpack.c.bf16 %v6722_v45, %v6722_v45 }
 0x7b1   :  { %v5760_v39 = vpop.eup %5759 }
 0x7b2   :  { %v3862_v49 = vmul.f32 %v5760_v39, %v3810_v22  ;;  %5434 = vmatmul.mubr.msk.bf16.vlgmr.msra.gmra.mrb[104].mxu0 %vm149_vm0, %v3875_v24  ;;  %5442 = vmatmul.mubr.msk.bf16.vlgmr.msra.gmra.mrb[112].mxu1 %vm149_vm0, %v3875_v24 }
 0x7b3   :  { %5446 = vmatpush3.bf16.msra.mxu0 %v5613_v21  ;;  %5449 = vmatprep.mubr.msk.bf16.mxu0 %vm5938_vm1, %v5937_v15  ;;  %v5762_v36 = vpop.eup %5761 }
 0x7b4   :  { %v3863_v27 = vadd.f32 %v3862_v49, %v3826_v26  ;;  %5447 = vmatprep.subr.bf16.mxu0 %v5937_v15  ;;  %5454 = vmatpush3.bf16.msra.mxu1 %v5615_v25  ;;  %v3865_v37 = vsub.f32 1.0, %v5762_v36  ;;  %v3867_v40 = vmul.f32 %v5762_v36, %v6685_v57  ;;  %v4269_v49 = vld [vmem:[#allocation3 + $0x40] sm:$0xff] }
 0x7b5   :  { %5455 = vmatprep.subr.bf16.mxu1 %v5937_v15  ;;  %5457 = vmatprep.mubr.msk.bf16.mxu1 %vm5938_vm1, %v5937_v15 }
 0x7b6   :  { %5763 = vtanh.f32 %v3863_v27 }
 0x7b7   :  { %5448 = vmatpush3.bf16.msra.mxu0 %v5614_v38 }
 0x7b8   :  { %5461 = vmatprep.subr.bf16.mxu0 %v5937_v15  ;;  %5456 = vmatpush3.bf16.msra.mxu1 %v5617_v32 }
 0x7b9   :  { %5469 = vmatprep.subr.bf16.mxu1 %v5937_v15 }
 0x7ba   :  { %5450 = vmatmul.mubr.msk.bf16.vlgmr.msra.gmra.mrb[108].mxu0 %vm149_vm0, %v3875_v24 }
 0x7bb   :  { %5462 = vmatpush3.bf16.msra.mxu0 %v5616_v33  ;;  %5465 = vmatprep.mubr.msk.bf16.mxu0 %vm5938_vm1, %v5937_v15 }
 0x7bc   :  { %5463 = vmatprep.subr.bf16.mxu0 %v5937_v15 }
 0x7bf   :  { %5464 = vmatpush3.bf16.msra.mxu0 %v5618_v35 }
 0x7c0   :  { %v5764_v63 = vpop.eup %5763  ;;  %5477 = vmatprep.subr.bf16.mxu0 %v5937_v15 }
 0x7c1   :  { %v3866_v41 = vmul.f32 %v5764_v63, %v3865_v37  ;;  %v4266_v63 = vld [vmem:[#allocation2 + $0xb8] sm:$0xff] }
 0x7c3   :  { %v6751_v42 = vadd.f32 %v3867_v40, %v3866_v41 }
 0x7c5   :  { %3871 = vrot.lane.b32.xlu1 %v6751_v42, %s5940_s18  ;;  %v3876_v46 = vpack.c.bf16 %v6751_v42, %v6751_v42 }
 0x7c7   :  { %5458 = vmatmul.mubr.msk.bf16.vlgmr.msra.gmra.mrb[116].mxu1 %vm149_vm0, %v3876_v46  ;;  %5466 = vmatmul.mubr.msk.bf16.vlgmr.msra.gmra.mrb[112].mxu0 %vm149_vm0, %v3876_v46 }
 0x7c8   :  { %5470 = vmatpush3.bf16.msra.mxu1 %v5619_v43  ;;  %5473 = vmatprep.mubr.msk.bf16.mxu1 %vm5938_vm1, %v5937_v15  ;;  %v5624_v43 = vld [vmem:[%s6842_s9 + $0x18] sm:$0xff]   ;;  %s5941_s9 = smov [#allocation12]  }
 0x7c9   :  { %5471 = vmatprep.subr.bf16.mxu1 %v5937_v15  ;;  %5485 = vmatprep.mubr.msk.bf16.mxu0 %vm5938_vm1, %v5937_v15 }
 0x7ca   :  { %5478 = vmatpush3.bf16.msra.mxu0 %v5621_v14 }
 0x7cb   :  { %5479 = vmatprep.subr.bf16.mxu0 %v5937_v15 }
 0x7cc   :  { %5472 = vmatpush3.bf16.msra.mxu1 %v5620_v47 }
 0x7ce   :  { %5480 = vmatpush3.bf16.msra.mxu0 %v5622_v12 }
 0x7cf   :  { %5474 = vmatmul.mubr.msk.bf16.vlgmr.msra.gmra.mrb[120].mxu1 %vm149_vm0, %v3876_v46  ;;  %5481 = vmatprep.subr.bf16.mxu0 %v5937_v15 }
 0x7d2   :  { %5482 = vmatpush3.bf16.msra.mxu0 %v5623_v7 }
 0x7d3   :  { %5483 = vmatprep.subr.bf16.mxu0 %v5937_v15 }
 0x7d6   :  { %5484 = vmatpush3.bf16.msra.mxu0 %v5624_v43 }
 0x837   :  { %v3872_v48 = vpop.permute.xlu1 %3871 }
 0x838   :  { %3874 = vst.msk [vmem:[#allocation12 + $0x8] sm:$0xff] %vm1179_vm2, %v3872_v48 }
 0x885   :  { %v3937_v51 = vpop.f32.mrb[104].mxu0  ;;  %v4000_v52 = vpop.f32.mrb[112].mxu1 }
 0x886   :  { %v3938_v53 = vadd.f32 %v6562_v4, %v3937_v51  ;;  %v5435_v54 = vpop.f32.mrb[105].mxu0  ;;  %v5443_v55 = vpop.f32.mrb[113].mxu1  ;;  %v4001_v58 = vadd.f32 %v6564_v23, %v4000_v52 }
 0x887   :  { %v3940_v59 = vpop.f32.mrb[106].mxu0  ;;  %v4003_v60 = vpop.f32.mrb[114].mxu1 }
 0x888   :  { %v4272_v62 = vadd.f32 %v4262_v56, %v3938_v53  ;;  %v5436_v0 = vpop.f32.mrb[107].mxu0  ;;  %v5444_v1 = vpop.f32.mrb[115].mxu1  ;;  %v4279_v3 = vadd.f32 %v4264_v2, %v4001_v58  ;;  %v4271_v58 = vld [vmem:[#allocation3 + $0x80] sm:$0xff] }
 0x88a   :  { %v4826_v34 = vmul.f32 -1.442695, %v4272_v62  ;;  %v4827_v6 = vmul.f32 -1.442695, %v4279_v3 }
 0x88c   :  { %5765 = vpow2.f32 %v4826_v34 }
 0x88d   :  { %v4063_v5 = vpop.f32.mrb[108].mxu0  ;;  %5767 = vpow2.f32 %v4827_v6 }
 0x88e   :  { %v5451_v15 = vpop.f32.mrb[109].mxu0  ;;  %v4064_v32 = vadd.f32 %v6580_v50, %v4063_v5 }
 0x88f   :  { %v4066_v28 = vpop.f32.mrb[110].mxu0 }
 0x890   :  { %v5452_v9 = vpop.f32.mrb[111].mxu0 }
 0x896   :  { %v5766_v4 = vpop.eup %5765 }
 0x897   :  { %v4276_v11 = vadd.f32 1.0, %v5766_v4  ;;  %v5768_v22 = vpop.eup %5767 }
 0x898   :  { %v4283_v27 = vadd.f32 1.0, %v5768_v22 }
 0x899   :  { %5769 = vrcp.f32 %v4276_v11 }
 0x89a   :  { %v4129_v13 = vpop.f32.mrb[116].mxu1  ;;  %v4192_v23 = vpop.f32.mrb[112].mxu0 }
 0x89b   :  { %v4130_v16 = vadd.f32 %v6571_v29, %v4129_v13  ;;  %v4193_v17 = vadd.f32 %v6576_v30, %v4192_v23  ;;  %v5459_v44 = vpop.f32.mrb[117].mxu1  ;;  %v5467_v18 = vpop.f32.mrb[113].mxu0 }
 0x89c   :  { %v4132_v20 = vpop.f32.mrb[118].mxu1  ;;  %v4195_v21 = vpop.f32.mrb[114].mxu0 }
 0x89d   :  { %v4293_v24 = vadd.f32 %v4267_v19, %v4130_v16  ;;  %v5460_v25 = vpop.f32.mrb[119].mxu1  ;;  %v5468_v39 = vpop.f32.mrb[115].mxu0  ;;  %v4300_v38 = vadd.f32 %v4269_v49, %v4193_v17 }
 0x89f   :  { %v4828_v26 = vmul.f32 -1.442695, %v4293_v24  ;;  %v4829_v35 = vmul.f32 -1.442695, %v4300_v38 }
 0x8a1   :  { %5771 = vpow2.f32 %v4828_v26 }
 0x8a2   :  { %v4255_v33 = vpop.f32.mrb[120].mxu1  ;;  %5773 = vrcp.f32 %v4283_v27 }
 0x8a3   :  { %v5770_v29 = vpop.eup %5769  ;;  %v5475_v30 = vpop.f32.mrb[121].mxu1  ;;  %5775 = vpow2.f32 %v4829_v35  ;;  %v4256_v54 = vadd.f32 %v6587_v8, %v4255_v33 }
 0x8a4   :  { %v4286_v36 = vmul.f32 %v5770_v29, %v4064_v32  ;;  %v4258_v37 = vpop.f32.mrb[122].mxu1 }
 0x8a5   :  { %v5476_v41 = vpop.f32.mrb[123].mxu1 }
 0x8a6   :  { %v4287_v40 = vadd.f32 %v4286_v36, %v4266_v63 }
 0x8a8   :  { %5777 = vtanh.f32 %v4287_v40 }
 0x8ab   :  { %v5772_v46 = vpop.eup %5771 }
 0x8ac   :  { %v4297_v47 = vadd.f32 1.0, %v5772_v46  ;;  %v5774_v50 = vpop.eup %5773 }
 0x8ad   :  { %v5776_v48 = vpop.eup %5775  ;;  %v4289_v14 = vsub.f32 1.0, %v5774_v50  ;;  %v4291_v51 = vmul.f32 %v5774_v50, %v6722_v45 }
 0x8ae   :  { %5779 = vrcp.f32 %v4297_v47  ;;  %v4304_v52 = vadd.f32 1.0, %v5776_v48 }
 0x8b0   :  { %5781 = vrcp.f32 %v4304_v52 }
 0x8b2   :  { %v5778_v12 = vpop.eup %5777 }
 0x8b3   :  { %v4290_v7 = vmul.f32 %v5778_v12, %v4289_v14 }
 0x8b5   :  { %v4292_v53 = vadd.f32 %v4291_v51, %v4290_v7 }
 0x8b7   :  { %4321 = vrot.lane.b32.xlu0 %v4292_v53, %s5940_s18 }
 0x8b8   :  { %v5780_v55 = vpop.eup %5779 }
 0x8b9   :  { %v4307_v56 = vmul.f32 %v5780_v55, %v4256_v54 }
 0x8ba   :  { %v5782_v60 = vpop.eup %5781 }
 0x8bb   :  { %v4308_v59 = vadd.f32 %v4307_v56, %v4271_v58  ;;  %1175 = vrot.lane.b32.xlu0 %v6327_v31, %s5940_s18  ;;  %v4310_v45 = vsub.f32 1.0, %v5782_v60  ;;  %v4312_v0 = vmul.f32 %v5782_v60, %v6751_v42 }
 0x8bd   :  { %5783 = vtanh.f32 %v4308_v59 }
 0x8bf   :  { %2532 = vrot.lane.b32.xlu0 %v6531_v61, %s5940_s18 }
 0x8c3   :  { %3425 = vrot.lane.b32.xlu0 %v6685_v57, %s5940_s18 }
 0x8c7   :  { %v5784_v8 = vpop.eup %5783 }
 0x8c8   :  { %v4311_v62 = vmul.f32 %v5784_v8, %v4310_v45 }
 0x8ca   :  { %v4313_v1 = vadd.f32 %v4312_v0, %v4311_v62 }
 0x8cc   :  { %4316 = vrot.lane.b32.xlu0 %v4313_v1, %s5940_s18  ;;  %s4416_s18 = sshll.u32 %s5941_s9, 4  ;;  %s4417_s18 = int_to_ptr.vmem [resolvable:$true] %s4416_s18 }
 0x8cd   :  { %s5875_s15 = scalar_lea.vmem %s4417_s18, 1024  ;;  %p5880_p5 = scmp.lt.s32.totalorder %s4417_s18, %s4417_s18 }
 0x8ce   :  { %p5876_p4 = scmp.ne.s32.totalorder %s4417_s18, %s5875_s15  ;;  %p5881_p6 = scmp.lt.s32.totalorder %s5875_s15, %s5875_s15 }
 0x8d0   :  { %p5882_p7 = por %p5881_p6, %p5880_p5 }
 0x8d2   :  { %p5883_p8 = pnand %p5882_p7, %p5876_p4 }
 0x929   :  { %v4322_v34 = vpop.permute.xlu0 %4321 }
 0x92a   :  { %v4324_v2 = vsel %vm149_vm0, %v4313_v1, %v4322_v34 }
 0x92b   :  { %v4325_v31 = vpack.c.bf16 %v4324_v2, %v4324_v2 }
 0x92d   :  { %v1176_v3 = vpop.permute.xlu0 %1175  ;;  %5486 = vmatmul.mubr.msk.bf16.vlgmr.msra.gmra.mrb[116].mxu0 %vm4365_vm3, %v4325_v31 }
 0x92e   :  { %1180 = vst.msk [vmem:[#allocation12 + $0x38] sm:$0xff] %vm1179_vm2, %v1176_v3 }
 0x92f   :  { %4314 = vst.msk [vmem:[#allocation12 + $0x38] sm:$0xff] %vm149_vm0, %v4292_v53 }
 0x931   :  { %v2533_v61 = vpop.permute.xlu0 %2532 }
 0x932   :  { %2536 = vst.msk [vmem:[#allocation12 + $0x20] sm:$0xff] %vm1179_vm2, %v2533_v61 }
 0x933   :  { %2977 = vst.msk [vmem:[#allocation12 + $0x20] sm:$0xff] %vm149_vm0, %v6589_v10 }
 0x935   :  { %v3426_v57 = vpop.permute.xlu0 %3425 }
 0x936   :  { %3428 = vst.msk [vmem:[#allocation12 + $0x10] sm:$0xff] %vm1179_vm2, %v3426_v57 }
 0x93e   :  { %v4317_v42 = vpop.permute.xlu0 %4316 }
 0x93f   :  { %4319 = vst.msk [vmem:[#allocation12] sm:$0xff] %vm1179_vm2, %v4317_v42 }
 0x940   :  { %5886 = shalt.err (!%p5883_p8)
}
 0x941   :  { %s5887_s7 = scalar_lea.hbm %s6844_s11, 1024 }
 0x942   :  { %p5888_p9 = scmp.ne.s32.totalorder %s6844_s11, %s5887_s7  ;;  %p5891_p10 = scmp.lt.u32.totalorder %s5887_s7, %s6844_s11 }
 0x944   :  { %p5893_p11 = pnand %p5891_p10, %p5888_p9 }
 0x946   :  { %5896 = shalt.err (!%p5893_p11)
}
 0x947   :  { %s5942_s23 = smov 128   ;;  %s5943_s25 = smov 8   ;;  %v4830_v10 = vld [vmem:[%s6843_s10] ss:$0 sm:$0xff] }
 0x948   :  { %4422 = dma.vmem_to_hbm [thread:$0]  %s4417_s18, 1024, %s6844_s11, [#allocation6], %s5942_s23, %s5942_s23, %s5943_s25  }
 0x949   :  { %s5944_s24 = smov [#allocation13]  }
 0x94a   :  { %s4429_s17 = sshll.u32 %s5944_s24, 4  ;;  %s4430_s17 = int_to_ptr.vmem [resolvable:$true] %s4429_s17 }
 0x94b   :  { %s5897_s27 = scalar_lea.vmem %s4430_s17, 128  ;;  %p5902_p13 = scmp.lt.s32.totalorder %s4430_s17, %s4430_s17 }
 0x94c   :  { %p5898_p12 = scmp.ne.s32.totalorder %s4430_s17, %s5897_s27  ;;  %p5903_p0 = scmp.lt.s32.totalorder %s5897_s27, %s5897_s27 }
 0x94e   :  { %p5904_p1 = por %p5903_p0, %p5902_p13 }
 0x950   :  { %p5905_p2 = pnand %p5904_p1, %p5898_p12 }
 0xa00   :  { %v4403_v5 = vpop.f32.mrb[116].mxu0 }
 0xa01   :  { %v4404_v15 = vadd.f32 %v4830_v10, %v4403_v5  ;;  %v5487_v6 = vpop.f32.mrb[117].mxu0 }
 0xa02   :  { %v4406_v28 = vpop.f32.mrb[118].mxu0 }
 0xa03   :  { %5785 = vtanh.f32 %v4404_v15  ;;  %v5488_v9 = vpop.f32.mrb[119].mxu0 }
 0xa0d   :  { %v5786_v4 = vpop.eup %5785 }
 0xa0e   :  { %4410 = vst.msk [vmem:[#allocation13] sm:$0xff] %vm149_vm0, %v5786_v4 }
 0xa0f   :  { %5908 = shalt.err (!%p5905_p2)
}
 0xa10   :  { %s5909_s8 = scalar_lea.hbm %s6845_s12, 128 }
 0xa11   :  { %p5910_p3 = scmp.ne.s32.totalorder %s6845_s12, %s5909_s8  ;;  %p5913_p4 = scmp.lt.u32.totalorder %s5909_s8, %s6845_s12 }
 0xa13   :  { %p5915_p5 = pnand %p5913_p4, %p5910_p3 }
 0xa15   :  { %5918 = shalt.err (!%p5915_p5)
}
 0xa16   :  { %4432 = dma.vmem_to_hbm [thread:$0]  %s4430_s17, 128, %s6845_s12, [#allocation14]  }
 0xa17   :  { %5925 = dma.done.wait [#allocation6], 1024  }
 0xa18   :  { %5926 = vsyncadd [#allocation6], 4294966272 }
 0xa19   :  { %5927 = dma.done.wait [#allocation14], 128  }
 0xa1a   :  { %5928 = vsyncadd [#allocation14], 4294967168 }
 0xa1b   :  { %4439 = vsyncpa [#allocation5], 1 }
 0xa1c   :  { %4440 = vsyncpa [#allocation8], 1 }
 0xa1d   :  { %4441 = vsyncpa [#allocation11], 1 }
 0xa1e   :  { %4442 = vsyncpa [#allocation6], 1 }
 0xa1f   :  { %4443 = vsyncpa [#allocation14], 1 }

</bundles_post_ra>
